<compile_context>
chip_gen: v6e
topology: v6e:2x2x1
jax: 0.10.0
libtpu: 0.0.40
codegen_flags: <defaults>
</compile_context>

<pallas_src>
import math
import jax
import jax.numpy as jnp
from jax import lax
from jax.experimental import pallas as pl
from jax.experimental.pallas import tpu as pltpu  # noqa: F401

# ----- model hyper-parameters (small, consistent with the module's args) -----
B = 2            # args.batch_size
S = 8            # args.max_seq_length
H = 32           # args.hidden_size
NUM_HEADS = 2    # args.num_attention_heads
HEAD_DIM = H // NUM_HEADS
FFN = 4 * H      # intermediate size
ITEM_SIZE = 64   # args.item_size
NUM_LAYERS = 2   # args.num_hidden_layers
EPS = 1e-12      # LayerNorm eps
INIT_RANGE = 0.02

N = B * S                    # tokens processed as one flat (N, H) slab
STACKS = 3                   # 0: encoder_mu, 1: encoder_logvar, 2: decoder
SL = STACKS * NUM_LAYERS     # total transformer layers in the fused kernel
OUT_W = 4 * H                # 128 lanes: [rec | mu | logvar | z]
_SCALE = 1.0 / math.sqrt(HEAD_DIM)
_NEG_XBATCH = -1e30          # cross-batch additive mask (underflows to 0 in exp)

# bf16 weight slab layout, shape (SL, H, WCOLS); per layer the lane axis holds:
#   [QKV_OFF : WO_OFF)   fused W_qkv            (H, 3H)
#   [WO_OFF  : W1_OFF)   W_o                    (H, H)
#   [W1_OFF  : W2_OFF)   W_ffn1                 (H, FFN)
#   [W2_OFF  : WCOLS)    W_ffn2 transposed      (H, FFN)
QKV_OFF = 0
WO_OFF = 3 * H
W1_OFF = 4 * H
W2_OFF = 4 * H + FFN
WCOLS = 4 * H + 2 * FFN          # 384

# f32 small-param slab, shape (SP_PAD, 128):
#   row 0:                [emb-LN weight (H) | emb-LN bias (H) | 0]
#   per layer sl, r=1+4*sl:
#     r   : [qkv bias (3H) | o bias (H)]
#     r+1 : [ln1 w (H) | ln1 b (H) | ln2 w (H) | ln2 b (H)]
#     r+2 : [ffn1 bias (FFN)]
#     r+3 : [ffn2 bias (H) | 0]
SP_ROWS = 1 + 4 * SL
SP_PAD = ((SP_ROWS + 7) // 8) * 8   # 32


# --------------------------- in-kernel helpers --------------------------------
def _layernorm(x, w, b):
    mu = jnp.mean(x, axis=-1, keepdims=True)
    xc = x - mu
    var = jnp.mean(xc * xc, axis=-1, keepdims=True)
    return xc * lax.rsqrt(var + EPS) * w + b


def _gelu(x):
    # tanh-approximate GELU (EUP tanh instead of VALU erf polynomial)
    c = math.sqrt(2.0 / math.pi)
    return 0.5 * x * (1.0 + jnp.tanh(c * (x + 0.044715 * (x * x * x))))


# ------------------------------ fused kernel ----------------------------------
def contrastvae_kernel(emb_ref, mask_ref, wbig_ref, sp_ref, out_ref):
    mask = mask_ref[...]                                     # (N, N) f32, prebuilt
    sp = sp_ref[...]                                         # (SP_PAD, 128) f32

    def layer(x, sl):
        w = wbig_ref[sl]                                     # (H, WCOLS) bf16
        r = 1 + 4 * sl
        bias = sp[r:r + 1, :]                                # (1,128) [qkv_b | o_b]
        lnp = sp[r + 1:r + 2, :]                             # (1,128) LN params
        b1 = sp[r + 2:r + 3, :]                              # (1,FFN)
        b2 = sp[r + 3:r + 4, 0:H]                            # (1,H)

        xb = x.astype(jnp.bfloat16)
        # fused Q/K/V projection: one (N,32)x(32,96) MXU push
        qkv = jnp.dot(xb, w[:, QKV_OFF:WO_OFF],
                      preferred_element_type=jnp.float32) + bias[:, 0:3 * H]
        qkvb = qkv.astype(jnp.bfloat16)

        ctxs = []
        for h in range(NUM_HEADS):                           # static 2-iter loop
            lo, hi = h * HEAD_DIM, (h + 1) * HEAD_DIM
            q = qkvb[:, lo:hi]
            k = qkvb[:, H + lo:H + hi]
            v = qkvb[:, 2 * H + lo:2 * H + hi]
            sc = lax.dot_general(q, k, (((1,), (1,)), ((), ())),
                                 preferred_element_type=jnp.float32)
            sc = sc * _SCALE + mask
            sc = sc - jnp.max(sc, axis=-1, keepdims=True)
            p = jnp.exp(sc)
            p = p * pl.reciprocal(jnp.sum(p, axis=-1, keepdims=True), approx=True)
            ctxs.append(jnp.dot(p.astype(jnp.bfloat16), v,
                                preferred_element_type=jnp.float32))
        ctx = jnp.concatenate(ctxs, axis=-1)                 # (N, H) f32

        # single merged output projection (K = H = 32)
        attn = jnp.dot(ctx.astype(jnp.bfloat16), w[:, WO_OFF:W1_OFF],
                       preferred_element_type=jnp.float32) + bias[:, 3 * H:4 * H]

        h1 = _layernorm(attn + x, lnp[:, 0:H], lnp[:, H:2 * H])
        ff = jnp.dot(h1.astype(jnp.bfloat16), w[:, W1_OFF:W2_OFF],
                     preferred_element_type=jnp.float32) + b1
        ff = _gelu(ff)
        # W_ffn2 is stored transposed -> contract both last dims (A @ B^T)
        ff = lax.dot_general(ff.astype(jnp.bfloat16), w[:, W2_OFF:WCOLS],
                             (((1,), (1,)), ((), ())),
                             preferred_element_type=jnp.float32) + b2
        return _layernorm(ff + h1, lnp[:, 2 * H:3 * H], lnp[:, 3 * H:4 * H])

    def run_stack(x, s):
        for l in range(NUM_LAYERS):
            x = layer(x, s * NUM_LAYERS + l)
        return x

    # embedding LayerNorm (item + position embeddings are summed in the wrapper)
    x0 = _layernorm(emb_ref[...], sp[0:1, 0:H], sp[0:1, H:2 * H])

    mu = run_stack(x0, 0)                                    # item_encoder_mu
    logvar = run_stack(x0, 1)                                # item_encoder_logvar
    z = mu + jnp.exp(0.5 * logvar)                           # eval-mode reparam 2/4
    rec = run_stack(z, 2)                                    # item_decoder

    # single lane-dense (N, 4*H) = (16, 128) store
    out_ref[...] = jnp.concatenate([rec, mu, logvar, z], axis=-1)


# ------------------------------ wrapper ----------------------------------------
def _contrastvae_pallas(emb2d, mask, wbig, sp):
    return pl.pallas_call(
        contrastvae_kernel,
        out_shape=jax.ShapeDtypeStruct((N, OUT_W), jnp.float32),
    )(emb2d, mask, wbig, sp)


def _build_mask(input_ids):
    # Flattened (N, N) additive mask.  Within a batch element: PyTorch
    # (1-mask)*-10000 convention (causal + key padding).  Cross-batch: -1e30,
    # which underflows to exactly 0 after exp -> identical to per-batch softmax.
    key_valid = input_ids > 0                                        # (B, S)
    causal = jnp.arange(S)[:, None] >= jnp.arange(S)[None, :]        # (S, S)
    allowed = causal[None, :, :] & key_valid[:, None, :]             # (B, S, S)
    within = jnp.where(allowed, 0.0, -10000.0).astype(jnp.float32)   # (B, S, S)
    same_b = jnp.eye(B, dtype=bool)[:, None, :, None]                # (B,1,B,1)
    full = jnp.where(same_b, within[:, :, None, :],
                     jnp.float32(_NEG_XBATCH))                       # (B,S,B,S)
    return full.reshape(N, N)


@jax.jit
def forward(params, input_ids, aug_input_ids, step):
    del aug_input_ids, step  # unused in the latent_contrastive_learning / eval path
    # embedding gather + position add + mask build stay in the XLA prologue
    item = jnp.take(params["item_emb"], input_ids, axis=0)           # (B, S, H)
    emb2d = (item + params["pos_emb"][None, :, :]).reshape(N, H)     # (N, H)
    mask = _build_mask(input_ids)                                    # (N, N)

    packed = _contrastvae_pallas(emb2d, mask, params["wbig"], params["sp"])
    rec = packed[:, 0 * H:1 * H].reshape(B, S, H)
    mu = packed[:, 1 * H:2 * H].reshape(B, S, H)
    logvar = packed[:, 2 * H:3 * H].reshape(B, S, H)
    z = packed[:, 3 * H:4 * H].reshape(B, S, H)

    # eval mode is deterministic: both encode() calls and both reparameterizations
    # yield identical tensors, so the contrastive pair reuses the same arrays.
    return rec, rec, mu, mu, logvar, logvar, z, z


# ------------------------------ parameters -------------------------------------
def init_params(key):
    k_item, k_pos, k_w = jax.random.split(key, 3)
    rnd = lambda k, shp: jax.random.normal(k, shp, jnp.float32) * INIT_RANGE

    item_emb = rnd(k_item, (ITEM_SIZE, H)).at[0].set(0.0)            # padding_idx=0
    pos_emb = rnd(k_pos, (S, H))

    wkeys = jax.random.split(k_w, SL * 6)
    wbig_layers = []
    ki = 0
    for _ in range(SL):
        wq = rnd(wkeys[ki], (H, H)); ki += 1
        wk = rnd(wkeys[ki], (H, H)); ki += 1
        wv = rnd(wkeys[ki], (H, H)); ki += 1
        wo = rnd(wkeys[ki], (H, H)); ki += 1
        w1 = rnd(wkeys[ki], (H, FFN)); ki += 1
        w2 = rnd(wkeys[ki], (FFN, H)); ki += 1
        wbig_layers.append(jnp.concatenate(
            [jnp.concatenate([wq, wk, wv], axis=1), wo, w1, w2.T], axis=1))
    wbig = jnp.stack(wbig_layers).astype(jnp.bfloat16)               # (SL, H, WCOLS)

    # small-param slab: all Linear biases zero, LayerNorm weight 1 / bias 0
    sp = jnp.zeros((SP_PAD, 128), jnp.float32)
    sp = sp.at[0, 0:H].set(1.0)                                      # embedding LN w
    for sl in range(SL):
        r = 1 + 4 * sl
        sp = sp.at[r + 1, 0:H].set(1.0)                              # ln1 weight
        sp = sp.at[r + 1, 2 * H:3 * H].set(1.0)                      # ln2 weight

    return dict(item_emb=item_emb, pos_emb=pos_emb, wbig=wbig, sp=sp)


# --------------------------------- main -----------------------------------------
if __name__ == "__main__":
    key = jax.random.PRNGKey(0)
    k_par, k_ids, k_aug = jax.random.split(key, 3)
    params = init_params(k_par)

    input_ids = jax.random.randint(k_ids, (B, S), 0, ITEM_SIZE, dtype=jnp.int32)
    input_ids = input_ids.at[:, 0].set(0)        # some padding tokens
    aug_input_ids = jax.random.randint(k_aug, (B, S), 0, ITEM_SIZE, dtype=jnp.int32)

    outs = forward(params, input_ids, aug_input_ids, 1)
    outs = jax.block_until_ready(outs)

    # mirror of the PyTorch self.r1 internal-buffer update (not a forward output)
    r1 = jnp.ones((B, S, 1), jnp.float32)
    r1 = r1 + jax.nn.softmax(outs[0].sum(axis=-1), axis=1)[..., None]
    r1 = (r1 - r1.min()) / (r1.max() - r1.min())
    r1 = jax.block_until_ready(r1)

    assert outs[0].shape == (B, S, H) and outs[2].shape == (B, S, H)
    assert outs[6].shape == (B, S, H)
    assert all(bool(jnp.all(jnp.isfinite(o))) for o in outs)
    print("KERNEL_OK")
</pallas_src>

<mosaic_0001>
module attributes {stable_mosaic.version = 11 : i64} {
  func.func @contrastvae_kernel(%arg0: memref<16x32xf32, #tpu.memory_space<vmem>>, %arg1: memref<16x16xf32, #tpu.memory_space<vmem>>, %arg2: memref<6x32x384xbf16, #tpu.memory_space<vmem>>, %arg3: memref<32x128xf32, #tpu.memory_space<vmem>>, %arg4: memref<16x128xf32, #tpu.memory_space<vmem>>) attributes {dimension_semantics = [], scalar_prefetch = 0 : i64, scratch_operands = 0 : i64, tpu.core_type = #tpu.core_type<tc>} {
    %c0 = arith.constant 0 : index
    %c0_0 = arith.constant 0 : index
    %0 = vector.load %arg1[%c0, %c0_0] : memref<16x16xf32, #tpu.memory_space<vmem>>, vector<16x16xf32>
    %c0_1 = arith.constant 0 : index
    %c0_2 = arith.constant 0 : index
    %1 = vector.load %arg3[%c0_1, %c0_2] : memref<32x128xf32, #tpu.memory_space<vmem>>, vector<32x128xf32>
    %c0_3 = arith.constant 0 : index
    %c0_4 = arith.constant 0 : index
    %2 = vector.load %arg0[%c0_3, %c0_4] : memref<16x32xf32, #tpu.memory_space<vmem>>, vector<16x32xf32>
    %3 = vector.extract_strided_slice %1 {offsets = [0, 0], sizes = [1, 32], strides = [1, 1]} : vector<32x128xf32> to vector<1x32xf32>
    %4 = vector.extract_strided_slice %1 {offsets = [0, 32], sizes = [1, 32], strides = [1, 1]} : vector<32x128xf32> to vector<1x32xf32>
    %cst = arith.constant dense<0.000000e+00> : vector<16xf32>
    %5 = vector.multi_reduction <add>, %2, %cst [1] : vector<16x32xf32> to vector<16xf32>
    %6 = vector.shape_cast %5 : vector<16xf32> to vector<16x1xf32>
    %cst_5 = arith.constant 3.200000e+01 : f32
    %7 = vector.broadcast %cst_5 : f32 to vector<16x1xf32>
    %8 = arith.divf %6, %7 : vector<16x1xf32>
    %9 = vector.broadcast %8 : vector<16x1xf32> to vector<16x32xf32>
    %10 = arith.subf %2, %9 : vector<16x32xf32>
    %11 = arith.mulf %10, %10 : vector<16x32xf32>
    %cst_6 = arith.constant dense<0.000000e+00> : vector<16xf32>
    %12 = vector.multi_reduction <add>, %11, %cst_6 [1] : vector<16x32xf32> to vector<16xf32>
    %13 = vector.shape_cast %12 : vector<16xf32> to vector<16x1xf32>
    %cst_7 = arith.constant 3.200000e+01 : f32
    %14 = vector.broadcast %cst_7 : f32 to vector<16x1xf32>
    %15 = arith.divf %13, %14 : vector<16x1xf32>
    %cst_8 = arith.constant 9.99999996E-13 : f32
    %16 = vector.broadcast %cst_8 : f32 to vector<16x1xf32>
    %17 = arith.addf %15, %16 : vector<16x1xf32>
    %18 = math.rsqrt %17 : vector<16x1xf32>
    %19 = vector.broadcast %18 : vector<16x1xf32> to vector<16x32xf32>
    %20 = arith.mulf %10, %19 : vector<16x32xf32>
    %21 = vector.broadcast %3 : vector<1x32xf32> to vector<16x32xf32>
    %22 = arith.mulf %20, %21 : vector<16x32xf32>
    %23 = vector.broadcast %4 : vector<1x32xf32> to vector<16x32xf32>
    %24 = arith.addf %22, %23 : vector<16x32xf32>
    %c0_9 = arith.constant 0 : index
    %c0_10 = arith.constant 0 : index
    %c0_11 = arith.constant 0 : index
    %25 = vector.load %arg2[%c0_9, %c0_10, %c0_11] : memref<6x32x384xbf16, #tpu.memory_space<vmem>>, vector<1x32x384xbf16>
    %26 = vector.shape_cast %25 : vector<1x32x384xbf16> to vector<32x384xbf16>
    %27 = vector.extract_strided_slice %1 {offsets = [1, 0], sizes = [1, 128], strides = [1, 1]} : vector<32x128xf32> to vector<1x128xf32>
    %28 = vector.extract_strided_slice %1 {offsets = [2, 0], sizes = [1, 128], strides = [1, 1]} : vector<32x128xf32> to vector<1x128xf32>
    %29 = vector.extract_strided_slice %1 {offsets = [3, 0], sizes = [1, 128], strides = [1, 1]} : vector<32x128xf32> to vector<1x128xf32>
    %30 = vector.extract_strided_slice %1 {offsets = [4, 0], sizes = [1, 32], strides = [1, 1]} : vector<32x128xf32> to vector<1x32xf32>
    %31 = arith.truncf %24 : vector<16x32xf32> to vector<16x32xbf16>
    %32 = vector.extract_strided_slice %26 {offsets = [0, 0], sizes = [32, 96], strides = [1, 1]} : vector<32x384xbf16> to vector<32x96xbf16>
    %cst_12 = arith.constant dense<0.000000e+00> : vector<16x96xf32>
    %33 = tpu.matmul %31, %32, %cst_12 {dimension_numbers = #tpu.dot_dimension_numbers<[1], [0], [0], [1], [0, 0, 1, 1], [], []>} : vector<16x32xbf16>, vector<32x96xbf16>, vector<16x96xf32> -> vector<16x96xf32>
    %34 = vector.extract_strided_slice %27 {offsets = [0, 0], sizes = [1, 96], strides = [1, 1]} : vector<1x128xf32> to vector<1x96xf32>
    %35 = vector.broadcast %34 : vector<1x96xf32> to vector<16x96xf32>
    %36 = arith.addf %33, %35 : vector<16x96xf32>
    %37 = arith.truncf %36 : vector<16x96xf32> to vector<16x96xbf16>
    %38 = vector.extract_strided_slice %37 {offsets = [0, 0], sizes = [16, 16], strides = [1, 1]} : vector<16x96xbf16> to vector<16x16xbf16>
    %39 = vector.extract_strided_slice %37 {offsets = [0, 32], sizes = [16, 16], strides = [1, 1]} : vector<16x96xbf16> to vector<16x16xbf16>
    %40 = vector.extract_strided_slice %37 {offsets = [0, 64], sizes = [16, 16], strides = [1, 1]} : vector<16x96xbf16> to vector<16x16xbf16>
    %cst_13 = arith.constant dense<0.000000e+00> : vector<16x16xf32>
    %41 = tpu.matmul %38, %39, %cst_13 {dimension_numbers = #tpu.dot_dimension_numbers<[1], [1], [0], [0], [0, 0, 1, 0], [], []>} : vector<16x16xbf16>, vector<16x16xbf16>, vector<16x16xf32> -> vector<16x16xf32>
    %cst_14 = arith.constant 2.500000e-01 : f32
    %42 = vector.broadcast %cst_14 : f32 to vector<16x16xf32>
    %43 = arith.mulf %41, %42 : vector<16x16xf32>
    %44 = arith.addf %43, %0 : vector<16x16xf32>
    %cst_15 = arith.constant dense<0xFF800000> : vector<16xf32>
    %45 = vector.multi_reduction <maximumf>, %44, %cst_15 [1] : vector<16x16xf32> to vector<16xf32>
    %46 = vector.shape_cast %45 : vector<16xf32> to vector<16x1xf32>
    %47 = vector.broadcast %46 : vector<16x1xf32> to vector<16x16xf32>
    %48 = arith.subf %44, %47 : vector<16x16xf32>
    %49 = math.exp %48 : vector<16x16xf32>
    %cst_16 = arith.constant dense<0.000000e+00> : vector<16xf32>
    %50 = vector.multi_reduction <add>, %49, %cst_16 [1] : vector<16x16xf32> to vector<16xf32>
    %51 = vector.shape_cast %50 : vector<16xf32> to vector<16x1xf32>
    %52 = tpu.reciprocal %51 {approx = true} : vector<16x1xf32> -> vector<16x1xf32>
    %53 = vector.broadcast %52 : vector<16x1xf32> to vector<16x16xf32>
    %54 = arith.mulf %49, %53 : vector<16x16xf32>
    %55 = arith.truncf %54 : vector<16x16xf32> to vector<16x16xbf16>
    %cst_17 = arith.constant dense<0.000000e+00> : vector<16x16xf32>
    %56 = tpu.matmul %55, %40, %cst_17 {dimension_numbers = #tpu.dot_dimension_numbers<[1], [0], [0], [1], [0, 0, 1, 1], [], []>} : vector<16x16xbf16>, vector<16x16xbf16>, vector<16x16xf32> -> vector<16x16xf32>
    %57 = vector.extract_strided_slice %37 {offsets = [0, 16], sizes = [16, 16], strides = [1, 1]} : vector<16x96xbf16> to vector<16x16xbf16>
    %58 = vector.extract_strided_slice %37 {offsets = [0, 48], sizes = [16, 16], strides = [1, 1]} : vector<16x96xbf16> to vector<16x16xbf16>
    %59 = vector.extract_strided_slice %37 {offsets = [0, 80], sizes = [16, 16], strides = [1, 1]} : vector<16x96xbf16> to vector<16x16xbf16>
    %cst_18 = arith.constant dense<0.000000e+00> : vector<16x16xf32>
    %60 = tpu.matmul %57, %58, %cst_18 {dimension_numbers = #tpu.dot_dimension_numbers<[1], [1], [0], [0], [0, 0, 1, 0], [], []>} : vector<16x16xbf16>, vector<16x16xbf16>, vector<16x16xf32> -> vector<16x16xf32>
    %cst_19 = arith.constant 2.500000e-01 : f32
    %61 = vector.broadcast %cst_19 : f32 to vector<16x16xf32>
    %62 = arith.mulf %60, %61 : vector<16x16xf32>
    %63 = arith.addf %62, %0 : vector<16x16xf32>
    %cst_20 = arith.constant dense<0xFF800000> : vector<16xf32>
    %64 = vector.multi_reduction <maximumf>, %63, %cst_20 [1] : vector<16x16xf32> to vector<16xf32>
    %65 = vector.shape_cast %64 : vector<16xf32> to vector<16x1xf32>
    %66 = vector.broadcast %65 : vector<16x1xf32> to vector<16x16xf32>
    %67 = arith.subf %63, %66 : vector<16x16xf32>
    %68 = math.exp %67 : vector<16x16xf32>
    %cst_21 = arith.constant dense<0.000000e+00> : vector<16xf32>
    %69 = vector.multi_reduction <add>, %68, %cst_21 [1] : vector<16x16xf32> to vector<16xf32>
    %70 = vector.shape_cast %69 : vector<16xf32> to vector<16x1xf32>
    %71 = tpu.reciprocal %70 {approx = true} : vector<16x1xf32> -> vector<16x1xf32>
    %72 = vector.broadcast %71 : vector<16x1xf32> to vector<16x16xf32>
    %73 = arith.mulf %68, %72 : vector<16x16xf32>
    %74 = arith.truncf %73 : vector<16x16xf32> to vector<16x16xbf16>
    %cst_22 = arith.constant dense<0.000000e+00> : vector<16x16xf32>
    %75 = tpu.matmul %74, %59, %cst_22 {dimension_numbers = #tpu.dot_dimension_numbers<[1], [0], [0], [1], [0, 0, 1, 1], [], []>} : vector<16x16xbf16>, vector<16x16xbf16>, vector<16x16xf32> -> vector<16x16xf32>
    %76 = tpu.concatenate %56, %75 in 1 : vector<16x16xf32>, vector<16x16xf32> -> vector<16x32xf32>
    %77 = arith.truncf %76 : vector<16x32xf32> to vector<16x32xbf16>
    %78 = vector.extract_strided_slice %26 {offsets = [0, 96], sizes = [32, 32], strides = [1, 1]} : vector<32x384xbf16> to vector<32x32xbf16>
    %cst_23 = arith.constant dense<0.000000e+00> : vector<16x32xf32>
    %79 = tpu.matmul %77, %78, %cst_23 {dimension_numbers = #tpu.dot_dimension_numbers<[1], [0], [0], [1], [0, 0, 1, 1], [], []>} : vector<16x32xbf16>, vector<32x32xbf16>, vector<16x32xf32> -> vector<16x32xf32>
    %80 = vector.extract_strided_slice %27 {offsets = [0, 96], sizes = [1, 32], strides = [1, 1]} : vector<1x128xf32> to vector<1x32xf32>
    %81 = vector.broadcast %80 : vector<1x32xf32> to vector<16x32xf32>
    %82 = arith.addf %79, %81 : vector<16x32xf32>
    %83 = arith.addf %82, %24 : vector<16x32xf32>
    %84 = vector.extract_strided_slice %28 {offsets = [0, 0], sizes = [1, 32], strides = [1, 1]} : vector<1x128xf32> to vector<1x32xf32>
    %85 = vector.extract_strided_slice %28 {offsets = [0, 32], sizes = [1, 32], strides = [1, 1]} : vector<1x128xf32> to vector<1x32xf32>
    %cst_24 = arith.constant dense<0.000000e+00> : vector<16xf32>
    %86 = vector.multi_reduction <add>, %83, %cst_24 [1] : vector<16x32xf32> to vector<16xf32>
    %87 = vector.shape_cast %86 : vector<16xf32> to vector<16x1xf32>
    %cst_25 = arith.constant 3.200000e+01 : f32
    %88 = vector.broadcast %cst_25 : f32 to vector<16x1xf32>
    %89 = arith.divf %87, %88 : vector<16x1xf32>
    %90 = vector.broadcast %89 : vector<16x1xf32> to vector<16x32xf32>
    %91 = arith.subf %83, %90 : vector<16x32xf32>
    %92 = arith.mulf %91, %91 : vector<16x32xf32>
    %cst_26 = arith.constant dense<0.000000e+00> : vector<16xf32>
    %93 = vector.multi_reduction <add>, %92, %cst_26 [1] : vector<16x32xf32> to vector<16xf32>
    %94 = vector.shape_cast %93 : vector<16xf32> to vector<16x1xf32>
    %cst_27 = arith.constant 3.200000e+01 : f32
    %95 = vector.broadcast %cst_27 : f32 to vector<16x1xf32>
    %96 = arith.divf %94, %95 : vector<16x1xf32>
    %cst_28 = arith.constant 9.99999996E-13 : f32
    %97 = vector.broadcast %cst_28 : f32 to vector<16x1xf32>
    %98 = arith.addf %96, %97 : vector<16x1xf32>
    %99 = math.rsqrt %98 : vector<16x1xf32>
    %100 = vector.broadcast %99 : vector<16x1xf32> to vector<16x32xf32>
    %101 = arith.mulf %91, %100 : vector<16x32xf32>
    %102 = vector.broadcast %84 : vector<1x32xf32> to vector<16x32xf32>
    %103 = arith.mulf %101, %102 : vector<16x32xf32>
    %104 = vector.broadcast %85 : vector<1x32xf32> to vector<16x32xf32>
    %105 = arith.addf %103, %104 : vector<16x32xf32>
    %106 = arith.truncf %105 : vector<16x32xf32> to vector<16x32xbf16>
    %107 = vector.extract_strided_slice %26 {offsets = [0, 128], sizes = [32, 128], strides = [1, 1]} : vector<32x384xbf16> to vector<32x128xbf16>
    %cst_29 = arith.constant dense<0.000000e+00> : vector<16x128xf32>
    %108 = tpu.matmul %106, %107, %cst_29 {dimension_numbers = #tpu.dot_dimension_numbers<[1], [0], [0], [1], [0, 0, 1, 1], [], []>} : vector<16x32xbf16>, vector<32x128xbf16>, vector<16x128xf32> -> vector<16x128xf32>
    %109 = vector.broadcast %29 : vector<1x128xf32> to vector<16x128xf32>
    %110 = arith.addf %108, %109 : vector<16x128xf32>
    %cst_30 = arith.constant 5.000000e-01 : f32
    %111 = vector.broadcast %cst_30 : f32 to vector<16x128xf32>
    %112 = arith.mulf %111, %110 : vector<16x128xf32>
    %113 = arith.mulf %110, %110 : vector<16x128xf32>
    %114 = arith.mulf %113, %110 : vector<16x128xf32>
    %cst_31 = arith.constant 4.471500e-02 : f32
    %115 = vector.broadcast %cst_31 : f32 to vector<16x128xf32>
    %116 = arith.mulf %115, %114 : vector<16x128xf32>
    %117 = arith.addf %110, %116 : vector<16x128xf32>
    %cst_32 = arith.constant 0.797884583 : f32
    %118 = vector.broadcast %cst_32 : f32 to vector<16x128xf32>
    %119 = arith.mulf %118, %117 : vector<16x128xf32>
    %120 = math.tanh %119 : vector<16x128xf32>
    %cst_33 = arith.constant 1.000000e+00 : f32
    %121 = vector.broadcast %cst_33 : f32 to vector<16x128xf32>
    %122 = arith.addf %121, %120 : vector<16x128xf32>
    %123 = arith.mulf %112, %122 : vector<16x128xf32>
    %124 = arith.truncf %123 : vector<16x128xf32> to vector<16x128xbf16>
    %125 = vector.extract_strided_slice %26 {offsets = [0, 256], sizes = [32, 128], strides = [1, 1]} : vector<32x384xbf16> to vector<32x128xbf16>
    %cst_34 = arith.constant dense<0.000000e+00> : vector<16x32xf32>
    %126 = tpu.matmul %124, %125, %cst_34 {dimension_numbers = #tpu.dot_dimension_numbers<[1], [1], [0], [0], [0, 0, 1, 0], [], []>} : vector<16x128xbf16>, vector<32x128xbf16>, vector<16x32xf32> -> vector<16x32xf32>
    %127 = vector.broadcast %30 : vector<1x32xf32> to vector<16x32xf32>
    %128 = arith.addf %126, %127 : vector<16x32xf32>
    %129 = arith.addf %128, %105 : vector<16x32xf32>
    %130 = vector.extract_strided_slice %28 {offsets = [0, 64], sizes = [1, 32], strides = [1, 1]} : vector<1x128xf32> to vector<1x32xf32>
    %131 = vector.extract_strided_slice %28 {offsets = [0, 96], sizes = [1, 32], strides = [1, 1]} : vector<1x128xf32> to vector<1x32xf32>
    %cst_35 = arith.constant dense<0.000000e+00> : vector<16xf32>
    %132 = vector.multi_reduction <add>, %129, %cst_35 [1] : vector<16x32xf32> to vector<16xf32>
    %133 = vector.shape_cast %132 : vector<16xf32> to vector<16x1xf32>
    %cst_36 = arith.constant 3.200000e+01 : f32
    %134 = vector.broadcast %cst_36 : f32 to vector<16x1xf32>
    %135 = arith.divf %133, %134 : vector<16x1xf32>
    %136 = vector.broadcast %135 : vector<16x1xf32> to vector<16x32xf32>
    %137 = arith.subf %129, %136 : vector<16x32xf32>
    %138 = arith.mulf %137, %137 : vector<16x32xf32>
    %cst_37 = arith.constant dense<0.000000e+00> : vector<16xf32>
    %139 = vector.multi_reduction <add>, %138, %cst_37 [1] : vector<16x32xf32> to vector<16xf32>
    %140 = vector.shape_cast %139 : vector<16xf32> to vector<16x1xf32>
    %cst_38 = arith.constant 3.200000e+01 : f32
    %141 = vector.broadcast %cst_38 : f32 to vector<16x1xf32>
    %142 = arith.divf %140, %141 : vector<16x1xf32>
    %cst_39 = arith.constant 9.99999996E-13 : f32
    %143 = vector.broadcast %cst_39 : f32 to vector<16x1xf32>
    %144 = arith.addf %142, %143 : vector<16x1xf32>
    %145 = math.rsqrt %144 : vector<16x1xf32>
    %146 = vector.broadcast %145 : vector<16x1xf32> to vector<16x32xf32>
    %147 = arith.mulf %137, %146 : vector<16x32xf32>
    %148 = vector.broadcast %130 : vector<1x32xf32> to vector<16x32xf32>
    %149 = arith.mulf %147, %148 : vector<16x32xf32>
    %150 = vector.broadcast %131 : vector<1x32xf32> to vector<16x32xf32>
    %151 = arith.addf %149, %150 : vector<16x32xf32>
    %c1 = arith.constant 1 : index
    %c0_40 = arith.constant 0 : index
    %c0_41 = arith.constant 0 : index
    %152 = vector.load %arg2[%c1, %c0_40, %c0_41] : memref<6x32x384xbf16, #tpu.memory_space<vmem>>, vector<1x32x384xbf16>
    %153 = vector.shape_cast %152 : vector<1x32x384xbf16> to vector<32x384xbf16>
    %154 = vector.extract_strided_slice %1 {offsets = [5, 0], sizes = [1, 128], strides = [1, 1]} : vector<32x128xf32> to vector<1x128xf32>
    %155 = vector.extract_strided_slice %1 {offsets = [6, 0], sizes = [1, 128], strides = [1, 1]} : vector<32x128xf32> to vector<1x128xf32>
    %156 = vector.extract_strided_slice %1 {offsets = [7, 0], sizes = [1, 128], strides = [1, 1]} : vector<32x128xf32> to vector<1x128xf32>
    %157 = vector.extract_strided_slice %1 {offsets = [8, 0], sizes = [1, 32], strides = [1, 1]} : vector<32x128xf32> to vector<1x32xf32>
    %158 = arith.truncf %151 : vector<16x32xf32> to vector<16x32xbf16>
    %159 = vector.extract_strided_slice %153 {offsets = [0, 0], sizes = [32, 96], strides = [1, 1]} : vector<32x384xbf16> to vector<32x96xbf16>
    %cst_42 = arith.constant dense<0.000000e+00> : vector<16x96xf32>
    %160 = tpu.matmul %158, %159, %cst_42 {dimension_numbers = #tpu.dot_dimension_numbers<[1], [0], [0], [1], [0, 0, 1, 1], [], []>} : vector<16x32xbf16>, vector<32x96xbf16>, vector<16x96xf32> -> vector<16x96xf32>
    %161 = vector.extract_strided_slice %154 {offsets = [0, 0], sizes = [1, 96], strides = [1, 1]} : vector<1x128xf32> to vector<1x96xf32>
    %162 = vector.broadcast %161 : vector<1x96xf32> to vector<16x96xf32>
    %163 = arith.addf %160, %162 : vector<16x96xf32>
    %164 = arith.truncf %163 : vector<16x96xf32> to vector<16x96xbf16>
    %165 = vector.extract_strided_slice %164 {offsets = [0, 0], sizes = [16, 16], strides = [1, 1]} : vector<16x96xbf16> to vector<16x16xbf16>
    %166 = vector.extract_strided_slice %164 {offsets = [0, 32], sizes = [16, 16], strides = [1, 1]} : vector<16x96xbf16> to vector<16x16xbf16>
    %167 = vector.extract_strided_slice %164 {offsets = [0, 64], sizes = [16, 16], strides = [1, 1]} : vector<16x96xbf16> to vector<16x16xbf16>
    %cst_43 = arith.constant dense<0.000000e+00> : vector<16x16xf32>
    %168 = tpu.matmul %165, %166, %cst_43 {dimension_numbers = #tpu.dot_dimension_numbers<[1], [1], [0], [0], [0, 0, 1, 0], [], []>} : vector<16x16xbf16>, vector<16x16xbf16>, vector<16x16xf32> -> vector<16x16xf32>
    %cst_44 = arith.constant 2.500000e-01 : f32
    %169 = vector.broadcast %cst_44 : f32 to vector<16x16xf32>
    %170 = arith.mulf %168, %169 : vector<16x16xf32>
    %171 = arith.addf %170, %0 : vector<16x16xf32>
    %cst_45 = arith.constant dense<0xFF800000> : vector<16xf32>
    %172 = vector.multi_reduction <maximumf>, %171, %cst_45 [1] : vector<16x16xf32> to vector<16xf32>
    %173 = vector.shape_cast %172 : vector<16xf32> to vector<16x1xf32>
    %174 = vector.broadcast %173 : vector<16x1xf32> to vector<16x16xf32>
    %175 = arith.subf %171, %174 : vector<16x16xf32>
    %176 = math.exp %175 : vector<16x16xf32>
    %cst_46 = arith.constant dense<0.000000e+00> : vector<16xf32>
    %177 = vector.multi_reduction <add>, %176, %cst_46 [1] : vector<16x16xf32> to vector<16xf32>
    %178 = vector.shape_cast %177 : vector<16xf32> to vector<16x1xf32>
    %179 = tpu.reciprocal %178 {approx = true} : vector<16x1xf32> -> vector<16x1xf32>
    %180 = vector.broadcast %179 : vector<16x1xf32> to vector<16x16xf32>
    %181 = arith.mulf %176, %180 : vector<16x16xf32>
    %182 = arith.truncf %181 : vector<16x16xf32> to vector<16x16xbf16>
    %cst_47 = arith.constant dense<0.000000e+00> : vector<16x16xf32>
    %183 = tpu.matmul %182, %167, %cst_47 {dimension_numbers = #tpu.dot_dimension_numbers<[1], [0], [0], [1], [0, 0, 1, 1], [], []>} : vector<16x16xbf16>, vector<16x16xbf16>, vector<16x16xf32> -> vector<16x16xf32>
    %184 = vector.extract_strided_slice %164 {offsets = [0, 16], sizes = [16, 16], strides = [1, 1]} : vector<16x96xbf16> to vector<16x16xbf16>
    %185 = vector.extract_strided_slice %164 {offsets = [0, 48], sizes = [16, 16], strides = [1, 1]} : vector<16x96xbf16> to vector<16x16xbf16>
    %186 = vector.extract_strided_slice %164 {offsets = [0, 80], sizes = [16, 16], strides = [1, 1]} : vector<16x96xbf16> to vector<16x16xbf16>
    %cst_48 = arith.constant dense<0.000000e+00> : vector<16x16xf32>
    %187 = tpu.matmul %184, %185, %cst_48 {dimension_numbers = #tpu.dot_dimension_numbers<[1], [1], [0], [0], [0, 0, 1, 0], [], []>} : vector<16x16xbf16>, vector<16x16xbf16>, vector<16x16xf32> -> vector<16x16xf32>
    %cst_49 = arith.constant 2.500000e-01 : f32
    %188 = vector.broadcast %cst_49 : f32 to vector<16x16xf32>
    %189 = arith.mulf %187, %188 : vector<16x16xf32>
    %190 = arith.addf %189, %0 : vector<16x16xf32>
    %cst_50 = arith.constant dense<0xFF800000> : vector<16xf32>
    %191 = vector.multi_reduction <maximumf>, %190, %cst_50 [1] : vector<16x16xf32> to vector<16xf32>
    %192 = vector.shape_cast %191 : vector<16xf32> to vector<16x1xf32>
    %193 = vector.broadcast %192 : vector<16x1xf32> to vector<16x16xf32>
    %194 = arith.subf %190, %193 : vector<16x16xf32>
    %195 = math.exp %194 : vector<16x16xf32>
    %cst_51 = arith.constant dense<0.000000e+00> : vector<16xf32>
    %196 = vector.multi_reduction <add>, %195, %cst_51 [1] : vector<16x16xf32> to vector<16xf32>
    %197 = vector.shape_cast %196 : vector<16xf32> to vector<16x1xf32>
    %198 = tpu.reciprocal %197 {approx = true} : vector<16x1xf32> -> vector<16x1xf32>
    %199 = vector.broadcast %198 : vector<16x1xf32> to vector<16x16xf32>
    %200 = arith.mulf %195, %199 : vector<16x16xf32>
    %201 = arith.truncf %200 : vector<16x16xf32> to vector<16x16xbf16>
    %cst_52 = arith.constant dense<0.000000e+00> : vector<16x16xf32>
    %202 = tpu.matmul %201, %186, %cst_52 {dimension_numbers = #tpu.dot_dimension_numbers<[1], [0], [0], [1], [0, 0, 1, 1], [], []>} : vector<16x16xbf16>, vector<16x16xbf16>, vector<16x16xf32> -> vector<16x16xf32>
    %203 = tpu.concatenate %183, %202 in 1 : vector<16x16xf32>, vector<16x16xf32> -> vector<16x32xf32>
    %204 = arith.truncf %203 : vector<16x32xf32> to vector<16x32xbf16>
    %205 = vector.extract_strided_slice %153 {offsets = [0, 96], sizes = [32, 32], strides = [1, 1]} : vector<32x384xbf16> to vector<32x32xbf16>
    %cst_53 = arith.constant dense<0.000000e+00> : vector<16x32xf32>
    %206 = tpu.matmul %204, %205, %cst_53 {dimension_numbers = #tpu.dot_dimension_numbers<[1], [0], [0], [1], [0, 0, 1, 1], [], []>} : vector<16x32xbf16>, vector<32x32xbf16>, vector<16x32xf32> -> vector<16x32xf32>
    %207 = vector.extract_strided_slice %154 {offsets = [0, 96], sizes = [1, 32], strides = [1, 1]} : vector<1x128xf32> to vector<1x32xf32>
    %208 = vector.broadcast %207 : vector<1x32xf32> to vector<16x32xf32>
    %209 = arith.addf %206, %208 : vector<16x32xf32>
    %210 = arith.addf %209, %151 : vector<16x32xf32>
    %211 = vector.extract_strided_slice %155 {offsets = [0, 0], sizes = [1, 32], strides = [1, 1]} : vector<1x128xf32> to vector<1x32xf32>
    %212 = vector.extract_strided_slice %155 {offsets = [0, 32], sizes = [1, 32], strides = [1, 1]} : vector<1x128xf32> to vector<1x32xf32>
    %cst_54 = arith.constant dense<0.000000e+00> : vector<16xf32>
    %213 = vector.multi_reduction <add>, %210, %cst_54 [1] : vector<16x32xf32> to vector<16xf32>
    %214 = vector.shape_cast %213 : vector<16xf32> to vector<16x1xf32>
    %cst_55 = arith.constant 3.200000e+01 : f32
    %215 = vector.broadcast %cst_55 : f32 to vector<16x1xf32>
    %216 = arith.divf %214, %215 : vector<16x1xf32>
    %217 = vector.broadcast %216 : vector<16x1xf32> to vector<16x32xf32>
    %218 = arith.subf %210, %217 : vector<16x32xf32>
    %219 = arith.mulf %218, %218 : vector<16x32xf32>
    %cst_56 = arith.constant dense<0.000000e+00> : vector<16xf32>
    %220 = vector.multi_reduction <add>, %219, %cst_56 [1] : vector<16x32xf32> to vector<16xf32>
    %221 = vector.shape_cast %220 : vector<16xf32> to vector<16x1xf32>
    %cst_57 = arith.constant 3.200000e+01 : f32
    %222 = vector.broadcast %cst_57 : f32 to vector<16x1xf32>
    %223 = arith.divf %221, %222 : vector<16x1xf32>
    %cst_58 = arith.constant 9.99999996E-13 : f32
    %224 = vector.broadcast %cst_58 : f32 to vector<16x1xf32>
    %225 = arith.addf %223, %224 : vector<16x1xf32>
    %226 = math.rsqrt %225 : vector<16x1xf32>
    %227 = vector.broadcast %226 : vector<16x1xf32> to vector<16x32xf32>
    %228 = arith.mulf %218, %227 : vector<16x32xf32>
    %229 = vector.broadcast %211 : vector<1x32xf32> to vector<16x32xf32>
    %230 = arith.mulf %228, %229 : vector<16x32xf32>
    %231 = vector.broadcast %212 : vector<1x32xf32> to vector<16x32xf32>
    %232 = arith.addf %230, %231 : vector<16x32xf32>
    %233 = arith.truncf %232 : vector<16x32xf32> to vector<16x32xbf16>
    %234 = vector.extract_strided_slice %153 {offsets = [0, 128], sizes = [32, 128], strides = [1, 1]} : vector<32x384xbf16> to vector<32x128xbf16>
    %cst_59 = arith.constant dense<0.000000e+00> : vector<16x128xf32>
    %235 = tpu.matmul %233, %234, %cst_59 {dimension_numbers = #tpu.dot_dimension_numbers<[1], [0], [0], [1], [0, 0, 1, 1], [], []>} : vector<16x32xbf16>, vector<32x128xbf16>, vector<16x128xf32> -> vector<16x128xf32>
    %236 = vector.broadcast %156 : vector<1x128xf32> to vector<16x128xf32>
    %237 = arith.addf %235, %236 : vector<16x128xf32>
    %cst_60 = arith.constant 5.000000e-01 : f32
    %238 = vector.broadcast %cst_60 : f32 to vector<16x128xf32>
    %239 = arith.mulf %238, %237 : vector<16x128xf32>
    %240 = arith.mulf %237, %237 : vector<16x128xf32>
    %241 = arith.mulf %240, %237 : vector<16x128xf32>
    %cst_61 = arith.constant 4.471500e-02 : f32
    %242 = vector.broadcast %cst_61 : f32 to vector<16x128xf32>
    %243 = arith.mulf %242, %241 : vector<16x128xf32>
    %244 = arith.addf %237, %243 : vector<16x128xf32>
    %cst_62 = arith.constant 0.797884583 : f32
    %245 = vector.broadcast %cst_62 : f32 to vector<16x128xf32>
    %246 = arith.mulf %245, %244 : vector<16x128xf32>
    %247 = math.tanh %246 : vector<16x128xf32>
    %cst_63 = arith.constant 1.000000e+00 : f32
    %248 = vector.broadcast %cst_63 : f32 to vector<16x128xf32>
    %249 = arith.addf %248, %247 : vector<16x128xf32>
    %250 = arith.mulf %239, %249 : vector<16x128xf32>
    %251 = arith.truncf %250 : vector<16x128xf32> to vector<16x128xbf16>
    %252 = vector.extract_strided_slice %153 {offsets = [0, 256], sizes = [32, 128], strides = [1, 1]} : vector<32x384xbf16> to vector<32x128xbf16>
    %cst_64 = arith.constant dense<0.000000e+00> : vector<16x32xf32>
    %253 = tpu.matmul %251, %252, %cst_64 {dimension_numbers = #tpu.dot_dimension_numbers<[1], [1], [0], [0], [0, 0, 1, 0], [], []>} : vector<16x128xbf16>, vector<32x128xbf16>, vector<16x32xf32> -> vector<16x32xf32>
    %254 = vector.broadcast %157 : vector<1x32xf32> to vector<16x32xf32>
    %255 = arith.addf %253, %254 : vector<16x32xf32>
    %256 = arith.addf %255, %232 : vector<16x32xf32>
    %257 = vector.extract_strided_slice %155 {offsets = [0, 64], sizes = [1, 32], strides = [1, 1]} : vector<1x128xf32> to vector<1x32xf32>
    %258 = vector.extract_strided_slice %155 {offsets = [0, 96], sizes = [1, 32], strides = [1, 1]} : vector<1x128xf32> to vector<1x32xf32>
    %cst_65 = arith.constant dense<0.000000e+00> : vector<16xf32>
    %259 = vector.multi_reduction <add>, %256, %cst_65 [1] : vector<16x32xf32> to vector<16xf32>
    %260 = vector.shape_cast %259 : vector<16xf32> to vector<16x1xf32>
    %cst_66 = arith.constant 3.200000e+01 : f32
    %261 = vector.broadcast %cst_66 : f32 to vector<16x1xf32>
    %262 = arith.divf %260, %261 : vector<16x1xf32>
    %263 = vector.broadcast %262 : vector<16x1xf32> to vector<16x32xf32>
    %264 = arith.subf %256, %263 : vector<16x32xf32>
    %265 = arith.mulf %264, %264 : vector<16x32xf32>
    %cst_67 = arith.constant dense<0.000000e+00> : vector<16xf32>
    %266 = vector.multi_reduction <add>, %265, %cst_67 [1] : vector<16x32xf32> to vector<16xf32>
    %267 = vector.shape_cast %266 : vector<16xf32> to vector<16x1xf32>
    %cst_68 = arith.constant 3.200000e+01 : f32
    %268 = vector.broadcast %cst_68 : f32 to vector<16x1xf32>
    %269 = arith.divf %267, %268 : vector<16x1xf32>
    %cst_69 = arith.constant 9.99999996E-13 : f32
    %270 = vector.broadcast %cst_69 : f32 to vector<16x1xf32>
    %271 = arith.addf %269, %270 : vector<16x1xf32>
    %272 = math.rsqrt %271 : vector<16x1xf32>
    %273 = vector.broadcast %272 : vector<16x1xf32> to vector<16x32xf32>
    %274 = arith.mulf %264, %273 : vector<16x32xf32>
    %275 = vector.broadcast %257 : vector<1x32xf32> to vector<16x32xf32>
    %276 = arith.mulf %274, %275 : vector<16x32xf32>
    %277 = vector.broadcast %258 : vector<1x32xf32> to vector<16x32xf32>
    %278 = arith.addf %276, %277 : vector<16x32xf32>
    %c2 = arith.constant 2 : index
    %c0_70 = arith.constant 0 : index
    %c0_71 = arith.constant 0 : index
    %279 = vector.load %arg2[%c2, %c0_70, %c0_71] : memref<6x32x384xbf16, #tpu.memory_space<vmem>>, vector<1x32x384xbf16>
    %280 = vector.shape_cast %279 : vector<1x32x384xbf16> to vector<32x384xbf16>
    %281 = vector.extract_strided_slice %1 {offsets = [9, 0], sizes = [1, 128], strides = [1, 1]} : vector<32x128xf32> to vector<1x128xf32>
    %282 = vector.extract_strided_slice %1 {offsets = [10, 0], sizes = [1, 128], strides = [1, 1]} : vector<32x128xf32> to vector<1x128xf32>
    %283 = vector.extract_strided_slice %1 {offsets = [11, 0], sizes = [1, 128], strides = [1, 1]} : vector<32x128xf32> to vector<1x128xf32>
    %284 = vector.extract_strided_slice %1 {offsets = [12, 0], sizes = [1, 32], strides = [1, 1]} : vector<32x128xf32> to vector<1x32xf32>
    %285 = arith.truncf %24 : vector<16x32xf32> to vector<16x32xbf16>
    %286 = vector.extract_strided_slice %280 {offsets = [0, 0], sizes = [32, 96], strides = [1, 1]} : vector<32x384xbf16> to vector<32x96xbf16>
    %cst_72 = arith.constant dense<0.000000e+00> : vector<16x96xf32>
    %287 = tpu.matmul %285, %286, %cst_72 {dimension_numbers = #tpu.dot_dimension_numbers<[1], [0], [0], [1], [0, 0, 1, 1], [], []>} : vector<16x32xbf16>, vector<32x96xbf16>, vector<16x96xf32> -> vector<16x96xf32>
    %288 = vector.extract_strided_slice %281 {offsets = [0, 0], sizes = [1, 96], strides = [1, 1]} : vector<1x128xf32> to vector<1x96xf32>
    %289 = vector.broadcast %288 : vector<1x96xf32> to vector<16x96xf32>
    %290 = arith.addf %287, %289 : vector<16x96xf32>
    %291 = arith.truncf %290 : vector<16x96xf32> to vector<16x96xbf16>
    %292 = vector.extract_strided_slice %291 {offsets = [0, 0], sizes = [16, 16], strides = [1, 1]} : vector<16x96xbf16> to vector<16x16xbf16>
    %293 = vector.extract_strided_slice %291 {offsets = [0, 32], sizes = [16, 16], strides = [1, 1]} : vector<16x96xbf16> to vector<16x16xbf16>
    %294 = vector.extract_strided_slice %291 {offsets = [0, 64], sizes = [16, 16], strides = [1, 1]} : vector<16x96xbf16> to vector<16x16xbf16>
    %cst_73 = arith.constant dense<0.000000e+00> : vector<16x16xf32>
    %295 = tpu.matmul %292, %293, %cst_73 {dimension_numbers = #tpu.dot_dimension_numbers<[1], [1], [0], [0], [0, 0, 1, 0], [], []>} : vector<16x16xbf16>, vector<16x16xbf16>, vector<16x16xf32> -> vector<16x16xf32>
    %cst_74 = arith.constant 2.500000e-01 : f32
    %296 = vector.broadcast %cst_74 : f32 to vector<16x16xf32>
    %297 = arith.mulf %295, %296 : vector<16x16xf32>
    %298 = arith.addf %297, %0 : vector<16x16xf32>
    %cst_75 = arith.constant dense<0xFF800000> : vector<16xf32>
    %299 = vector.multi_reduction <maximumf>, %298, %cst_75 [1] : vector<16x16xf32> to vector<16xf32>
    %300 = vector.shape_cast %299 : vector<16xf32> to vector<16x1xf32>
    %301 = vector.broadcast %300 : vector<16x1xf32> to vector<16x16xf32>
    %302 = arith.subf %298, %301 : vector<16x16xf32>
    %303 = math.exp %302 : vector<16x16xf32>
    %cst_76 = arith.constant dense<0.000000e+00> : vector<16xf32>
    %304 = vector.multi_reduction <add>, %303, %cst_76 [1] : vector<16x16xf32> to vector<16xf32>
    %305 = vector.shape_cast %304 : vector<16xf32> to vector<16x1xf32>
    %306 = tpu.reciprocal %305 {approx = true} : vector<16x1xf32> -> vector<16x1xf32>
    %307 = vector.broadcast %306 : vector<16x1xf32> to vector<16x16xf32>
    %308 = arith.mulf %303, %307 : vector<16x16xf32>
    %309 = arith.truncf %308 : vector<16x16xf32> to vector<16x16xbf16>
    %cst_77 = arith.constant dense<0.000000e+00> : vector<16x16xf32>
    %310 = tpu.matmul %309, %294, %cst_77 {dimension_numbers = #tpu.dot_dimension_numbers<[1], [0], [0], [1], [0, 0, 1, 1], [], []>} : vector<16x16xbf16>, vector<16x16xbf16>, vector<16x16xf32> -> vector<16x16xf32>
    %311 = vector.extract_strided_slice %291 {offsets = [0, 16], sizes = [16, 16], strides = [1, 1]} : vector<16x96xbf16> to vector<16x16xbf16>
    %312 = vector.extract_strided_slice %291 {offsets = [0, 48], sizes = [16, 16], strides = [1, 1]} : vector<16x96xbf16> to vector<16x16xbf16>
    %313 = vector.extract_strided_slice %291 {offsets = [0, 80], sizes = [16, 16], strides = [1, 1]} : vector<16x96xbf16> to vector<16x16xbf16>
    %cst_78 = arith.constant dense<0.000000e+00> : vector<16x16xf32>
    %314 = tpu.matmul %311, %312, %cst_78 {dimension_numbers = #tpu.dot_dimension_numbers<[1], [1], [0], [0], [0, 0, 1, 0], [], []>} : vector<16x16xbf16>, vector<16x16xbf16>, vector<16x16xf32> -> vector<16x16xf32>
    %cst_79 = arith.constant 2.500000e-01 : f32
    %315 = vector.broadcast %cst_79 : f32 to vector<16x16xf32>
    %316 = arith.mulf %314, %315 : vector<16x16xf32>
    %317 = arith.addf %316, %0 : vector<16x16xf32>
    %cst_80 = arith.constant dense<0xFF800000> : vector<16xf32>
    %318 = vector.multi_reduction <maximumf>, %317, %cst_80 [1] : vector<16x16xf32> to vector<16xf32>
    %319 = vector.shape_cast %318 : vector<16xf32> to vector<16x1xf32>
    %320 = vector.broadcast %319 : vector<16x1xf32> to vector<16x16xf32>
    %321 = arith.subf %317, %320 : vector<16x16xf32>
    %322 = math.exp %321 : vector<16x16xf32>
    %cst_81 = arith.constant dense<0.000000e+00> : vector<16xf32>
    %323 = vector.multi_reduction <add>, %322, %cst_81 [1] : vector<16x16xf32> to vector<16xf32>
    %324 = vector.shape_cast %323 : vector<16xf32> to vector<16x1xf32>
    %325 = tpu.reciprocal %324 {approx = true} : vector<16x1xf32> -> vector<16x1xf32>
    %326 = vector.broadcast %325 : vector<16x1xf32> to vector<16x16xf32>
    %327 = arith.mulf %322, %326 : vector<16x16xf32>
    %328 = arith.truncf %327 : vector<16x16xf32> to vector<16x16xbf16>
    %cst_82 = arith.constant dense<0.000000e+00> : vector<16x16xf32>
    %329 = tpu.matmul %328, %313, %cst_82 {dimension_numbers = #tpu.dot_dimension_numbers<[1], [0], [0], [1], [0, 0, 1, 1], [], []>} : vector<16x16xbf16>, vector<16x16xbf16>, vector<16x16xf32> -> vector<16x16xf32>
    %330 = tpu.concatenate %310, %329 in 1 : vector<16x16xf32>, vector<16x16xf32> -> vector<16x32xf32>
    %331 = arith.truncf %330 : vector<16x32xf32> to vector<16x32xbf16>
    %332 = vector.extract_strided_slice %280 {offsets = [0, 96], sizes = [32, 32], strides = [1, 1]} : vector<32x384xbf16> to vector<32x32xbf16>
    %cst_83 = arith.constant dense<0.000000e+00> : vector<16x32xf32>
    %333 = tpu.matmul %331, %332, %cst_83 {dimension_numbers = #tpu.dot_dimension_numbers<[1], [0], [0], [1], [0, 0, 1, 1], [], []>} : vector<16x32xbf16>, vector<32x32xbf16>, vector<16x32xf32> -> vector<16x32xf32>
    %334 = vector.extract_strided_slice %281 {offsets = [0, 96], sizes = [1, 32], strides = [1, 1]} : vector<1x128xf32> to vector<1x32xf32>
    %335 = vector.broadcast %334 : vector<1x32xf32> to vector<16x32xf32>
    %336 = arith.addf %333, %335 : vector<16x32xf32>
    %337 = arith.addf %336, %24 : vector<16x32xf32>
    %338 = vector.extract_strided_slice %282 {offsets = [0, 0], sizes = [1, 32], strides = [1, 1]} : vector<1x128xf32> to vector<1x32xf32>
    %339 = vector.extract_strided_slice %282 {offsets = [0, 32], sizes = [1, 32], strides = [1, 1]} : vector<1x128xf32> to vector<1x32xf32>
    %cst_84 = arith.constant dense<0.000000e+00> : vector<16xf32>
    %340 = vector.multi_reduction <add>, %337, %cst_84 [1] : vector<16x32xf32> to vector<16xf32>
    %341 = vector.shape_cast %340 : vector<16xf32> to vector<16x1xf32>
    %cst_85 = arith.constant 3.200000e+01 : f32
    %342 = vector.broadcast %cst_85 : f32 to vector<16x1xf32>
    %343 = arith.divf %341, %342 : vector<16x1xf32>
    %344 = vector.broadcast %343 : vector<16x1xf32> to vector<16x32xf32>
    %345 = arith.subf %337, %344 : vector<16x32xf32>
    %346 = arith.mulf %345, %345 : vector<16x32xf32>
    %cst_86 = arith.constant dense<0.000000e+00> : vector<16xf32>
    %347 = vector.multi_reduction <add>, %346, %cst_86 [1] : vector<16x32xf32> to vector<16xf32>
    %348 = vector.shape_cast %347 : vector<16xf32> to vector<16x1xf32>
    %cst_87 = arith.constant 3.200000e+01 : f32
    %349 = vector.broadcast %cst_87 : f32 to vector<16x1xf32>
    %350 = arith.divf %348, %349 : vector<16x1xf32>
    %cst_88 = arith.constant 9.99999996E-13 : f32
    %351 = vector.broadcast %cst_88 : f32 to vector<16x1xf32>
    %352 = arith.addf %350, %351 : vector<16x1xf32>
    %353 = math.rsqrt %352 : vector<16x1xf32>
    %354 = vector.broadcast %353 : vector<16x1xf32> to vector<16x32xf32>
    %355 = arith.mulf %345, %354 : vector<16x32xf32>
    %356 = vector.broadcast %338 : vector<1x32xf32> to vector<16x32xf32>
    %357 = arith.mulf %355, %356 : vector<16x32xf32>
    %358 = vector.broadcast %339 : vector<1x32xf32> to vector<16x32xf32>
    %359 = arith.addf %357, %358 : vector<16x32xf32>
    %360 = arith.truncf %359 : vector<16x32xf32> to vector<16x32xbf16>
    %361 = vector.extract_strided_slice %280 {offsets = [0, 128], sizes = [32, 128], strides = [1, 1]} : vector<32x384xbf16> to vector<32x128xbf16>
    %cst_89 = arith.constant dense<0.000000e+00> : vector<16x128xf32>
    %362 = tpu.matmul %360, %361, %cst_89 {dimension_numbers = #tpu.dot_dimension_numbers<[1], [0], [0], [1], [0, 0, 1, 1], [], []>} : vector<16x32xbf16>, vector<32x128xbf16>, vector<16x128xf32> -> vector<16x128xf32>
    %363 = vector.broadcast %283 : vector<1x128xf32> to vector<16x128xf32>
    %364 = arith.addf %362, %363 : vector<16x128xf32>
    %cst_90 = arith.constant 5.000000e-01 : f32
    %365 = vector.broadcast %cst_90 : f32 to vector<16x128xf32>
    %366 = arith.mulf %365, %364 : vector<16x128xf32>
    %367 = arith.mulf %364, %364 : vector<16x128xf32>
    %368 = arith.mulf %367, %364 : vector<16x128xf32>
    %cst_91 = arith.constant 4.471500e-02 : f32
    %369 = vector.broadcast %cst_91 : f32 to vector<16x128xf32>
    %370 = arith.mulf %369, %368 : vector<16x128xf32>
    %371 = arith.addf %364, %370 : vector<16x128xf32>
    %cst_92 = arith.constant 0.797884583 : f32
    %372 = vector.broadcast %cst_92 : f32 to vector<16x128xf32>
    %373 = arith.mulf %372, %371 : vector<16x128xf32>
    %374 = math.tanh %373 : vector<16x128xf32>
    %cst_93 = arith.constant 1.000000e+00 : f32
    %375 = vector.broadcast %cst_93 : f32 to vector<16x128xf32>
    %376 = arith.addf %375, %374 : vector<16x128xf32>
    %377 = arith.mulf %366, %376 : vector<16x128xf32>
    %378 = arith.truncf %377 : vector<16x128xf32> to vector<16x128xbf16>
    %379 = vector.extract_strided_slice %280 {offsets = [0, 256], sizes = [32, 128], strides = [1, 1]} : vector<32x384xbf16> to vector<32x128xbf16>
    %cst_94 = arith.constant dense<0.000000e+00> : vector<16x32xf32>
    %380 = tpu.matmul %378, %379, %cst_94 {dimension_numbers = #tpu.dot_dimension_numbers<[1], [1], [0], [0], [0, 0, 1, 0], [], []>} : vector<16x128xbf16>, vector<32x128xbf16>, vector<16x32xf32> -> vector<16x32xf32>
    %381 = vector.broadcast %284 : vector<1x32xf32> to vector<16x32xf32>
    %382 = arith.addf %380, %381 : vector<16x32xf32>
    %383 = arith.addf %382, %359 : vector<16x32xf32>
    %384 = vector.extract_strided_slice %282 {offsets = [0, 64], sizes = [1, 32], strides = [1, 1]} : vector<1x128xf32> to vector<1x32xf32>
    %385 = vector.extract_strided_slice %282 {offsets = [0, 96], sizes = [1, 32], strides = [1, 1]} : vector<1x128xf32> to vector<1x32xf32>
    %cst_95 = arith.constant dense<0.000000e+00> : vector<16xf32>
    %386 = vector.multi_reduction <add>, %383, %cst_95 [1] : vector<16x32xf32> to vector<16xf32>
    %387 = vector.shape_cast %386 : vector<16xf32> to vector<16x1xf32>
    %cst_96 = arith.constant 3.200000e+01 : f32
    %388 = vector.broadcast %cst_96 : f32 to vector<16x1xf32>
    %389 = arith.divf %387, %388 : vector<16x1xf32>
    %390 = vector.broadcast %389 : vector<16x1xf32> to vector<16x32xf32>
    %391 = arith.subf %383, %390 : vector<16x32xf32>
    %392 = arith.mulf %391, %391 : vector<16x32xf32>
    %cst_97 = arith.constant dense<0.000000e+00> : vector<16xf32>
    %393 = vector.multi_reduction <add>, %392, %cst_97 [1] : vector<16x32xf32> to vector<16xf32>
    %394 = vector.shape_cast %393 : vector<16xf32> to vector<16x1xf32>
    %cst_98 = arith.constant 3.200000e+01 : f32
    %395 = vector.broadcast %cst_98 : f32 to vector<16x1xf32>
    %396 = arith.divf %394, %395 : vector<16x1xf32>
    %cst_99 = arith.constant 9.99999996E-13 : f32
    %397 = vector.broadcast %cst_99 : f32 to vector<16x1xf32>
    %398 = arith.addf %396, %397 : vector<16x1xf32>
    %399 = math.rsqrt %398 : vector<16x1xf32>
    %400 = vector.broadcast %399 : vector<16x1xf32> to vector<16x32xf32>
    %401 = arith.mulf %391, %400 : vector<16x32xf32>
    %402 = vector.broadcast %384 : vector<1x32xf32> to vector<16x32xf32>
    %403 = arith.mulf %401, %402 : vector<16x32xf32>
    %404 = vector.broadcast %385 : vector<1x32xf32> to vector<16x32xf32>
    %405 = arith.addf %403, %404 : vector<16x32xf32>
    %c3 = arith.constant 3 : index
    %c0_100 = arith.constant 0 : index
    %c0_101 = arith.constant 0 : index
    %406 = vector.load %arg2[%c3, %c0_100, %c0_101] : memref<6x32x384xbf16, #tpu.memory_space<vmem>>, vector<1x32x384xbf16>
    %407 = vector.shape_cast %406 : vector<1x32x384xbf16> to vector<32x384xbf16>
    %408 = vector.extract_strided_slice %1 {offsets = [13, 0], sizes = [1, 128], strides = [1, 1]} : vector<32x128xf32> to vector<1x128xf32>
    %409 = vector.extract_strided_slice %1 {offsets = [14, 0], sizes = [1, 128], strides = [1, 1]} : vector<32x128xf32> to vector<1x128xf32>
    %410 = vector.extract_strided_slice %1 {offsets = [15, 0], sizes = [1, 128], strides = [1, 1]} : vector<32x128xf32> to vector<1x128xf32>
    %411 = vector.extract_strided_slice %1 {offsets = [16, 0], sizes = [1, 32], strides = [1, 1]} : vector<32x128xf32> to vector<1x32xf32>
    %412 = arith.truncf %405 : vector<16x32xf32> to vector<16x32xbf16>
    %413 = vector.extract_strided_slice %407 {offsets = [0, 0], sizes = [32, 96], strides = [1, 1]} : vector<32x384xbf16> to vector<32x96xbf16>
    %cst_102 = arith.constant dense<0.000000e+00> : vector<16x96xf32>
    %414 = tpu.matmul %412, %413, %cst_102 {dimension_numbers = #tpu.dot_dimension_numbers<[1], [0], [0], [1], [0, 0, 1, 1], [], []>} : vector<16x32xbf16>, vector<32x96xbf16>, vector<16x96xf32> -> vector<16x96xf32>
    %415 = vector.extract_strided_slice %408 {offsets = [0, 0], sizes = [1, 96], strides = [1, 1]} : vector<1x128xf32> to vector<1x96xf32>
    %416 = vector.broadcast %415 : vector<1x96xf32> to vector<16x96xf32>
    %417 = arith.addf %414, %416 : vector<16x96xf32>
    %418 = arith.truncf %417 : vector<16x96xf32> to vector<16x96xbf16>
    %419 = vector.extract_strided_slice %418 {offsets = [0, 0], sizes = [16, 16], strides = [1, 1]} : vector<16x96xbf16> to vector<16x16xbf16>
    %420 = vector.extract_strided_slice %418 {offsets = [0, 32], sizes = [16, 16], strides = [1, 1]} : vector<16x96xbf16> to vector<16x16xbf16>
    %421 = vector.extract_strided_slice %418 {offsets = [0, 64], sizes = [16, 16], strides = [1, 1]} : vector<16x96xbf16> to vector<16x16xbf16>
    %cst_103 = arith.constant dense<0.000000e+00> : vector<16x16xf32>
    %422 = tpu.matmul %419, %420, %cst_103 {dimension_numbers = #tpu.dot_dimension_numbers<[1], [1], [0], [0], [0, 0, 1, 0], [], []>} : vector<16x16xbf16>, vector<16x16xbf16>, vector<16x16xf32> -> vector<16x16xf32>
    %cst_104 = arith.constant 2.500000e-01 : f32
    %423 = vector.broadcast %cst_104 : f32 to vector<16x16xf32>
    %424 = arith.mulf %422, %423 : vector<16x16xf32>
    %425 = arith.addf %424, %0 : vector<16x16xf32>
    %cst_105 = arith.constant dense<0xFF800000> : vector<16xf32>
    %426 = vector.multi_reduction <maximumf>, %425, %cst_105 [1] : vector<16x16xf32> to vector<16xf32>
    %427 = vector.shape_cast %426 : vector<16xf32> to vector<16x1xf32>
    %428 = vector.broadcast %427 : vector<16x1xf32> to vector<16x16xf32>
    %429 = arith.subf %425, %428 : vector<16x16xf32>
    %430 = math.exp %429 : vector<16x16xf32>
    %cst_106 = arith.constant dense<0.000000e+00> : vector<16xf32>
    %431 = vector.multi_reduction <add>, %430, %cst_106 [1] : vector<16x16xf32> to vector<16xf32>
    %432 = vector.shape_cast %431 : vector<16xf32> to vector<16x1xf32>
    %433 = tpu.reciprocal %432 {approx = true} : vector<16x1xf32> -> vector<16x1xf32>
    %434 = vector.broadcast %433 : vector<16x1xf32> to vector<16x16xf32>
    %435 = arith.mulf %430, %434 : vector<16x16xf32>
    %436 = arith.truncf %435 : vector<16x16xf32> to vector<16x16xbf16>
    %cst_107 = arith.constant dense<0.000000e+00> : vector<16x16xf32>
    %437 = tpu.matmul %436, %421, %cst_107 {dimension_numbers = #tpu.dot_dimension_numbers<[1], [0], [0], [1], [0, 0, 1, 1], [], []>} : vector<16x16xbf16>, vector<16x16xbf16>, vector<16x16xf32> -> vector<16x16xf32>
    %438 = vector.extract_strided_slice %418 {offsets = [0, 16], sizes = [16, 16], strides = [1, 1]} : vector<16x96xbf16> to vector<16x16xbf16>
    %439 = vector.extract_strided_slice %418 {offsets = [0, 48], sizes = [16, 16], strides = [1, 1]} : vector<16x96xbf16> to vector<16x16xbf16>
    %440 = vector.extract_strided_slice %418 {offsets = [0, 80], sizes = [16, 16], strides = [1, 1]} : vector<16x96xbf16> to vector<16x16xbf16>
    %cst_108 = arith.constant dense<0.000000e+00> : vector<16x16xf32>
    %441 = tpu.matmul %438, %439, %cst_108 {dimension_numbers = #tpu.dot_dimension_numbers<[1], [1], [0], [0], [0, 0, 1, 0], [], []>} : vector<16x16xbf16>, vector<16x16xbf16>, vector<16x16xf32> -> vector<16x16xf32>
    %cst_109 = arith.constant 2.500000e-01 : f32
    %442 = vector.broadcast %cst_109 : f32 to vector<16x16xf32>
    %443 = arith.mulf %441, %442 : vector<16x16xf32>
    %444 = arith.addf %443, %0 : vector<16x16xf32>
    %cst_110 = arith.constant dense<0xFF800000> : vector<16xf32>
    %445 = vector.multi_reduction <maximumf>, %444, %cst_110 [1] : vector<16x16xf32> to vector<16xf32>
    %446 = vector.shape_cast %445 : vector<16xf32> to vector<16x1xf32>
    %447 = vector.broadcast %446 : vector<16x1xf32> to vector<16x16xf32>
    %448 = arith.subf %444, %447 : vector<16x16xf32>
    %449 = math.exp %448 : vector<16x16xf32>
    %cst_111 = arith.constant dense<0.000000e+00> : vector<16xf32>
    %450 = vector.multi_reduction <add>, %449, %cst_111 [1] : vector<16x16xf32> to vector<16xf32>
    %451 = vector.shape_cast %450 : vector<16xf32> to vector<16x1xf32>
    %452 = tpu.reciprocal %451 {approx = true} : vector<16x1xf32> -> vector<16x1xf32>
    %453 = vector.broadcast %452 : vector<16x1xf32> to vector<16x16xf32>
    %454 = arith.mulf %449, %453 : vector<16x16xf32>
    %455 = arith.truncf %454 : vector<16x16xf32> to vector<16x16xbf16>
    %cst_112 = arith.constant dense<0.000000e+00> : vector<16x16xf32>
    %456 = tpu.matmul %455, %440, %cst_112 {dimension_numbers = #tpu.dot_dimension_numbers<[1], [0], [0], [1], [0, 0, 1, 1], [], []>} : vector<16x16xbf16>, vector<16x16xbf16>, vector<16x16xf32> -> vector<16x16xf32>
    %457 = tpu.concatenate %437, %456 in 1 : vector<16x16xf32>, vector<16x16xf32> -> vector<16x32xf32>
    %458 = arith.truncf %457 : vector<16x32xf32> to vector<16x32xbf16>
    %459 = vector.extract_strided_slice %407 {offsets = [0, 96], sizes = [32, 32], strides = [1, 1]} : vector<32x384xbf16> to vector<32x32xbf16>
    %cst_113 = arith.constant dense<0.000000e+00> : vector<16x32xf32>
    %460 = tpu.matmul %458, %459, %cst_113 {dimension_numbers = #tpu.dot_dimension_numbers<[1], [0], [0], [1], [0, 0, 1, 1], [], []>} : vector<16x32xbf16>, vector<32x32xbf16>, vector<16x32xf32> -> vector<16x32xf32>
    %461 = vector.extract_strided_slice %408 {offsets = [0, 96], sizes = [1, 32], strides = [1, 1]} : vector<1x128xf32> to vector<1x32xf32>
    %462 = vector.broadcast %461 : vector<1x32xf32> to vector<16x32xf32>
    %463 = arith.addf %460, %462 : vector<16x32xf32>
    %464 = arith.addf %463, %405 : vector<16x32xf32>
    %465 = vector.extract_strided_slice %409 {offsets = [0, 0], sizes = [1, 32], strides = [1, 1]} : vector<1x128xf32> to vector<1x32xf32>
    %466 = vector.extract_strided_slice %409 {offsets = [0, 32], sizes = [1, 32], strides = [1, 1]} : vector<1x128xf32> to vector<1x32xf32>
    %cst_114 = arith.constant dense<0.000000e+00> : vector<16xf32>
    %467 = vector.multi_reduction <add>, %464, %cst_114 [1] : vector<16x32xf32> to vector<16xf32>
    %468 = vector.shape_cast %467 : vector<16xf32> to vector<16x1xf32>
    %cst_115 = arith.constant 3.200000e+01 : f32
    %469 = vector.broadcast %cst_115 : f32 to vector<16x1xf32>
    %470 = arith.divf %468, %469 : vector<16x1xf32>
    %471 = vector.broadcast %470 : vector<16x1xf32> to vector<16x32xf32>
    %472 = arith.subf %464, %471 : vector<16x32xf32>
    %473 = arith.mulf %472, %472 : vector<16x32xf32>
    %cst_116 = arith.constant dense<0.000000e+00> : vector<16xf32>
    %474 = vector.multi_reduction <add>, %473, %cst_116 [1] : vector<16x32xf32> to vector<16xf32>
    %475 = vector.shape_cast %474 : vector<16xf32> to vector<16x1xf32>
    %cst_117 = arith.constant 3.200000e+01 : f32
    %476 = vector.broadcast %cst_117 : f32 to vector<16x1xf32>
    %477 = arith.divf %475, %476 : vector<16x1xf32>
    %cst_118 = arith.constant 9.99999996E-13 : f32
    %478 = vector.broadcast %cst_118 : f32 to vector<16x1xf32>
    %479 = arith.addf %477, %478 : vector<16x1xf32>
    %480 = math.rsqrt %479 : vector<16x1xf32>
    %481 = vector.broadcast %480 : vector<16x1xf32> to vector<16x32xf32>
    %482 = arith.mulf %472, %481 : vector<16x32xf32>
    %483 = vector.broadcast %465 : vector<1x32xf32> to vector<16x32xf32>
    %484 = arith.mulf %482, %483 : vector<16x32xf32>
    %485 = vector.broadcast %466 : vector<1x32xf32> to vector<16x32xf32>
    %486 = arith.addf %484, %485 : vector<16x32xf32>
    %487 = arith.truncf %486 : vector<16x32xf32> to vector<16x32xbf16>
    %488 = vector.extract_strided_slice %407 {offsets = [0, 128], sizes = [32, 128], strides = [1, 1]} : vector<32x384xbf16> to vector<32x128xbf16>
    %cst_119 = arith.constant dense<0.000000e+00> : vector<16x128xf32>
    %489 = tpu.matmul %487, %488, %cst_119 {dimension_numbers = #tpu.dot_dimension_numbers<[1], [0], [0], [1], [0, 0, 1, 1], [], []>} : vector<16x32xbf16>, vector<32x128xbf16>, vector<16x128xf32> -> vector<16x128xf32>
    %490 = vector.broadcast %410 : vector<1x128xf32> to vector<16x128xf32>
    %491 = arith.addf %489, %490 : vector<16x128xf32>
    %cst_120 = arith.constant 5.000000e-01 : f32
    %492 = vector.broadcast %cst_120 : f32 to vector<16x128xf32>
    %493 = arith.mulf %492, %491 : vector<16x128xf32>
    %494 = arith.mulf %491, %491 : vector<16x128xf32>
    %495 = arith.mulf %494, %491 : vector<16x128xf32>
    %cst_121 = arith.constant 4.471500e-02 : f32
    %496 = vector.broadcast %cst_121 : f32 to vector<16x128xf32>
    %497 = arith.mulf %496, %495 : vector<16x128xf32>
    %498 = arith.addf %491, %497 : vector<16x128xf32>
    %cst_122 = arith.constant 0.797884583 : f32
    %499 = vector.broadcast %cst_122 : f32 to vector<16x128xf32>
    %500 = arith.mulf %499, %498 : vector<16x128xf32>
    %501 = math.tanh %500 : vector<16x128xf32>
    %cst_123 = arith.constant 1.000000e+00 : f32
    %502 = vector.broadcast %cst_123 : f32 to vector<16x128xf32>
    %503 = arith.addf %502, %501 : vector<16x128xf32>
    %504 = arith.mulf %493, %503 : vector<16x128xf32>
    %505 = arith.truncf %504 : vector<16x128xf32> to vector<16x128xbf16>
    %506 = vector.extract_strided_slice %407 {offsets = [0, 256], sizes = [32, 128], strides = [1, 1]} : vector<32x384xbf16> to vector<32x128xbf16>
    %cst_124 = arith.constant dense<0.000000e+00> : vector<16x32xf32>
    %507 = tpu.matmul %505, %506, %cst_124 {dimension_numbers = #tpu.dot_dimension_numbers<[1], [1], [0], [0], [0, 0, 1, 0], [], []>} : vector<16x128xbf16>, vector<32x128xbf16>, vector<16x32xf32> -> vector<16x32xf32>
    %508 = vector.broadcast %411 : vector<1x32xf32> to vector<16x32xf32>
    %509 = arith.addf %507, %508 : vector<16x32xf32>
    %510 = arith.addf %509, %486 : vector<16x32xf32>
    %511 = vector.extract_strided_slice %409 {offsets = [0, 64], sizes = [1, 32], strides = [1, 1]} : vector<1x128xf32> to vector<1x32xf32>
    %512 = vector.extract_strided_slice %409 {offsets = [0, 96], sizes = [1, 32], strides = [1, 1]} : vector<1x128xf32> to vector<1x32xf32>
    %cst_125 = arith.constant dense<0.000000e+00> : vector<16xf32>
    %513 = vector.multi_reduction <add>, %510, %cst_125 [1] : vector<16x32xf32> to vector<16xf32>
    %514 = vector.shape_cast %513 : vector<16xf32> to vector<16x1xf32>
    %cst_126 = arith.constant 3.200000e+01 : f32
    %515 = vector.broadcast %cst_126 : f32 to vector<16x1xf32>
    %516 = arith.divf %514, %515 : vector<16x1xf32>
    %517 = vector.broadcast %516 : vector<16x1xf32> to vector<16x32xf32>
    %518 = arith.subf %510, %517 : vector<16x32xf32>
    %519 = arith.mulf %518, %518 : vector<16x32xf32>
    %cst_127 = arith.constant dense<0.000000e+00> : vector<16xf32>
    %520 = vector.multi_reduction <add>, %519, %cst_127 [1] : vector<16x32xf32> to vector<16xf32>
    %521 = vector.shape_cast %520 : vector<16xf32> to vector<16x1xf32>
    %cst_128 = arith.constant 3.200000e+01 : f32
    %522 = vector.broadcast %cst_128 : f32 to vector<16x1xf32>
    %523 = arith.divf %521, %522 : vector<16x1xf32>
    %cst_129 = arith.constant 9.99999996E-13 : f32
    %524 = vector.broadcast %cst_129 : f32 to vector<16x1xf32>
    %525 = arith.addf %523, %524 : vector<16x1xf32>
    %526 = math.rsqrt %525 : vector<16x1xf32>
    %527 = vector.broadcast %526 : vector<16x1xf32> to vector<16x32xf32>
    %528 = arith.mulf %518, %527 : vector<16x32xf32>
    %529 = vector.broadcast %511 : vector<1x32xf32> to vector<16x32xf32>
    %530 = arith.mulf %528, %529 : vector<16x32xf32>
    %531 = vector.broadcast %512 : vector<1x32xf32> to vector<16x32xf32>
    %532 = arith.addf %530, %531 : vector<16x32xf32>
    %cst_130 = arith.constant 5.000000e-01 : f32
    %533 = vector.broadcast %cst_130 : f32 to vector<16x32xf32>
    %534 = arith.mulf %533, %532 : vector<16x32xf32>
    %535 = math.exp %534 : vector<16x32xf32>
    %536 = arith.addf %278, %535 : vector<16x32xf32>
    %c4 = arith.constant 4 : index
    %c0_131 = arith.constant 0 : index
    %c0_132 = arith.constant 0 : index
    %537 = vector.load %arg2[%c4, %c0_131, %c0_132] : memref<6x32x384xbf16, #tpu.memory_space<vmem>>, vector<1x32x384xbf16>
    %538 = vector.shape_cast %537 : vector<1x32x384xbf16> to vector<32x384xbf16>
    %539 = vector.extract_strided_slice %1 {offsets = [17, 0], sizes = [1, 128], strides = [1, 1]} : vector<32x128xf32> to vector<1x128xf32>
    %540 = vector.extract_strided_slice %1 {offsets = [18, 0], sizes = [1, 128], strides = [1, 1]} : vector<32x128xf32> to vector<1x128xf32>
    %541 = vector.extract_strided_slice %1 {offsets = [19, 0], sizes = [1, 128], strides = [1, 1]} : vector<32x128xf32> to vector<1x128xf32>
    %542 = vector.extract_strided_slice %1 {offsets = [20, 0], sizes = [1, 32], strides = [1, 1]} : vector<32x128xf32> to vector<1x32xf32>
    %543 = arith.truncf %536 : vector<16x32xf32> to vector<16x32xbf16>
    %544 = vector.extract_strided_slice %538 {offsets = [0, 0], sizes = [32, 96], strides = [1, 1]} : vector<32x384xbf16> to vector<32x96xbf16>
    %cst_133 = arith.constant dense<0.000000e+00> : vector<16x96xf32>
    %545 = tpu.matmul %543, %544, %cst_133 {dimension_numbers = #tpu.dot_dimension_numbers<[1], [0], [0], [1], [0, 0, 1, 1], [], []>} : vector<16x32xbf16>, vector<32x96xbf16>, vector<16x96xf32> -> vector<16x96xf32>
    %546 = vector.extract_strided_slice %539 {offsets = [0, 0], sizes = [1, 96], strides = [1, 1]} : vector<1x128xf32> to vector<1x96xf32>
    %547 = vector.broadcast %546 : vector<1x96xf32> to vector<16x96xf32>
    %548 = arith.addf %545, %547 : vector<16x96xf32>
    %549 = arith.truncf %548 : vector<16x96xf32> to vector<16x96xbf16>
    %550 = vector.extract_strided_slice %549 {offsets = [0, 0], sizes = [16, 16], strides = [1, 1]} : vector<16x96xbf16> to vector<16x16xbf16>
    %551 = vector.extract_strided_slice %549 {offsets = [0, 32], sizes = [16, 16], strides = [1, 1]} : vector<16x96xbf16> to vector<16x16xbf16>
    %552 = vector.extract_strided_slice %549 {offsets = [0, 64], sizes = [16, 16], strides = [1, 1]} : vector<16x96xbf16> to vector<16x16xbf16>
    %cst_134 = arith.constant dense<0.000000e+00> : vector<16x16xf32>
    %553 = tpu.matmul %550, %551, %cst_134 {dimension_numbers = #tpu.dot_dimension_numbers<[1], [1], [0], [0], [0, 0, 1, 0], [], []>} : vector<16x16xbf16>, vector<16x16xbf16>, vector<16x16xf32> -> vector<16x16xf32>
    %cst_135 = arith.constant 2.500000e-01 : f32
    %554 = vector.broadcast %cst_135 : f32 to vector<16x16xf32>
    %555 = arith.mulf %553, %554 : vector<16x16xf32>
    %556 = arith.addf %555, %0 : vector<16x16xf32>
    %cst_136 = arith.constant dense<0xFF800000> : vector<16xf32>
    %557 = vector.multi_reduction <maximumf>, %556, %cst_136 [1] : vector<16x16xf32> to vector<16xf32>
    %558 = vector.shape_cast %557 : vector<16xf32> to vector<16x1xf32>
    %559 = vector.broadcast %558 : vector<16x1xf32> to vector<16x16xf32>
    %560 = arith.subf %556, %559 : vector<16x16xf32>
    %561 = math.exp %560 : vector<16x16xf32>
    %cst_137 = arith.constant dense<0.000000e+00> : vector<16xf32>
    %562 = vector.multi_reduction <add>, %561, %cst_137 [1] : vector<16x16xf32> to vector<16xf32>
    %563 = vector.shape_cast %562 : vector<16xf32> to vector<16x1xf32>
    %564 = tpu.reciprocal %563 {approx = true} : vector<16x1xf32> -> vector<16x1xf32>
    %565 = vector.broadcast %564 : vector<16x1xf32> to vector<16x16xf32>
    %566 = arith.mulf %561, %565 : vector<16x16xf32>
    %567 = arith.truncf %566 : vector<16x16xf32> to vector<16x16xbf16>
    %cst_138 = arith.constant dense<0.000000e+00> : vector<16x16xf32>
    %568 = tpu.matmul %567, %552, %cst_138 {dimension_numbers = #tpu.dot_dimension_numbers<[1], [0], [0], [1], [0, 0, 1, 1], [], []>} : vector<16x16xbf16>, vector<16x16xbf16>, vector<16x16xf32> -> vector<16x16xf32>
    %569 = vector.extract_strided_slice %549 {offsets = [0, 16], sizes = [16, 16], strides = [1, 1]} : vector<16x96xbf16> to vector<16x16xbf16>
    %570 = vector.extract_strided_slice %549 {offsets = [0, 48], sizes = [16, 16], strides = [1, 1]} : vector<16x96xbf16> to vector<16x16xbf16>
    %571 = vector.extract_strided_slice %549 {offsets = [0, 80], sizes = [16, 16], strides = [1, 1]} : vector<16x96xbf16> to vector<16x16xbf16>
    %cst_139 = arith.constant dense<0.000000e+00> : vector<16x16xf32>
    %572 = tpu.matmul %569, %570, %cst_139 {dimension_numbers = #tpu.dot_dimension_numbers<[1], [1], [0], [0], [0, 0, 1, 0], [], []>} : vector<16x16xbf16>, vector<16x16xbf16>, vector<16x16xf32> -> vector<16x16xf32>
    %cst_140 = arith.constant 2.500000e-01 : f32
    %573 = vector.broadcast %cst_140 : f32 to vector<16x16xf32>
    %574 = arith.mulf %572, %573 : vector<16x16xf32>
    %575 = arith.addf %574, %0 : vector<16x16xf32>
    %cst_141 = arith.constant dense<0xFF800000> : vector<16xf32>
    %576 = vector.multi_reduction <maximumf>, %575, %cst_141 [1] : vector<16x16xf32> to vector<16xf32>
    %577 = vector.shape_cast %576 : vector<16xf32> to vector<16x1xf32>
    %578 = vector.broadcast %577 : vector<16x1xf32> to vector<16x16xf32>
    %579 = arith.subf %575, %578 : vector<16x16xf32>
    %580 = math.exp %579 : vector<16x16xf32>
    %cst_142 = arith.constant dense<0.000000e+00> : vector<16xf32>
    %581 = vector.multi_reduction <add>, %580, %cst_142 [1] : vector<16x16xf32> to vector<16xf32>
    %582 = vector.shape_cast %581 : vector<16xf32> to vector<16x1xf32>
    %583 = tpu.reciprocal %582 {approx = true} : vector<16x1xf32> -> vector<16x1xf32>
    %584 = vector.broadcast %583 : vector<16x1xf32> to vector<16x16xf32>
    %585 = arith.mulf %580, %584 : vector<16x16xf32>
    %586 = arith.truncf %585 : vector<16x16xf32> to vector<16x16xbf16>
    %cst_143 = arith.constant dense<0.000000e+00> : vector<16x16xf32>
    %587 = tpu.matmul %586, %571, %cst_143 {dimension_numbers = #tpu.dot_dimension_numbers<[1], [0], [0], [1], [0, 0, 1, 1], [], []>} : vector<16x16xbf16>, vector<16x16xbf16>, vector<16x16xf32> -> vector<16x16xf32>
    %588 = tpu.concatenate %568, %587 in 1 : vector<16x16xf32>, vector<16x16xf32> -> vector<16x32xf32>
    %589 = arith.truncf %588 : vector<16x32xf32> to vector<16x32xbf16>
    %590 = vector.extract_strided_slice %538 {offsets = [0, 96], sizes = [32, 32], strides = [1, 1]} : vector<32x384xbf16> to vector<32x32xbf16>
    %cst_144 = arith.constant dense<0.000000e+00> : vector<16x32xf32>
    %591 = tpu.matmul %589, %590, %cst_144 {dimension_numbers = #tpu.dot_dimension_numbers<[1], [0], [0], [1], [0, 0, 1, 1], [], []>} : vector<16x32xbf16>, vector<32x32xbf16>, vector<16x32xf32> -> vector<16x32xf32>
    %592 = vector.extract_strided_slice %539 {offsets = [0, 96], sizes = [1, 32], strides = [1, 1]} : vector<1x128xf32> to vector<1x32xf32>
    %593 = vector.broadcast %592 : vector<1x32xf32> to vector<16x32xf32>
    %594 = arith.addf %591, %593 : vector<16x32xf32>
    %595 = arith.addf %594, %536 : vector<16x32xf32>
    %596 = vector.extract_strided_slice %540 {offsets = [0, 0], sizes = [1, 32], strides = [1, 1]} : vector<1x128xf32> to vector<1x32xf32>
    %597 = vector.extract_strided_slice %540 {offsets = [0, 32], sizes = [1, 32], strides = [1, 1]} : vector<1x128xf32> to vector<1x32xf32>
    %cst_145 = arith.constant dense<0.000000e+00> : vector<16xf32>
    %598 = vector.multi_reduction <add>, %595, %cst_145 [1] : vector<16x32xf32> to vector<16xf32>
    %599 = vector.shape_cast %598 : vector<16xf32> to vector<16x1xf32>
    %cst_146 = arith.constant 3.200000e+01 : f32
    %600 = vector.broadcast %cst_146 : f32 to vector<16x1xf32>
    %601 = arith.divf %599, %600 : vector<16x1xf32>
    %602 = vector.broadcast %601 : vector<16x1xf32> to vector<16x32xf32>
    %603 = arith.subf %595, %602 : vector<16x32xf32>
    %604 = arith.mulf %603, %603 : vector<16x32xf32>
    %cst_147 = arith.constant dense<0.000000e+00> : vector<16xf32>
    %605 = vector.multi_reduction <add>, %604, %cst_147 [1] : vector<16x32xf32> to vector<16xf32>
    %606 = vector.shape_cast %605 : vector<16xf32> to vector<16x1xf32>
    %cst_148 = arith.constant 3.200000e+01 : f32
    %607 = vector.broadcast %cst_148 : f32 to vector<16x1xf32>
    %608 = arith.divf %606, %607 : vector<16x1xf32>
    %cst_149 = arith.constant 9.99999996E-13 : f32
    %609 = vector.broadcast %cst_149 : f32 to vector<16x1xf32>
    %610 = arith.addf %608, %609 : vector<16x1xf32>
    %611 = math.rsqrt %610 : vector<16x1xf32>
    %612 = vector.broadcast %611 : vector<16x1xf32> to vector<16x32xf32>
    %613 = arith.mulf %603, %612 : vector<16x32xf32>
    %614 = vector.broadcast %596 : vector<1x32xf32> to vector<16x32xf32>
    %615 = arith.mulf %613, %614 : vector<16x32xf32>
    %616 = vector.broadcast %597 : vector<1x32xf32> to vector<16x32xf32>
    %617 = arith.addf %615, %616 : vector<16x32xf32>
    %618 = arith.truncf %617 : vector<16x32xf32> to vector<16x32xbf16>
    %619 = vector.extract_strided_slice %538 {offsets = [0, 128], sizes = [32, 128], strides = [1, 1]} : vector<32x384xbf16> to vector<32x128xbf16>
    %cst_150 = arith.constant dense<0.000000e+00> : vector<16x128xf32>
    %620 = tpu.matmul %618, %619, %cst_150 {dimension_numbers = #tpu.dot_dimension_numbers<[1], [0], [0], [1], [0, 0, 1, 1], [], []>} : vector<16x32xbf16>, vector<32x128xbf16>, vector<16x128xf32> -> vector<16x128xf32>
    %621 = vector.broadcast %541 : vector<1x128xf32> to vector<16x128xf32>
    %622 = arith.addf %620, %621 : vector<16x128xf32>
    %cst_151 = arith.constant 5.000000e-01 : f32
    %623 = vector.broadcast %cst_151 : f32 to vector<16x128xf32>
    %624 = arith.mulf %623, %622 : vector<16x128xf32>
    %625 = arith.mulf %622, %622 : vector<16x128xf32>
    %626 = arith.mulf %625, %622 : vector<16x128xf32>
    %cst_152 = arith.constant 4.471500e-02 : f32
    %627 = vector.broadcast %cst_152 : f32 to vector<16x128xf32>
    %628 = arith.mulf %627, %626 : vector<16x128xf32>
    %629 = arith.addf %622, %628 : vector<16x128xf32>
    %cst_153 = arith.constant 0.797884583 : f32
    %630 = vector.broadcast %cst_153 : f32 to vector<16x128xf32>
    %631 = arith.mulf %630, %629 : vector<16x128xf32>
    %632 = math.tanh %631 : vector<16x128xf32>
    %cst_154 = arith.constant 1.000000e+00 : f32
    %633 = vector.broadcast %cst_154 : f32 to vector<16x128xf32>
    %634 = arith.addf %633, %632 : vector<16x128xf32>
    %635 = arith.mulf %624, %634 : vector<16x128xf32>
    %636 = arith.truncf %635 : vector<16x128xf32> to vector<16x128xbf16>
    %637 = vector.extract_strided_slice %538 {offsets = [0, 256], sizes = [32, 128], strides = [1, 1]} : vector<32x384xbf16> to vector<32x128xbf16>
    %cst_155 = arith.constant dense<0.000000e+00> : vector<16x32xf32>
    %638 = tpu.matmul %636, %637, %cst_155 {dimension_numbers = #tpu.dot_dimension_numbers<[1], [1], [0], [0], [0, 0, 1, 0], [], []>} : vector<16x128xbf16>, vector<32x128xbf16>, vector<16x32xf32> -> vector<16x32xf32>
    %639 = vector.broadcast %542 : vector<1x32xf32> to vector<16x32xf32>
    %640 = arith.addf %638, %639 : vector<16x32xf32>
    %641 = arith.addf %640, %617 : vector<16x32xf32>
    %642 = vector.extract_strided_slice %540 {offsets = [0, 64], sizes = [1, 32], strides = [1, 1]} : vector<1x128xf32> to vector<1x32xf32>
    %643 = vector.extract_strided_slice %540 {offsets = [0, 96], sizes = [1, 32], strides = [1, 1]} : vector<1x128xf32> to vector<1x32xf32>
    %cst_156 = arith.constant dense<0.000000e+00> : vector<16xf32>
    %644 = vector.multi_reduction <add>, %641, %cst_156 [1] : vector<16x32xf32> to vector<16xf32>
    %645 = vector.shape_cast %644 : vector<16xf32> to vector<16x1xf32>
    %cst_157 = arith.constant 3.200000e+01 : f32
    %646 = vector.broadcast %cst_157 : f32 to vector<16x1xf32>
    %647 = arith.divf %645, %646 : vector<16x1xf32>
    %648 = vector.broadcast %647 : vector<16x1xf32> to vector<16x32xf32>
    %649 = arith.subf %641, %648 : vector<16x32xf32>
    %650 = arith.mulf %649, %649 : vector<16x32xf32>
    %cst_158 = arith.constant dense<0.000000e+00> : vector<16xf32>
    %651 = vector.multi_reduction <add>, %650, %cst_158 [1] : vector<16x32xf32> to vector<16xf32>
    %652 = vector.shape_cast %651 : vector<16xf32> to vector<16x1xf32>
    %cst_159 = arith.constant 3.200000e+01 : f32
    %653 = vector.broadcast %cst_159 : f32 to vector<16x1xf32>
    %654 = arith.divf %652, %653 : vector<16x1xf32>
    %cst_160 = arith.constant 9.99999996E-13 : f32
    %655 = vector.broadcast %cst_160 : f32 to vector<16x1xf32>
    %656 = arith.addf %654, %655 : vector<16x1xf32>
    %657 = math.rsqrt %656 : vector<16x1xf32>
    %658 = vector.broadcast %657 : vector<16x1xf32> to vector<16x32xf32>
    %659 = arith.mulf %649, %658 : vector<16x32xf32>
    %660 = vector.broadcast %642 : vector<1x32xf32> to vector<16x32xf32>
    %661 = arith.mulf %659, %660 : vector<16x32xf32>
    %662 = vector.broadcast %643 : vector<1x32xf32> to vector<16x32xf32>
    %663 = arith.addf %661, %662 : vector<16x32xf32>
    %c5 = arith.constant 5 : index
    %c0_161 = arith.constant 0 : index
    %c0_162 = arith.constant 0 : index
    %664 = vector.load %arg2[%c5, %c0_161, %c0_162] : memref<6x32x384xbf16, #tpu.memory_space<vmem>>, vector<1x32x384xbf16>
    %665 = vector.shape_cast %664 : vector<1x32x384xbf16> to vector<32x384xbf16>
    %666 = vector.extract_strided_slice %1 {offsets = [21, 0], sizes = [1, 128], strides = [1, 1]} : vector<32x128xf32> to vector<1x128xf32>
    %667 = vector.extract_strided_slice %1 {offsets = [22, 0], sizes = [1, 128], strides = [1, 1]} : vector<32x128xf32> to vector<1x128xf32>
    %668 = vector.extract_strided_slice %1 {offsets = [23, 0], sizes = [1, 128], strides = [1, 1]} : vector<32x128xf32> to vector<1x128xf32>
    %669 = vector.extract_strided_slice %1 {offsets = [24, 0], sizes = [1, 32], strides = [1, 1]} : vector<32x128xf32> to vector<1x32xf32>
    %670 = arith.truncf %663 : vector<16x32xf32> to vector<16x32xbf16>
    %671 = vector.extract_strided_slice %665 {offsets = [0, 0], sizes = [32, 96], strides = [1, 1]} : vector<32x384xbf16> to vector<32x96xbf16>
    %cst_163 = arith.constant dense<0.000000e+00> : vector<16x96xf32>
    %672 = tpu.matmul %670, %671, %cst_163 {dimension_numbers = #tpu.dot_dimension_numbers<[1], [0], [0], [1], [0, 0, 1, 1], [], []>} : vector<16x32xbf16>, vector<32x96xbf16>, vector<16x96xf32> -> vector<16x96xf32>
    %673 = vector.extract_strided_slice %666 {offsets = [0, 0], sizes = [1, 96], strides = [1, 1]} : vector<1x128xf32> to vector<1x96xf32>
    %674 = vector.broadcast %673 : vector<1x96xf32> to vector<16x96xf32>
    %675 = arith.addf %672, %674 : vector<16x96xf32>
    %676 = arith.truncf %675 : vector<16x96xf32> to vector<16x96xbf16>
    %677 = vector.extract_strided_slice %676 {offsets = [0, 0], sizes = [16, 16], strides = [1, 1]} : vector<16x96xbf16> to vector<16x16xbf16>
    %678 = vector.extract_strided_slice %676 {offsets = [0, 32], sizes = [16, 16], strides = [1, 1]} : vector<16x96xbf16> to vector<16x16xbf16>
    %679 = vector.extract_strided_slice %676 {offsets = [0, 64], sizes = [16, 16], strides = [1, 1]} : vector<16x96xbf16> to vector<16x16xbf16>
    %cst_164 = arith.constant dense<0.000000e+00> : vector<16x16xf32>
    %680 = tpu.matmul %677, %678, %cst_164 {dimension_numbers = #tpu.dot_dimension_numbers<[1], [1], [0], [0], [0, 0, 1, 0], [], []>} : vector<16x16xbf16>, vector<16x16xbf16>, vector<16x16xf32> -> vector<16x16xf32>
    %cst_165 = arith.constant 2.500000e-01 : f32
    %681 = vector.broadcast %cst_165 : f32 to vector<16x16xf32>
    %682 = arith.mulf %680, %681 : vector<16x16xf32>
    %683 = arith.addf %682, %0 : vector<16x16xf32>
    %cst_166 = arith.constant dense<0xFF800000> : vector<16xf32>
    %684 = vector.multi_reduction <maximumf>, %683, %cst_166 [1] : vector<16x16xf32> to vector<16xf32>
    %685 = vector.shape_cast %684 : vector<16xf32> to vector<16x1xf32>
    %686 = vector.broadcast %685 : vector<16x1xf32> to vector<16x16xf32>
    %687 = arith.subf %683, %686 : vector<16x16xf32>
    %688 = math.exp %687 : vector<16x16xf32>
    %cst_167 = arith.constant dense<0.000000e+00> : vector<16xf32>
    %689 = vector.multi_reduction <add>, %688, %cst_167 [1] : vector<16x16xf32> to vector<16xf32>
    %690 = vector.shape_cast %689 : vector<16xf32> to vector<16x1xf32>
    %691 = tpu.reciprocal %690 {approx = true} : vector<16x1xf32> -> vector<16x1xf32>
    %692 = vector.broadcast %691 : vector<16x1xf32> to vector<16x16xf32>
    %693 = arith.mulf %688, %692 : vector<16x16xf32>
    %694 = arith.truncf %693 : vector<16x16xf32> to vector<16x16xbf16>
    %cst_168 = arith.constant dense<0.000000e+00> : vector<16x16xf32>
    %695 = tpu.matmul %694, %679, %cst_168 {dimension_numbers = #tpu.dot_dimension_numbers<[1], [0], [0], [1], [0, 0, 1, 1], [], []>} : vector<16x16xbf16>, vector<16x16xbf16>, vector<16x16xf32> -> vector<16x16xf32>
    %696 = vector.extract_strided_slice %676 {offsets = [0, 16], sizes = [16, 16], strides = [1, 1]} : vector<16x96xbf16> to vector<16x16xbf16>
    %697 = vector.extract_strided_slice %676 {offsets = [0, 48], sizes = [16, 16], strides = [1, 1]} : vector<16x96xbf16> to vector<16x16xbf16>
    %698 = vector.extract_strided_slice %676 {offsets = [0, 80], sizes = [16, 16], strides = [1, 1]} : vector<16x96xbf16> to vector<16x16xbf16>
    %cst_169 = arith.constant dense<0.000000e+00> : vector<16x16xf32>
    %699 = tpu.matmul %696, %697, %cst_169 {dimension_numbers = #tpu.dot_dimension_numbers<[1], [1], [0], [0], [0, 0, 1, 0], [], []>} : vector<16x16xbf16>, vector<16x16xbf16>, vector<16x16xf32> -> vector<16x16xf32>
    %cst_170 = arith.constant 2.500000e-01 : f32
    %700 = vector.broadcast %cst_170 : f32 to vector<16x16xf32>
    %701 = arith.mulf %699, %700 : vector<16x16xf32>
    %702 = arith.addf %701, %0 : vector<16x16xf32>
    %cst_171 = arith.constant dense<0xFF800000> : vector<16xf32>
    %703 = vector.multi_reduction <maximumf>, %702, %cst_171 [1] : vector<16x16xf32> to vector<16xf32>
    %704 = vector.shape_cast %703 : vector<16xf32> to vector<16x1xf32>
    %705 = vector.broadcast %704 : vector<16x1xf32> to vector<16x16xf32>
    %706 = arith.subf %702, %705 : vector<16x16xf32>
    %707 = math.exp %706 : vector<16x16xf32>
    %cst_172 = arith.constant dense<0.000000e+00> : vector<16xf32>
    %708 = vector.multi_reduction <add>, %707, %cst_172 [1] : vector<16x16xf32> to vector<16xf32>
    %709 = vector.shape_cast %708 : vector<16xf32> to vector<16x1xf32>
    %710 = tpu.reciprocal %709 {approx = true} : vector<16x1xf32> -> vector<16x1xf32>
    %711 = vector.broadcast %710 : vector<16x1xf32> to vector<16x16xf32>
    %712 = arith.mulf %707, %711 : vector<16x16xf32>
    %713 = arith.truncf %712 : vector<16x16xf32> to vector<16x16xbf16>
    %cst_173 = arith.constant dense<0.000000e+00> : vector<16x16xf32>
    %714 = tpu.matmul %713, %698, %cst_173 {dimension_numbers = #tpu.dot_dimension_numbers<[1], [0], [0], [1], [0, 0, 1, 1], [], []>} : vector<16x16xbf16>, vector<16x16xbf16>, vector<16x16xf32> -> vector<16x16xf32>
    %715 = tpu.concatenate %695, %714 in 1 : vector<16x16xf32>, vector<16x16xf32> -> vector<16x32xf32>
    %716 = arith.truncf %715 : vector<16x32xf32> to vector<16x32xbf16>
    %717 = vector.extract_strided_slice %665 {offsets = [0, 96], sizes = [32, 32], strides = [1, 1]} : vector<32x384xbf16> to vector<32x32xbf16>
    %cst_174 = arith.constant dense<0.000000e+00> : vector<16x32xf32>
    %718 = tpu.matmul %716, %717, %cst_174 {dimension_numbers = #tpu.dot_dimension_numbers<[1], [0], [0], [1], [0, 0, 1, 1], [], []>} : vector<16x32xbf16>, vector<32x32xbf16>, vector<16x32xf32> -> vector<16x32xf32>
    %719 = vector.extract_strided_slice %666 {offsets = [0, 96], sizes = [1, 32], strides = [1, 1]} : vector<1x128xf32> to vector<1x32xf32>
    %720 = vector.broadcast %719 : vector<1x32xf32> to vector<16x32xf32>
    %721 = arith.addf %718, %720 : vector<16x32xf32>
    %722 = arith.addf %721, %663 : vector<16x32xf32>
    %723 = vector.extract_strided_slice %667 {offsets = [0, 0], sizes = [1, 32], strides = [1, 1]} : vector<1x128xf32> to vector<1x32xf32>
    %724 = vector.extract_strided_slice %667 {offsets = [0, 32], sizes = [1, 32], strides = [1, 1]} : vector<1x128xf32> to vector<1x32xf32>
    %cst_175 = arith.constant dense<0.000000e+00> : vector<16xf32>
    %725 = vector.multi_reduction <add>, %722, %cst_175 [1] : vector<16x32xf32> to vector<16xf32>
    %726 = vector.shape_cast %725 : vector<16xf32> to vector<16x1xf32>
    %cst_176 = arith.constant 3.200000e+01 : f32
    %727 = vector.broadcast %cst_176 : f32 to vector<16x1xf32>
    %728 = arith.divf %726, %727 : vector<16x1xf32>
    %729 = vector.broadcast %728 : vector<16x1xf32> to vector<16x32xf32>
    %730 = arith.subf %722, %729 : vector<16x32xf32>
    %731 = arith.mulf %730, %730 : vector<16x32xf32>
    %cst_177 = arith.constant dense<0.000000e+00> : vector<16xf32>
    %732 = vector.multi_reduction <add>, %731, %cst_177 [1] : vector<16x32xf32> to vector<16xf32>
    %733 = vector.shape_cast %732 : vector<16xf32> to vector<16x1xf32>
    %cst_178 = arith.constant 3.200000e+01 : f32
    %734 = vector.broadcast %cst_178 : f32 to vector<16x1xf32>
    %735 = arith.divf %733, %734 : vector<16x1xf32>
    %cst_179 = arith.constant 9.99999996E-13 : f32
    %736 = vector.broadcast %cst_179 : f32 to vector<16x1xf32>
    %737 = arith.addf %735, %736 : vector<16x1xf32>
    %738 = math.rsqrt %737 : vector<16x1xf32>
    %739 = vector.broadcast %738 : vector<16x1xf32> to vector<16x32xf32>
    %740 = arith.mulf %730, %739 : vector<16x32xf32>
    %741 = vector.broadcast %723 : vector<1x32xf32> to vector<16x32xf32>
    %742 = arith.mulf %740, %741 : vector<16x32xf32>
    %743 = vector.broadcast %724 : vector<1x32xf32> to vector<16x32xf32>
    %744 = arith.addf %742, %743 : vector<16x32xf32>
    %745 = arith.truncf %744 : vector<16x32xf32> to vector<16x32xbf16>
    %746 = vector.extract_strided_slice %665 {offsets = [0, 128], sizes = [32, 128], strides = [1, 1]} : vector<32x384xbf16> to vector<32x128xbf16>
    %cst_180 = arith.constant dense<0.000000e+00> : vector<16x128xf32>
    %747 = tpu.matmul %745, %746, %cst_180 {dimension_numbers = #tpu.dot_dimension_numbers<[1], [0], [0], [1], [0, 0, 1, 1], [], []>} : vector<16x32xbf16>, vector<32x128xbf16>, vector<16x128xf32> -> vector<16x128xf32>
    %748 = vector.broadcast %668 : vector<1x128xf32> to vector<16x128xf32>
    %749 = arith.addf %747, %748 : vector<16x128xf32>
    %cst_181 = arith.constant 5.000000e-01 : f32
    %750 = vector.broadcast %cst_181 : f32 to vector<16x128xf32>
    %751 = arith.mulf %750, %749 : vector<16x128xf32>
    %752 = arith.mulf %749, %749 : vector<16x128xf32>
    %753 = arith.mulf %752, %749 : vector<16x128xf32>
    %cst_182 = arith.constant 4.471500e-02 : f32
    %754 = vector.broadcast %cst_182 : f32 to vector<16x128xf32>
    %755 = arith.mulf %754, %753 : vector<16x128xf32>
    %756 = arith.addf %749, %755 : vector<16x128xf32>
    %cst_183 = arith.constant 0.797884583 : f32
    %757 = vector.broadcast %cst_183 : f32 to vector<16x128xf32>
    %758 = arith.mulf %757, %756 : vector<16x128xf32>
    %759 = math.tanh %758 : vector<16x128xf32>
    %cst_184 = arith.constant 1.000000e+00 : f32
    %760 = vector.broadcast %cst_184 : f32 to vector<16x128xf32>
    %761 = arith.addf %760, %759 : vector<16x128xf32>
    %762 = arith.mulf %751, %761 : vector<16x128xf32>
    %763 = arith.truncf %762 : vector<16x128xf32> to vector<16x128xbf16>
    %764 = vector.extract_strided_slice %665 {offsets = [0, 256], sizes = [32, 128], strides = [1, 1]} : vector<32x384xbf16> to vector<32x128xbf16>
    %cst_185 = arith.constant dense<0.000000e+00> : vector<16x32xf32>
    %765 = tpu.matmul %763, %764, %cst_185 {dimension_numbers = #tpu.dot_dimension_numbers<[1], [1], [0], [0], [0, 0, 1, 0], [], []>} : vector<16x128xbf16>, vector<32x128xbf16>, vector<16x32xf32> -> vector<16x32xf32>
    %766 = vector.broadcast %669 : vector<1x32xf32> to vector<16x32xf32>
    %767 = arith.addf %765, %766 : vector<16x32xf32>
    %768 = arith.addf %767, %744 : vector<16x32xf32>
    %769 = vector.extract_strided_slice %667 {offsets = [0, 64], sizes = [1, 32], strides = [1, 1]} : vector<1x128xf32> to vector<1x32xf32>
    %770 = vector.extract_strided_slice %667 {offsets = [0, 96], sizes = [1, 32], strides = [1, 1]} : vector<1x128xf32> to vector<1x32xf32>
    %cst_186 = arith.constant dense<0.000000e+00> : vector<16xf32>
    %771 = vector.multi_reduction <add>, %768, %cst_186 [1] : vector<16x32xf32> to vector<16xf32>
    %772 = vector.shape_cast %771 : vector<16xf32> to vector<16x1xf32>
    %cst_187 = arith.constant 3.200000e+01 : f32
    %773 = vector.broadcast %cst_187 : f32 to vector<16x1xf32>
    %774 = arith.divf %772, %773 : vector<16x1xf32>
    %775 = vector.broadcast %774 : vector<16x1xf32> to vector<16x32xf32>
    %776 = arith.subf %768, %775 : vector<16x32xf32>
    %777 = arith.mulf %776, %776 : vector<16x32xf32>
    %cst_188 = arith.constant dense<0.000000e+00> : vector<16xf32>
    %778 = vector.multi_reduction <add>, %777, %cst_188 [1] : vector<16x32xf32> to vector<16xf32>
    %779 = vector.shape_cast %778 : vector<16xf32> to vector<16x1xf32>
    %cst_189 = arith.constant 3.200000e+01 : f32
    %780 = vector.broadcast %cst_189 : f32 to vector<16x1xf32>
    %781 = arith.divf %779, %780 : vector<16x1xf32>
    %cst_190 = arith.constant 9.99999996E-13 : f32
    %782 = vector.broadcast %cst_190 : f32 to vector<16x1xf32>
    %783 = arith.addf %781, %782 : vector<16x1xf32>
    %784 = math.rsqrt %783 : vector<16x1xf32>
    %785 = vector.broadcast %784 : vector<16x1xf32> to vector<16x32xf32>
    %786 = arith.mulf %776, %785 : vector<16x32xf32>
    %787 = vector.broadcast %769 : vector<1x32xf32> to vector<16x32xf32>
    %788 = arith.mulf %786, %787 : vector<16x32xf32>
    %789 = vector.broadcast %770 : vector<1x32xf32> to vector<16x32xf32>
    %790 = arith.addf %788, %789 : vector<16x32xf32>
    %791 = tpu.concatenate %790, %278, %532, %536 in 1 : vector<16x32xf32>, vector<16x32xf32>, vector<16x32xf32>, vector<16x32xf32> -> vector<16x128xf32>
    %c0_191 = arith.constant 0 : index
    %c0_192 = arith.constant 0 : index
    %792 = vector.load %arg4[%c0_191, %c0_192] : memref<16x128xf32, #tpu.memory_space<vmem>>, vector<16x128xf32>
    tpu.vector_store %arg4[%c0_191, %c0_192], %791 {strides = array<i32>} : memref<16x128xf32, #tpu.memory_space<vmem>>, vector<16x128xf32>,
    return
  }
}

</mosaic_0001>

<bundles_post_ra>
// kernel: forward.1
= control target key start
LH: loop header
LB: loop body
LE: loop exit
PB: predicated region body
PF: predicated region fallthrough
CT: control target
= control target key end

     0   :  { %vm26_vm0 = vcmask 261120   ;;  %v54_v4 = vlaneseq  ;;  %v4529_v20 = vmov 0.0   ;;  %vm4530_vm1 = vmmov 0   ;;  %s4531_s25 = smov 80   ;;  %s4532_s26 = smov 112   ;;  %s5499_s0 = inlined_call_operand.vmem [shape: f32[16,32], index: 0, kind: input, shape index: {}]   ;;  %s5500_s3 = inlined_call_operand.vmem [shape: f32[32,128], index: 3, kind: input, shape index: {}]   ;;  %s5501_s2 = inlined_call_operand.vmem [shape: bf16[6,32,384], index: 2, kind: input, shape index: {}]   ;;  %s5502_s1 = inlined_call_operand.vmem [shape: f32[16,16], index: 1, kind: input, shape index: {}]   ;;  %s5503_s4 = inlined_call_operand.vmem [shape: f32[16,128], index: 4, kind: output, shape index: {}]  }
   0x1   :  { %v24_v0 = vld [vmem:[%s5499_s0] sm:$0xff]  ;;  %v25_v1 = vld [vmem:[%s5499_s0 + $0x8] sm:$0xff]  ;;  %s4528_s0 = smov 96   ;;  %3922 = vmatprep.subr.bf16.mxu1 %v4529_v20  ;;  %3936 = vmatprep.subr.bf16.mxu0 %v4529_v20  ;;  %vm139_vm2 = vcmask 130048   ;;  %s4533_s5 = smov 48   ;;  %vm3672_vm3 = vcmask 523264  }
   0x2   :  { %v27_v2 = vsel %vm26_vm0, %v24_v0, 0.0  ;;  %v30_v3 = vsel %vm26_vm0, %v25_v1, 0.0  ;;  %v4570_v5 = vshrl.u32 %v54_v4, 7  ;;  %v4575_v6 = vld [vmem:[%s5500_s3] sm:$0xff]  ;;  %3926 = vmatprep.mubr.msk.bf16.mxu1 %vm4530_vm1, %v4529_v20  ;;  %3938 = vmatprep.mubr.msk.bf16.mxu0 %vm4530_vm1, %v4529_v20  ;;  %v4654_v58 = vld [vmem:[%s5502_s1 + $0x8] sm:$0xff]  ;;  %s4534_s6 = smov 64  }
   0x3   :  { %28 = vadd.xlane.f32.xlu0 %v27_v2  ;;  %v4588_v19 = vld [vmem:[%s5501_s2 + $0x18] ss:$12 sps:$4 sm:$0xff]   ;;  %v4597_v21 = vld [vmem:[%s5501_s2] ss:$12 sps:$4 sm:$0xff]   ;;  %s4535_s11 = smov 32   ;;  %s4536_s12 = smov 16  }
   0x4   :  { %v4578_v7 = vsub.s32 0, %v4570_v5  ;;  %3923 = vmatpush3.bf16.msra.mxu1 %v4588_v19  ;;  %v4618_v38 = vsub.s32 1, %v4570_v5  ;;  %v4648_v53 = vld [vmem:[%s5502_s1] sm:$0xff]  ;;  %vm3675_vm4 = vcmask 785408  }
   0x5   :  { %3924 = vmatprep.subr.bf16.mxu1 %v4529_v20 }
   0x6   :  { %v57_v8 = vrot.slane %v4575_v6, %v4578_v7  ;;  %v4622_v40 = vrot.slane %v4575_v6, %v4618_v38 }
   0x7   :  { %31 = vadd.xlane.f32.xlu0 %v30_v3 }
   0x8   :  { %3925 = vmatpush3.bf16.msra.mxu1 %v4597_v21 }
   0x9   :  { %3930 = vmatprep.subr.bf16.mxu1 %v4529_v20 }
  0x1d   :  { %61 = vrot.lane.b32.xlu0 %v57_v8, %s4528_s0 }
  0x8c   :  { %v29_v9 = vpop.xlane.xlu0 %28 }
  0x8d   :  { %v34_v10 = vmul.f32 0.03125, %v29_v9 }
  0x8f   :  { %v36_v11 = vsub.f32 %v24_v0, %v34_v10 }
  0x90   :  { %v32_v12 = vpop.xlane.xlu0 %31 }
  0x91   :  { %v35_v13 = vmul.f32 0.03125, %v32_v12  ;;  %v38_v14 = vmul.f32 %v36_v11, %v36_v11 }
  0x93   :  { %v37_v15 = vsub.f32 %v25_v1, %v35_v13  ;;  %v40_v16 = vsel %vm26_vm0, %v38_v14, 0.0 }
  0x94   :  { %41 = vadd.xlane.f32.xlu1 %v40_v16  ;;  %v62_v33 = vpop.permute.xlu0 %61 }
  0x95   :  { %v39_v17 = vmul.f32 %v37_v15, %v37_v15 }
  0x97   :  { %v43_v18 = vsel %vm26_vm0, %v39_v17, 0.0 }
  0x98   :  { %44 = vadd.xlane.f32.xlu1 %v43_v18 }
 0x11d   :  { %v42_v22 = vpop.xlane.xlu1 %41 }
 0x11e   :  { %v46_v23 = vmul.f32 0.03125, %v42_v22 }
 0x120   :  { %v48_v24 = vadd.f32 1e-12, %v46_v23 }
 0x121   :  { %v45_v25 = vpop.xlane.xlu1 %44 }
 0x122   :  { %4345 = vrsqrt.f32 %v48_v24  ;;  %v47_v26 = vmul.f32 0.03125, %v45_v25 }
 0x124   :  { %v49_v27 = vadd.f32 1e-12, %v47_v26 }
 0x126   :  { %4347 = vrsqrt.f32 %v49_v27 }
 0x12f   :  { %v4346_v28 = vpop.eup %4345 }
 0x130   :  { %v52_v29 = vmul.f32 %v4346_v28, %v36_v11 }
 0x132   :  { %v58_v32 = vmul.f32 %v57_v8, %v52_v29 }
 0x133   :  { %v4348_v30 = vpop.eup %4347 }
 0x134   :  { %v53_v31 = vmul.f32 %v4348_v30, %v37_v15  ;;  %v4605_v35 = vadd.f32 %v62_v33, %v58_v32 }
 0x136   :  { %v59_v34 = vmul.f32 %v57_v8, %v53_v31 }
 0x138   :  { %v4607_v36 = vadd.f32 %v62_v33, %v59_v34 }
 0x13a   :  { %v4611_v37 = vpack.c.bf16 %v4607_v36, %v4605_v35 }
 0x13c   :  { %3927 = vmatmul.mubr.msk.bf16.vlgmr.msra.gmra.mxu1 %vm26_vm0, %v4611_v37 }
 0x13d   :  { %3932 = vmatprep.mubr.msk.bf16.mxu1 %vm4530_vm1, %v4529_v20 }
 0x1fc   :  { %v128_v39 = vpop.f32.mrf.mxu1 }
 0x1fd   :  { %v129_v43 = vadd.f32 %v128_v39, %v4622_v40 }
 0x1fe   :  { %v3928_v41 = vpop.f32.mrf.mxu1 }
 0x200   :  { %v131_v42 = vpop.f32.mrf.mxu1 }
 0x201   :  { %v132_v44 = vadd.f32 %v131_v42, %v4622_v40 }
 0x202   :  { %v3929_v45 = vpop.f32.mrf.mxu1 }
 0x203   :  { %v4626_v46 = vpack.c.bf16 %v132_v44, %v129_v43 }
 0x205   :  { %137 = vrot.lane.b32.xlu1 %v4626_v46, %s4528_s0 }
 0x209   :  { %263 = vrot.lane.b32.xlu1 %v4626_v46, %s4531_s25 }
 0x20d   :  { %261 = vrot.lane.b32.xlu1 %v4626_v46, %s4532_s26 }
 0x277   :  { %v138_v47 = vpop.permute.xlu1 %137 }
 0x278   :  { %v144_v48 = vsel %vm139_vm2, %v138_v47, 0 }
 0x279   :  { %3931 = vmatpush3.bf16.xpose.msra.mxu1 %v144_v48 }
 0x27a   :  { %3942 = vmatprep.subr.bf16.mxu1 %v4529_v20 }
 0x27b   :  { %v264_v49 = vpop.permute.xlu1 %263 }
 0x27c   :  { %v269_v50 = vsel %vm139_vm2, %v264_v49, 0 }
 0x27f   :  { %v262_v51 = vpop.permute.xlu1 %261 }
 0x280   :  { %3933 = vmatmul.mubr.msk.bf16.vlgmr.msra.gmra.mxu1 %vm139_vm2, %v4626_v46 }
 0x281   :  { %3943 = vmatpush3.bf16.xpose.msra.mxu1 %v269_v50  ;;  %3944 = vmatprep.mubr.msk.bf16.mxu1 %vm4530_vm1, %v4529_v20 }
 0x282   :  { %3954 = vmatprep.subr.bf16.mxu1 %v4529_v20 }
 0x288   :  { %3945 = vmatmul.mubr.msk.bf16.vlgmr.msra.gmra.mxu1 %vm139_vm2, %v262_v51 }
 0x289   :  { %3958 = vmatprep.mubr.msk.bf16.mxu1 %vm4530_vm1, %v4529_v20 }
 0x340   :  { %v180_v52 = vpop.f32.mrf.mxu1 }
 0x341   :  { %v187_v54 = vmul.f32 0.25, %v180_v52 }
 0x342   :  { %v3934_v55 = vpop.f32.mrf.mxu1 }
 0x343   :  { %v189_v56 = vadd.f32 %v187_v54, %v4648_v53 }
 0x344   :  { %v183_v57 = vpop.f32.mrf.mxu1 }
 0x345   :  { %v188_v59 = vmul.f32 0.25, %v183_v57  ;;  %v191_v60 = vsel %vm139_vm2, %v189_v56, -inf  ;;  %v4299_v57 = vld [vmem:[%s5501_s2 + $0x1c] ss:$12 sps:$4 sm:$0xff]  }
 0x346   :  { %192 = vmax.xlane.f32.xlu0 %v191_v60  ;;  %v3935_v61 = vpop.f32.mrf.mxu1  ;;  %v4302_v60 = vld [vmem:[%s5501_s2 + $0x4] ss:$12 sps:$4 sm:$0xff]  }
 0x347   :  { %v190_v62 = vadd.f32 %v188_v59, %v4654_v58 }
 0x348   :  { %v305_v63 = vpop.f32.mrf.mxu1 }
 0x349   :  { %v312_v0 = vmul.f32 0.25, %v305_v63  ;;  %v194_v1 = vsel %vm139_vm2, %v190_v62, -inf }
 0x34a   :  { %195 = vmax.xlane.f32.xlu1 %v194_v1  ;;  %v3946_v2 = vpop.f32.mrf.mxu1 }
 0x34b   :  { %v314_v3 = vadd.f32 %v312_v0, %v4648_v53 }
 0x34c   :  { %v308_v4 = vpop.f32.mrf.mxu1 }
 0x34d   :  { %v313_v8 = vmul.f32 0.25, %v308_v4  ;;  %v316_v9 = vsel %vm139_vm2, %v314_v3, -inf }
 0x34e   :  { %317 = vmax.xlane.f32.xlu0 %v316_v9  ;;  %v3947_v10 = vpop.f32.mrf.mxu1 }
 0x34f   :  { %v315_v11 = vadd.f32 %v313_v8, %v4654_v58 }
 0x351   :  { %v319_v12 = vsel %vm139_vm2, %v315_v11, -inf }
 0x352   :  { %320 = vmax.xlane.f32.xlu0 %v319_v12 }
 0x3cf   :  { %v193_v13 = vpop.xlane.xlu0 %192 }
 0x3d0   :  { %v197_v14 = vsub.f32 %v189_v56, %v193_v13 }
 0x3d2   :  { %v199_v15 = vmul.f32 1.442695, %v197_v14 }
 0x3d3   :  { %v196_v16 = vpop.xlane.xlu1 %195 }
 0x3d4   :  { %4349 = vpow2.f32 %v199_v15  ;;  %v198_v17 = vsub.f32 %v190_v62, %v196_v16 }
 0x3d6   :  { %v201_v18 = vmul.f32 1.442695, %v198_v17 }
 0x3d7   :  { %v318_v22 = vpop.xlane.xlu0 %317 }
 0x3d8   :  { %4351 = vpow2.f32 %v201_v18  ;;  %v322_v23 = vsub.f32 %v314_v3, %v318_v22 }
 0x3da   :  { %v324_v24 = vmul.f32 1.442695, %v322_v23 }
 0x3db   :  { %v321_v25 = vpop.xlane.xlu0 %320 }
 0x3dc   :  { %4353 = vpow2.f32 %v324_v24  ;;  %v323_v26 = vsub.f32 %v315_v11, %v321_v25 }
 0x3de   :  { %v326_v27 = vmul.f32 1.442695, %v323_v26 }
 0x3e0   :  { %4355 = vpow2.f32 %v326_v27 }
 0x3e1   :  { %v4350_v28 = vpop.eup %4349 }
 0x3e2   :  { %v203_v29 = vsel %vm139_vm2, %v4350_v28, 0.0 }
 0x3e3   :  { %204 = vadd.xlane.f32.xlu0 %v203_v29 }
 0x3e5   :  { %v4352_v30 = vpop.eup %4351 }
 0x3e6   :  { %v206_v31 = vsel %vm139_vm2, %v4352_v30, 0.0 }
 0x3e7   :  { %207 = vadd.xlane.f32.xlu1 %v206_v31 }
 0x3e9   :  { %v4354_v32 = vpop.eup %4353 }
 0x3ea   :  { %v328_v33 = vsel %vm139_vm2, %v4354_v32, 0.0 }
 0x3eb   :  { %329 = vadd.xlane.f32.xlu0 %v328_v33 }
 0x3ed   :  { %v4356_v34 = vpop.eup %4355 }
 0x3ee   :  { %v331_v39 = vsel %vm139_vm2, %v4356_v34, 0.0 }
 0x3ef   :  { %332 = vadd.xlane.f32.xlu1 %v331_v39 }
 0x400   :  { %339 = vrot.lane.b32.xlu1 %v4626_v46, %s4533_s5 }
 0x401   :  { %214 = vrot.lane.b32.xlu0 %v4626_v46, %s4534_s6 }
 0x404   :  { %399 = vrot.lane.b32.xlu1 %v4588_v19, %s4535_s11 }
 0x405   :  { %397 = vrot.lane.b32.xlu0 %v4597_v21, %s4535_s11 }
 0x46c   :  { %v205_v41 = vpop.xlane.xlu0 %204 }
 0x46d   :  { %4357 = vrcp.f32 %v205_v41 }
 0x470   :  { %v208_v42 = vpop.xlane.xlu1 %207 }
 0x471   :  { %4359 = vrcp.f32 %v208_v42 }
 0x474   :  { %v330_v43 = vpop.xlane.xlu0 %329 }
 0x475   :  { %4361 = vrcp.f32 %v330_v43  ;;  %v4708_v43 = vsub.s32 2, %v4570_v5 }
 0x478   :  { %v333_v44 = vpop.xlane.xlu1 %332  ;;  %v215_v45 = vpop.permute.xlu0 %214 }
 0x479   :  { %4363 = vrcp.f32 %v333_v44  ;;  %3937 = vmatpush3.bf16.msra.mxu0 %v215_v45  ;;  %v4712_v44 = vrot.slane %v4575_v6, %v4708_v43 }
 0x47a   :  { %3948 = vmatprep.subr.bf16.mxu0 %v4529_v20  ;;  %v4358_v47 = vpop.eup %4357 }
 0x47b   :  { %v211_v49 = vmul.f32 %v4358_v47, %v4350_v28 }
 0x47c   :  { %v340_v52 = vpop.permute.xlu1 %339  ;;  %v398_v1 = vpop.permute.xlu0 %397 }
 0x47e   :  { %v4360_v48 = vpop.eup %4359 }
 0x47f   :  { %v212_v50 = vmul.f32 %v4360_v48, %v4352_v30 }
 0x480   :  { %v400_v61 = vpop.permute.xlu1 %399 }
 0x481   :  { %v213_v51 = vpack.c.bf16 %v212_v50, %v211_v49  ;;  %3955 = vmatpush3.bf16.msra.mxu1 %v400_v61 }
 0x482   :  { %v4362_v46 = vpop.eup %4361  ;;  %3956 = vmatprep.subr.bf16.mxu1 %v4529_v20 }
 0x483   :  { %3939 = vmatmul.mubr.msk.bf16.vlgmr.msra.gmra.mxu0 %vm139_vm2, %v213_v51  ;;  %v336_v55 = vmul.f32 %v4362_v46, %v4354_v32 }
 0x484   :  { %3949 = vmatpush3.bf16.msra.mxu0 %v340_v52  ;;  %3950 = vmatprep.mubr.msk.bf16.mxu0 %vm4530_vm1, %v4529_v20 }
 0x485   :  { %3962 = vmatprep.subr.bf16.mxu0 %v4529_v20  ;;  %3957 = vmatpush3.bf16.msra.mxu1 %v398_v1  ;;  %v4732_v1 = vsub.s32 3, %v4570_v5 }
 0x486   :  { %v4364_v54 = vpop.eup %4363  ;;  %3970 = vmatprep.subr.bf16.mxu1 %v4529_v20 }
 0x487   :  { %v337_v56 = vmul.f32 %v4364_v54, %v4356_v34 }
 0x489   :  { %v338_v59 = vpack.c.bf16 %v337_v56, %v336_v55 }
 0x48b   :  { %3951 = vmatmul.mubr.msk.bf16.vlgmr.msra.gmra.mxu0 %vm139_vm2, %v338_v59 }
 0x48c   :  { %3963 = vmatpush3.bf16.msra.mxu0 %v4299_v57  ;;  %3966 = vmatprep.mubr.msk.bf16.mxu0 %vm4530_vm1, %v4529_v20 }
 0x48d   :  { %3964 = vmatprep.subr.bf16.mxu0 %v4529_v20 }
 0x490   :  { %3965 = vmatpush3.bf16.msra.mxu0 %v4302_v60 }
 0x491   :  { %3978 = vmatprep.subr.bf16.mxu0 %v4529_v20 }
 0x543   :  { %v254_v62 = vpop.f32.mrf.mxu0 }
 0x545   :  { %v3940_v63 = vpop.f32.mrf.mxu0 }
 0x546   :  { %v4303_v63 = vld [vmem:[%s5501_s2 + $0x20] ss:$12 sps:$4 sm:$0xff]  }
 0x547   :  { %v257_v0 = vpop.f32.mrf.mxu0 }
 0x549   :  { %v3941_v2 = vpop.f32.mrf.mxu0 }
 0x54a   :  { %v495_v2 = vrot.slane %v4575_v6, %v4732_v1 }
 0x54b   :  { %v379_v3 = vpop.f32.mrf.mxu0 }
 0x54d   :  { %v3952_v4 = vpop.f32.mrf.mxu0 }
 0x54f   :  { %v382_v8 = vpop.f32.mrf.mxu0 }
 0x550   :  { %v4267_v9 = vpack.i.bf16 %v382_v8, %v379_v3 }
 0x551   :  { %v3953_v19 = vpop.f32.mrf.mxu0 }
 0x552   :  { %4268 = vrot.lane.b32.xlu1 %v4267_v9, %s4536_s12 }
 0x556   :  { %404 = vrot.lane.b32.xlu1 %v4622_v40, %s4535_s11 }
 0x5c4   :  { %v4269_v21 = vpop.permute.xlu1 %4268 }
 0x5c5   :  { %v4271_v10 = vunpack.i.h.bf16 %v4269_v21  ;;  %v4270_v11 = vunpack.i.l.bf16 %v4269_v21 }
 0x5c7   :  { %v395_v12 = vsel %vm139_vm2, %v257_v0, %v4271_v10  ;;  %v394_v13 = vsel %vm139_vm2, %v254_v62, %v4270_v11  ;;  %v4304_v0 = vld [vmem:[%s5501_s2 + $0x8] ss:$12 sps:$4 sm:$0xff]  }
 0x5c8   :  { %v396_v14 = vpack.c.bf16 %v395_v12, %v394_v13  ;;  %v405_v15 = vpop.permute.xlu1 %404 }
 0x5ca   :  { %3959 = vmatmul.mubr.msk.bf16.vlgmr.msra.gmra.mxu1 %vm26_vm0, %v396_v14 }
 0x5cb   :  { %3974 = vmatprep.mubr.msk.bf16.mxu1 %vm4530_vm1, %v4529_v20  ;;  %3971 = vmatpush3.bf16.xpose.msra.mxu1 %v4303_v63  ;;  %v4759_v63 = vld [vmem:[%s5501_s2 + $0x30] ss:$12 sps:$4 sm:$0xff]  }
 0x5cc   :  { %3972 = vmatprep.subr.bf16.mxu1 %v4529_v20 }
 0x5d3   :  { %3973 = vmatpush3.bf16.xpose.msra.mxu1 %v4304_v0 }
 0x5d4   :  { %3992 = vmatprep.subr.bf16.mxu1 %v4529_v20 }
 0x68a   :  { %v444_v16 = vpop.f32.mrf.mxu1 }
 0x68b   :  { %v445_v17 = vadd.f32 %v444_v16, %v405_v15 }
 0x68c   :  { %v3960_v18 = vpop.f32.mrf.mxu1 }
 0x68d   :  { %v451_v22 = vadd.f32 %v445_v17, %v4605_v35 }
 0x68e   :  { %v447_v40 = vpop.f32.mrf.mxu1 }
 0x68f   :  { %v448_v23 = vadd.f32 %v447_v40, %v405_v15  ;;  %v453_v24 = vsel %vm26_vm0, %v451_v22, 0.0 }
 0x690   :  { %454 = vadd.xlane.f32.xlu0 %v453_v24  ;;  %v3961_v25 = vpop.f32.mrf.mxu1 }
 0x691   :  { %v452_v26 = vadd.f32 %v448_v23, %v4607_v36 }
 0x693   :  { %v456_v27 = vsel %vm26_vm0, %v452_v26, 0.0 }
 0x694   :  { %457 = vadd.xlane.f32.xlu1 %v456_v27 }
 0x719   :  { %v455_v28 = vpop.xlane.xlu0 %454 }
 0x71a   :  { %v459_v29 = vmul.f32 0.03125, %v455_v28 }
 0x71c   :  { %v461_v30 = vsub.f32 %v451_v22, %v459_v29 }
 0x71d   :  { %v458_v31 = vpop.xlane.xlu1 %457 }
 0x71e   :  { %v460_v32 = vmul.f32 0.03125, %v458_v31  ;;  %v463_v33 = vmul.f32 %v461_v30, %v461_v30  ;;  %v4739_v31 = vsub.s32 4, %v4570_v5 }
 0x720   :  { %v462_v34 = vsub.f32 %v452_v26, %v460_v32  ;;  %v465_v39 = vsel %vm26_vm0, %v463_v33, 0.0  ;;  %v570_v32 = vrot.slane %v4575_v6, %v4739_v31 }
 0x721   :  { %466 = vadd.xlane.f32.xlu0 %v465_v39 }
 0x722   :  { %v464_v41 = vmul.f32 %v462_v34, %v462_v34 }
 0x724   :  { %v468_v42 = vsel %vm26_vm0, %v464_v41, 0.0 }
 0x725   :  { %469 = vadd.xlane.f32.xlu0 %v468_v42 }
 0x73b   :  { %486 = vrot.lane.b32.xlu0 %v4712_v44, %s4528_s0 }
 0x73f   :  { %657 = vrot.lane.b32.xlu0 %v4712_v44, %s4535_s11 }
 0x7aa   :  { %v467_v45 = vpop.xlane.xlu0 %466 }
 0x7ab   :  { %v471_v47 = vmul.f32 0.03125, %v467_v45 }
 0x7ad   :  { %v473_v48 = vadd.f32 1e-12, %v471_v47 }
 0x7ae   :  { %v470_v49 = vpop.xlane.xlu0 %469 }
 0x7af   :  { %4365 = vrsqrt.f32 %v473_v48  ;;  %v472_v50 = vmul.f32 0.03125, %v470_v49 }
 0x7b1   :  { %v474_v51 = vadd.f32 1e-12, %v472_v50 }
 0x7b2   :  { %v487_v57 = vpop.permute.xlu0 %486 }
 0x7b3   :  { %4367 = vrsqrt.f32 %v474_v51 }
 0x7bc   :  { %v4366_v52 = vpop.eup %4365 }
 0x7bd   :  { %v477_v46 = vmul.f32 %v4366_v52, %v461_v30 }
 0x7bf   :  { %v483_v56 = vmul.f32 %v4712_v44, %v477_v46 }
 0x7c0   :  { %v4368_v54 = vpop.eup %4367 }
 0x7c1   :  { %v478_v55 = vmul.f32 %v4368_v54, %v462_v34  ;;  %v489_v60 = vadd.f32 %v487_v57, %v483_v56 }
 0x7c3   :  { %v484_v59 = vmul.f32 %v4712_v44, %v478_v55 }
 0x7c5   :  { %v490_v61 = vadd.f32 %v487_v57, %v484_v59 }
 0x7c7   :  { %v491_v62 = vpack.c.bf16 %v490_v61, %v489_v60 }
 0x7c9   :  { %3967 = vmatmul.mubr.msk.bf16.vlgmr.msra.gmra.mxu0 %vm26_vm0, %v491_v62 }
 0x7ca   :  { %3982 = vmatprep.mubr.msk.bf16.mxu0 %vm4530_vm1, %v4529_v20 }
 0x889   :  { %v541_v3 = vpop.f32.mrf.mxu0 }
 0x88a   :  { %v542_v4 = vadd.f32 %v541_v3, %v495_v2 }
 0x88b   :  { %v3968_v8 = vpop.f32.mrf.mxu0 }
 0x88c   :  { %v550_v9 = vmul.f32 %v542_v4, %v542_v4  ;;  %v548_v25 = vmul.f32 0.5, %v542_v4 }
 0x88d   :  { %v544_v19 = vpop.f32.mrf.mxu0 }
 0x88e   :  { %v552_v21 = vmul.f32 %v550_v9, %v542_v4  ;;  %v545_v10 = vadd.f32 %v544_v19, %v495_v2 }
 0x88f   :  { %v3969_v11 = vpop.f32.mrf.mxu0 }
 0x890   :  { %v554_v12 = vmul.f32 0.044715, %v552_v21  ;;  %v551_v13 = vmul.f32 %v545_v10, %v545_v10  ;;  %v549_v26 = vmul.f32 0.5, %v545_v10 }
 0x892   :  { %v556_v14 = vadd.f32 %v554_v12, %v542_v4  ;;  %v553_v15 = vmul.f32 %v551_v13, %v545_v10  ;;  %v658_v13 = vpop.permute.xlu0 %657 }
 0x894   :  { %v558_v16 = vmul.f32 0.7978846, %v556_v14  ;;  %v555_v17 = vmul.f32 0.044715, %v553_v15 }
 0x896   :  { %4369 = vtanh.f32 %v558_v16  ;;  %v557_v18 = vadd.f32 %v555_v17, %v545_v10 }
 0x898   :  { %v559_v22 = vmul.f32 0.7978846, %v557_v18  ;;  %v4773_v18 = vsub.s32 5, %v4570_v5 }
 0x89a   :  { %4371 = vtanh.f32 %v559_v22 }
 0x8a3   :  { %v4370_v40 = vpop.eup %4369 }
 0x8a4   :  { %v562_v23 = vadd.f32 1.0, %v4370_v40  ;;  %v4777_v40 = vrot.slane %v4575_v6, %v4773_v18 }
 0x8a6   :  { %v564_v28 = vmul.f32 %v562_v23, %v548_v25 }
 0x8a7   :  { %v4372_v24 = vpop.eup %4371 }
 0x8a8   :  { %v563_v27 = vadd.f32 1.0, %v4372_v24 }
 0x8aa   :  { %v565_v29 = vmul.f32 %v563_v27, %v549_v26 }
 0x8ac   :  { %v566_v30 = vpack.c.bf16 %v565_v29, %v564_v28 }
 0x8ae   :  { %3975 = vmatmul.mubr.bf16.vlgmr.msra.gmra.mxu1 %v566_v30 }
 0x8af   :  { %3994 = vmatprep.mubr.msk.bf16.mxu1 %vm4530_vm1, %v4529_v20 }
 0x96e   :  { %v617_v33 = vpop.f32.mrf.mxu1 }
 0x96f   :  { %v618_v34 = vadd.f32 %v617_v33, %v570_v32 }
 0x970   :  { %v3976_v39 = vpop.f32.mrf.mxu1 }
 0x971   :  { %v624_v41 = vadd.f32 %v618_v34, %v489_v60 }
 0x972   :  { %v620_v42 = vpop.f32.mrf.mxu1 }
 0x973   :  { %v621_v45 = vadd.f32 %v620_v42, %v570_v32  ;;  %v626_v47 = vsel %vm26_vm0, %v624_v41, 0.0 }
 0x974   :  { %627 = vadd.xlane.f32.xlu1 %v626_v47  ;;  %v3977_v48 = vpop.f32.mrf.mxu1 }
 0x975   :  { %v625_v49 = vadd.f32 %v621_v45, %v490_v61  ;;  %v4752_v61 = vld [vmem:[%s5501_s2 + $0x48] ss:$12 sps:$4 sm:$0xff]  }
 0x976   :  { %3979 = vmatpush3.bf16.msra.mxu0 %v4752_v61 }
 0x977   :  { %v629_v50 = vsel %vm26_vm0, %v625_v49, 0.0  ;;  %3980 = vmatprep.subr.bf16.mxu0 %v4529_v20 }
 0x978   :  { %630 = vadd.xlane.f32.xlu1 %v629_v50 }
 0x97a   :  { %3981 = vmatpush3.bf16.msra.mxu0 %v4759_v63 }
 0x97b   :  { %3986 = vmatprep.subr.bf16.mxu0 %v4529_v20 }
 0x9fd   :  { %v628_v51 = vpop.xlane.xlu1 %627 }
 0x9fe   :  { %v632_v52 = vmul.f32 0.03125, %v628_v51 }
 0xa00   :  { %v634_v46 = vsub.f32 %v624_v41, %v632_v52 }
 0xa01   :  { %v631_v54 = vpop.xlane.xlu1 %630 }
 0xa02   :  { %v633_v55 = vmul.f32 0.03125, %v631_v54  ;;  %v636_v56 = vmul.f32 %v634_v46, %v634_v46 }
 0xa04   :  { %v635_v57 = vsub.f32 %v625_v49, %v633_v55  ;;  %v638_v59 = vsel %vm26_vm0, %v636_v56, 0.0 }
 0xa05   :  { %639 = vadd.xlane.f32.xlu1 %v638_v59 }
 0xa06   :  { %v637_v60 = vmul.f32 %v635_v57, %v635_v57 }
 0xa08   :  { %v641_v62 = vsel %vm26_vm0, %v637_v60, 0.0 }
 0xa09   :  { %642 = vadd.xlane.f32.xlu1 %v641_v62 }
 0xa1a   :  { %652 = vrot.lane.b32.xlu1 %v4712_v44, %s4534_s6 }
 0xa8e   :  { %v640_v0 = vpop.xlane.xlu1 %639 }
 0xa8f   :  { %v644_v44 = vmul.f32 0.03125, %v640_v0 }
 0xa91   :  { %v646_v2 = vadd.f32 1e-12, %v644_v44 }
 0xa92   :  { %v643_v3 = vpop.xlane.xlu1 %642 }
 0xa93   :  { %4373 = vrsqrt.f32 %v646_v2  ;;  %v645_v4 = vmul.f32 0.03125, %v643_v3 }
 0xa95   :  { %v647_v8 = vadd.f32 1e-12, %v645_v4 }
 0xa96   :  { %v653_v21 = vpop.permute.xlu1 %652 }
 0xa97   :  { %4375 = vrsqrt.f32 %v647_v8 }
 0xaa0   :  { %v4374_v9 = vpop.eup %4373 }
 0xaa1   :  { %v650_v19 = vmul.f32 %v4374_v9, %v634_v46 }
 0xaa3   :  { %v655_v12 = vmul.f32 %v653_v21, %v650_v19 }
 0xaa4   :  { %v4376_v10 = vpop.eup %4375 }
 0xaa5   :  { %v651_v11 = vmul.f32 %v4376_v10, %v635_v57  ;;  %v4763_v15 = vadd.f32 %v658_v13, %v655_v12 }
 0xaa7   :  { %v656_v14 = vmul.f32 %v653_v21, %v651_v11 }
 0xaa9   :  { %v4765_v16 = vadd.f32 %v658_v13, %v656_v14 }
 0xaab   :  { %v671_v17 = vpack.c.bf16 %v4765_v16, %v4763_v15 }
 0xaad   :  { %3983 = vmatmul.mubr.msk.bf16.vlgmr.msra.gmra.mxu0 %vm26_vm0, %v671_v17 }
 0xaae   :  { %3988 = vmatprep.mubr.msk.bf16.mxu0 %vm4530_vm1, %v4529_v20 }
 0xb6d   :  { %v725_v22 = vpop.f32.mrf.mxu0 }
 0xb6e   :  { %v726_v25 = vadd.f32 %v725_v22, %v4777_v40 }
 0xb6f   :  { %v3984_v23 = vpop.f32.mrf.mxu0 }
 0xb71   :  { %v728_v24 = vpop.f32.mrf.mxu0 }
 0xb72   :  { %v729_v26 = vadd.f32 %v728_v24, %v4777_v40 }
 0xb73   :  { %v3985_v27 = vpop.f32.mrf.mxu0 }
 0xb74   :  { %v4781_v28 = vpack.c.bf16 %v729_v26, %v726_v25 }
 0xb76   :  { %857 = vrot.lane.b32.xlu1 %v4781_v28, %s4532_s26  ;;  %734 = vrot.lane.b32.xlu0 %v4781_v28, %s4528_s0 }
 0xb7a   :  { %859 = vrot.lane.b32.xlu0 %v4781_v28, %s4531_s25 }
 0xbe8   :  { %v735_v6 = vpop.permute.xlu0 %734  ;;  %v858_v33 = vpop.permute.xlu1 %857 }
 0xbe9   :  { %v740_v29 = vsel %vm139_vm2, %v735_v6, 0 }
 0xbea   :  { %3987 = vmatpush3.bf16.xpose.msra.mxu0 %v740_v29 }
 0xbeb   :  { %3998 = vmatprep.subr.bf16.mxu0 %v4529_v20 }
 0xbec   :  { %v860_v30 = vpop.permute.xlu0 %859 }
 0xbed   :  { %v865_v32 = vsel %vm139_vm2, %v860_v30, 0 }
 0xbf1   :  { %3989 = vmatmul.mubr.msk.bf16.vlgmr.msra.gmra.mxu0 %vm139_vm2, %v4781_v28 }
 0xbf2   :  { %3999 = vmatpush3.bf16.xpose.msra.mxu0 %v865_v32  ;;  %4000 = vmatprep.mubr.msk.bf16.mxu0 %vm4530_vm1, %v4529_v20 }
 0xbf3   :  { %4010 = vmatprep.subr.bf16.mxu0 %v4529_v20 }
 0xbf9   :  { %4001 = vmatmul.mubr.msk.bf16.vlgmr.msra.gmra.mxu0 %vm139_vm2, %v858_v33 }
 0xbfa   :  { %4014 = vmatprep.mubr.msk.bf16.mxu0 %vm4530_vm1, %v4529_v20 }
 0xcb1   :  { %v776_v34 = vpop.f32.mrf.mxu0 }
 0xcb2   :  { %v783_v39 = vmul.f32 0.25, %v776_v34 }
 0xcb3   :  { %v3990_v41 = vpop.f32.mrf.mxu0 }
 0xcb4   :  { %v785_v42 = vadd.f32 %v783_v39, %v4648_v53 }
 0xcb5   :  { %v779_v45 = vpop.f32.mrf.mxu0 }
 0xcb6   :  { %v784_v47 = vmul.f32 0.25, %v779_v45  ;;  %v787_v48 = vsel %vm139_vm2, %v785_v42, -inf }
 0xcb7   :  { %788 = vmax.xlane.f32.xlu0 %v787_v48  ;;  %v3991_v49 = vpop.f32.mrf.mxu0 }
 0xcb8   :  { %v786_v50 = vadd.f32 %v784_v47, %v4654_v58 }
 0xcb9   :  { %v901_v51 = vpop.f32.mrf.mxu0 }
 0xcba   :  { %v908_v52 = vmul.f32 0.25, %v901_v51  ;;  %v790_v46 = vsel %vm139_vm2, %v786_v50, -inf }
 0xcbb   :  { %791 = vmax.xlane.f32.xlu1 %v790_v46  ;;  %v4002_v54 = vpop.f32.mrf.mxu0 }
 0xcbc   :  { %v910_v55 = vadd.f32 %v908_v52, %v4648_v53 }
 0xcbd   :  { %v904_v56 = vpop.f32.mrf.mxu0 }
 0xcbe   :  { %v909_v57 = vmul.f32 0.25, %v904_v56  ;;  %v912_v59 = vsel %vm139_vm2, %v910_v55, -inf }
 0xcbf   :  { %913 = vmax.xlane.f32.xlu0 %v912_v59  ;;  %v4003_v60 = vpop.f32.mrf.mxu0 }
 0xcc0   :  { %v911_v62 = vadd.f32 %v909_v57, %v4654_v58 }
 0xcc2   :  { %v915_v0 = vsel %vm139_vm2, %v911_v62, -inf }
 0xcc3   :  { %916 = vmax.xlane.f32.xlu0 %v915_v0 }
 0xd40   :  { %v789_v44 = vpop.xlane.xlu0 %788 }
 0xd41   :  { %v793_v2 = vsub.f32 %v785_v42, %v789_v44 }
 0xd43   :  { %v795_v3 = vmul.f32 1.442695, %v793_v2 }
 0xd44   :  { %v792_v4 = vpop.xlane.xlu1 %791 }
 0xd45   :  { %4377 = vpow2.f32 %v795_v3  ;;  %v794_v8 = vsub.f32 %v786_v50, %v792_v4 }
 0xd47   :  { %v797_v9 = vmul.f32 1.442695, %v794_v8 }
 0xd48   :  { %v914_v19 = vpop.xlane.xlu0 %913 }
 0xd49   :  { %4379 = vpow2.f32 %v797_v9  ;;  %v918_v53 = vsub.f32 %v910_v55, %v914_v19 }
 0xd4b   :  { %v920_v21 = vmul.f32 1.442695, %v918_v53 }
 0xd4c   :  { %v917_v10 = vpop.xlane.xlu0 %916 }
 0xd4d   :  { %4381 = vpow2.f32 %v920_v21  ;;  %v919_v11 = vsub.f32 %v911_v62, %v917_v10 }
 0xd4f   :  { %v922_v12 = vmul.f32 1.442695, %v919_v11 }
 0xd51   :  { %4383 = vpow2.f32 %v922_v12 }
 0xd52   :  { %v4378_v58 = vpop.eup %4377 }
 0xd53   :  { %v799_v13 = vsel %vm139_vm2, %v4378_v58, 0.0 }
 0xd54   :  { %800 = vadd.xlane.f32.xlu0 %v799_v13 }
 0xd56   :  { %v4380_v14 = vpop.eup %4379 }
 0xd57   :  { %v802_v17 = vsel %vm139_vm2, %v4380_v14, 0.0 }
 0xd58   :  { %803 = vadd.xlane.f32.xlu1 %v802_v17 }
 0xd5a   :  { %v4382_v22 = vpop.eup %4381 }
 0xd5b   :  { %v924_v23 = vsel %vm139_vm2, %v4382_v22, 0.0 }
 0xd5c   :  { %925 = vadd.xlane.f32.xlu0 %v924_v23 }
 0xd5e   :  { %v4384_v24 = vpop.eup %4383 }
 0xd5f   :  { %v927_v25 = vsel %vm139_vm2, %v4384_v24, 0.0 }
 0xd60   :  { %928 = vadd.xlane.f32.xlu1 %v927_v25 }
 0xd71   :  { %935 = vrot.lane.b32.xlu1 %v4781_v28, %s4533_s5 }
 0xd72   :  { %810 = vrot.lane.b32.xlu0 %v4781_v28, %s4534_s6 }
 0xd75   :  { %995 = vrot.lane.b32.xlu1 %v4752_v61, %s4535_s11 }
 0xd76   :  { %993 = vrot.lane.b32.xlu0 %v4759_v63, %s4535_s11 }
 0xddd   :  { %v801_v26 = vpop.xlane.xlu0 %800 }
 0xdde   :  { %4385 = vrcp.f32 %v801_v26 }
 0xde1   :  { %v804_v27 = vpop.xlane.xlu1 %803 }
 0xde2   :  { %4387 = vrcp.f32 %v804_v27 }
 0xde5   :  { %v926_v6 = vpop.xlane.xlu0 %925 }
 0xde6   :  { %4389 = vrcp.f32 %v926_v6  ;;  %v4845_v6 = vsub.s32 6, %v4570_v5 }
 0xde9   :  { %v929_v29 = vpop.xlane.xlu1 %928  ;;  %v811_v30 = vpop.permute.xlu0 %810 }
 0xdea   :  { %4391 = vrcp.f32 %v929_v29  ;;  %3993 = vmatpush3.bf16.msra.mxu1 %v811_v30  ;;  %v4309_v30 = vld [vmem:[%s5501_s2 + $0x4c] ss:$12 sps:$4 sm:$0xff]  }
 0xdeb   :  { %4004 = vmatprep.subr.bf16.mxu1 %v4529_v20  ;;  %v4386_v32 = vpop.eup %4385 }
 0xdec   :  { %v807_v33 = vmul.f32 %v4386_v32, %v4378_v58  ;;  %v4310_v32 = vld [vmem:[%s5501_s2 + $0x34] ss:$12 sps:$4 sm:$0xff]  }
 0xded   :  { %v936_v39 = vpop.permute.xlu1 %935  ;;  %v994_v52 = vpop.permute.xlu0 %993 }
 0xdef   :  { %v4388_v28 = vpop.eup %4387 }
 0xdf0   :  { %v808_v34 = vmul.f32 %v4388_v28, %v4380_v14 }
 0xdf1   :  { %v996_v48 = vpop.permute.xlu1 %995 }
 0xdf2   :  { %v809_v61 = vpack.c.bf16 %v808_v34, %v807_v33  ;;  %4011 = vmatpush3.bf16.msra.mxu0 %v996_v48 }
 0xdf3   :  { %v4390_v63 = vpop.eup %4389  ;;  %4012 = vmatprep.subr.bf16.mxu0 %v4529_v20 }
 0xdf4   :  { %3995 = vmatmul.mubr.msk.bf16.vlgmr.msra.gmra.mxu1 %vm139_vm2, %v809_v61  ;;  %v932_v42 = vmul.f32 %v4390_v63, %v4382_v22 }
 0xdf5   :  { %4005 = vmatpush3.bf16.msra.mxu1 %v936_v39  ;;  %4006 = vmatprep.mubr.msk.bf16.mxu1 %vm4530_vm1, %v4529_v20 }
 0xdf6   :  { %4018 = vmatprep.subr.bf16.mxu1 %v4529_v20  ;;  %4013 = vmatpush3.bf16.msra.mxu0 %v994_v52 }
 0xdf7   :  { %v4392_v41 = vpop.eup %4391  ;;  %4026 = vmatprep.subr.bf16.mxu0 %v4529_v20 }
 0xdf8   :  { %v933_v45 = vmul.f32 %v4392_v41, %v4384_v24 }
 0xdfa   :  { %v934_v47 = vpack.c.bf16 %v933_v45, %v932_v42 }
 0xdfc   :  { %4007 = vmatmul.mubr.msk.bf16.vlgmr.msra.gmra.mxu1 %vm139_vm2, %v934_v47 }
 0xdfd   :  { %4022 = vmatprep.mubr.msk.bf16.mxu1 %vm4530_vm1, %v4529_v20  ;;  %4019 = vmatpush3.bf16.msra.mxu1 %v4309_v30 }
 0xdfe   :  { %4020 = vmatprep.subr.bf16.mxu1 %v4529_v20 }
 0xe01   :  { %4021 = vmatpush3.bf16.msra.mxu1 %v4310_v32 }
 0xe02   :  { %4034 = vmatprep.subr.bf16.mxu1 %v4529_v20 }
 0xeb4   :  { %v850_v49 = vpop.f32.mrf.mxu1 }
 0xeb6   :  { %v3996_v50 = vpop.f32.mrf.mxu1 }
 0xeb8   :  { %v853_v51 = vpop.f32.mrf.mxu1 }
 0xeba   :  { %v3997_v46 = vpop.f32.mrf.mxu1 }
 0xebb   :  { %v4872_v46 = vld [vmem:[%s5501_s2 + $0x78] ss:$12 sps:$4 sm:$0xff]  }
 0xebc   :  { %v975_v54 = vpop.f32.mrf.mxu1 }
 0xebe   :  { %v4008_v55 = vpop.f32.mrf.mxu1 }
 0xebf   :  { %v4881_v55 = vld [vmem:[%s5501_s2 + $0x60] ss:$12 sps:$4 sm:$0xff]  }
 0xec0   :  { %v978_v56 = vpop.f32.mrf.mxu1 }
 0xec1   :  { %v4272_v57 = vpack.i.bf16 %v978_v56, %v975_v54  ;;  %v4315_v56 = vld [vmem:[%s5501_s2 + $0x50] ss:$12 sps:$4 sm:$0xff]  }
 0xec2   :  { %v4009_v59 = vpop.f32.mrf.mxu1 }
 0xec3   :  { %4273 = vrot.lane.b32.xlu1 %v4272_v57, %s4536_s12  ;;  %v4316_v57 = vld [vmem:[%s5501_s2 + $0x38] ss:$12 sps:$4 sm:$0xff]   ;;  %v4901_v59 = vsub.s32 7, %v4570_v5 }
 0xec7   :  { %1000 = vrot.lane.b32.xlu1 %v4777_v40, %s4535_s11 }
 0xf35   :  { %v4274_v60 = vpop.permute.xlu1 %4273 }
 0xf36   :  { %v4276_v62 = vunpack.i.h.bf16 %v4274_v60  ;;  %v4275_v0 = vunpack.i.l.bf16 %v4274_v60 }
 0xf38   :  { %v991_v44 = vsel %vm139_vm2, %v853_v51, %v4276_v62  ;;  %v990_v2 = vsel %vm139_vm2, %v850_v49, %v4275_v0 }
 0xf39   :  { %v992_v3 = vpack.c.bf16 %v991_v44, %v990_v2  ;;  %v1001_v4 = vpop.permute.xlu1 %1000 }
 0xf3b   :  { %4015 = vmatmul.mubr.msk.bf16.vlgmr.msra.gmra.mxu0 %vm26_vm0, %v992_v3 }
 0xf3c   :  { %4030 = vmatprep.mubr.msk.bf16.mxu0 %vm4530_vm1, %v4529_v20  ;;  %4027 = vmatpush3.bf16.xpose.msra.mxu0 %v4315_v56 }
 0xf3d   :  { %4028 = vmatprep.subr.bf16.mxu0 %v4529_v20 }
 0xf44   :  { %4029 = vmatpush3.bf16.xpose.msra.mxu0 %v4316_v57  ;;  %v4943_v57 = vld [vmem:[%s5502_s1] sm:$0xff] }
 0xf45   :  { %4048 = vmatprep.subr.bf16.mxu0 %v4529_v20 }
 0xffb   :  { %v1040_v8 = vpop.f32.mrf.mxu0 }
 0xffc   :  { %v1041_v9 = vadd.f32 %v1040_v8, %v1001_v4 }
 0xffd   :  { %v4016_v19 = vpop.f32.mrf.mxu0 }
 0xffe   :  { %v1047_v53 = vadd.f32 %v1041_v9, %v4763_v15  ;;  %v4907_v9 = vld [vmem:[%s5500_s3 + $0x8] sm:$0xff] }
 0xfff   :  { %v1043_v40 = vpop.f32.mrf.mxu0 }
0x1000   :  { %v1044_v21 = vadd.f32 %v1043_v40, %v1001_v4  ;;  %v1049_v10 = vsel %vm26_vm0, %v1047_v53, 0.0 }
0x1001   :  { %1050 = vadd.xlane.f32.xlu0 %v1049_v10  ;;  %v4017_v11 = vpop.f32.mrf.mxu0  ;;  %v4911_v10 = vrot.slane %v4907_v9, %v4618_v38 }
0x1002   :  { %v1048_v12 = vadd.f32 %v1044_v21, %v4765_v16  ;;  %v4521_v16 = vld [vmem:[%s5500_s3] sm:$0xff] }
0x1003   :  { %v4851_v29 = vrot.slane %v4521_v16, %v4845_v6 }
0x1004   :  { %v1052_v58 = vsel %vm26_vm0, %v1048_v12, 0.0 }
0x1005   :  { %1053 = vadd.xlane.f32.xlu1 %v1052_v58 }
0x108a   :  { %v1051_v13 = vpop.xlane.xlu0 %1050 }
0x108b   :  { %v1055_v14 = vmul.f32 0.03125, %v1051_v13 }
0x108d   :  { %v1057_v17 = vsub.f32 %v1047_v53, %v1055_v14 }
0x108e   :  { %v1054_v22 = vpop.xlane.xlu1 %1053 }
0x108f   :  { %v1056_v23 = vmul.f32 0.03125, %v1054_v22  ;;  %v1059_v24 = vmul.f32 %v1057_v17, %v1057_v17 }
0x1091   :  { %v1058_v25 = vsub.f32 %v1048_v12, %v1056_v23  ;;  %v1061_v15 = vsel %vm26_vm0, %v1059_v24, 0.0 }
0x1092   :  { %1062 = vadd.xlane.f32.xlu0 %v1061_v15 }
0x1093   :  { %v1060_v26 = vmul.f32 %v1058_v25, %v1058_v25 }
0x1095   :  { %v1064_v27 = vsel %vm26_vm0, %v1060_v26, 0.0 }
0x1096   :  { %1065 = vadd.xlane.f32.xlu0 %v1064_v27 }
0x10ac   :  { %1082 = vrot.lane.b32.xlu0 %v4851_v29, %s4528_s0 }
0x111b   :  { %v1063_v28 = vpop.xlane.xlu0 %1062 }
0x111c   :  { %v1067_v33 = vmul.f32 0.03125, %v1063_v28 }
0x111e   :  { %v1069_v34 = vadd.f32 1e-12, %v1067_v33 }
0x111f   :  { %v1066_v61 = vpop.xlane.xlu0 %1065 }
0x1120   :  { %4393 = vrsqrt.f32 %v1069_v34  ;;  %v1068_v39 = vmul.f32 0.03125, %v1066_v61 }
0x1122   :  { %v1070_v63 = vadd.f32 1e-12, %v1068_v39 }
0x1123   :  { %v1083_v49 = vpop.permute.xlu0 %1082 }
0x1124   :  { %4395 = vrsqrt.f32 %v1070_v63 }
0x112d   :  { %v4394_v41 = vpop.eup %4393 }
0x112e   :  { %v1073_v42 = vmul.f32 %v4394_v41, %v1057_v17 }
0x1130   :  { %v1079_v48 = vmul.f32 %v4851_v29, %v1073_v42 }
0x1131   :  { %v4396_v45 = vpop.eup %4395 }
0x1132   :  { %v1074_v47 = vmul.f32 %v4396_v45, %v1058_v25  ;;  %v4865_v51 = vadd.f32 %v1083_v49, %v1079_v48 }
0x1134   :  { %v1080_v50 = vmul.f32 %v4851_v29, %v1074_v47 }
0x1136   :  { %v4867_v52 = vadd.f32 %v1083_v49, %v1080_v50 }
0x1138   :  { %v1087_v54 = vpack.c.bf16 %v4867_v52, %v4865_v51 }
0x113a   :  { %4023 = vmatmul.mubr.msk.bf16.vlgmr.msra.gmra.mxu1 %vm26_vm0, %v1087_v54 }
0x113b   :  { %4035 = vmatpush3.bf16.msra.mxu1 %v4872_v46  ;;  %4038 = vmatprep.mubr.msk.bf16.mxu1 %vm4530_vm1, %v4529_v20 }
0x113c   :  { %4036 = vmatprep.subr.bf16.mxu1 %v4529_v20 }
0x113f   :  { %4037 = vmatpush3.bf16.msra.mxu1 %v4881_v55 }
0x1140   :  { %4042 = vmatprep.subr.bf16.mxu1 %v4529_v20 }
0x1142   :  { %4039 = vmatmul.mubr.msk.bf16.vlgmr.msra.gmra.mxu1 %vm26_vm0, %v4611_v37  ;;  %v1091_v37 = vrot.slane %v4521_v16, %v4901_v59 }
0x1143   :  { %4044 = vmatprep.mubr.msk.bf16.mxu1 %vm4530_vm1, %v4529_v20 }
0x11fa   :  { %v1137_v60 = vpop.f32.mrf.mxu1 }
0x11fb   :  { %v1138_v62 = vadd.f32 %v1137_v60, %v1091_v37 }
0x11fc   :  { %v4024_v0 = vpop.f32.mrf.mxu1 }
0x11fd   :  { %v1146_v44 = vmul.f32 %v1138_v62, %v1138_v62  ;;  %v1144_v16 = vmul.f32 0.5, %v1138_v62 }
0x11fe   :  { %v1140_v2 = vpop.f32.mrf.mxu1 }
0x11ff   :  { %v1148_v3 = vmul.f32 %v1146_v44, %v1138_v62  ;;  %v1141_v4 = vadd.f32 %v1140_v2, %v1091_v37  ;;  %v4950_v2 = vld [vmem:[%s5502_s1 + $0x8] sm:$0xff] }
0x1200   :  { %v4025_v8 = vpop.f32.mrf.mxu1 }
0x1201   :  { %v1150_v19 = vmul.f32 0.044715, %v1148_v3  ;;  %v1147_v53 = vmul.f32 %v1141_v4, %v1141_v4  ;;  %v1145_v30 = vmul.f32 0.5, %v1141_v4 }
0x1202   :  { %v1317_v40 = vpop.f32.mrf.mxu1 }
0x1203   :  { %v1152_v5 = vadd.f32 %v1150_v19, %v1138_v62  ;;  %v1149_v21 = vmul.f32 %v1147_v53, %v1141_v4  ;;  %v1318_v17 = vadd.f32 %v1317_v40, %v4911_v10 }
0x1204   :  { %v4040_v11 = vpop.f32.mrf.mxu1 }
0x1205   :  { %v1154_v12 = vmul.f32 0.7978846, %v1152_v5  ;;  %v1151_v58 = vmul.f32 0.044715, %v1149_v21 }
0x1206   :  { %v1320_v13 = vpop.f32.mrf.mxu1 }
0x1207   :  { %4397 = vtanh.f32 %v1154_v12  ;;  %v1153_v14 = vadd.f32 %v1151_v58, %v1141_v4  ;;  %v1321_v22 = vadd.f32 %v1320_v13, %v4911_v10 }
0x1208   :  { %v4041_v23 = vpop.f32.mrf.mxu1 }
0x1209   :  { %v1155_v24 = vmul.f32 0.7978846, %v1153_v14  ;;  %v4915_v25 = vpack.c.bf16 %v1321_v22, %v1318_v17 }
0x120b   :  { %4399 = vtanh.f32 %v1155_v24  ;;  %1326 = vrot.lane.b32.xlu1 %v4915_v25, %s4528_s0 }
0x120f   :  { %1451 = vrot.lane.b32.xlu1 %v4915_v25, %s4531_s25 }
0x1213   :  { %1449 = vrot.lane.b32.xlu1 %v4915_v25, %s4532_s26 }
0x1214   :  { %v4398_v15 = vpop.eup %4397 }
0x1215   :  { %v1158_v26 = vadd.f32 1.0, %v4398_v15 }
0x1217   :  { %v1160_v28 = vmul.f32 %v1158_v26, %v1144_v16 }
0x1218   :  { %v4400_v27 = vpop.eup %4399 }
0x1219   :  { %v1159_v32 = vadd.f32 1.0, %v4400_v27 }
0x121b   :  { %v1161_v33 = vmul.f32 %v1159_v32, %v1145_v30 }
0x121d   :  { %v1162_v34 = vpack.c.bf16 %v1161_v33, %v1160_v28 }
0x121f   :  { %4031 = vmatmul.mubr.bf16.vlgmr.msra.gmra.mxu0 %v1162_v34 }
0x1220   :  { %4050 = vmatprep.mubr.msk.bf16.mxu0 %vm4530_vm1, %v4529_v20 }
0x127d   :  { %v1327_v61 = vpop.permute.xlu1 %1326 }
0x127e   :  { %v1332_v39 = vsel %vm139_vm2, %v1327_v61, 0 }
0x127f   :  { %4043 = vmatpush3.bf16.xpose.msra.mxu1 %v1332_v39 }
0x1280   :  { %4054 = vmatprep.subr.bf16.mxu1 %v4529_v20 }
0x1281   :  { %v1452_v63 = vpop.permute.xlu1 %1451 }
0x1282   :  { %v1457_v41 = vsel %vm139_vm2, %v1452_v63, 0 }
0x1285   :  { %v1450_v42 = vpop.permute.xlu1 %1449 }
0x1286   :  { %4045 = vmatmul.mubr.msk.bf16.vlgmr.msra.gmra.mxu1 %vm139_vm2, %v4915_v25 }
0x1287   :  { %4055 = vmatpush3.bf16.xpose.msra.mxu1 %v1457_v41  ;;  %4056 = vmatprep.mubr.msk.bf16.mxu1 %vm4530_vm1, %v4529_v20 }
0x1288   :  { %4066 = vmatprep.subr.bf16.mxu1 %v4529_v20 }
0x128e   :  { %4057 = vmatmul.mubr.msk.bf16.vlgmr.msra.gmra.mxu1 %vm139_vm2, %v1450_v42 }
0x128f   :  { %4070 = vmatprep.mubr.msk.bf16.mxu1 %vm4530_vm1, %v4529_v20 }
0x12df   :  { %v4936_v45 = vpop.f32.mrf.mxu0 }
0x12e1   :  { %v4032_v47 = vpop.f32.mrf.mxu0 }
0x12e3   :  { %v4938_v48 = vpop.f32.mrf.mxu0 }
0x12e5   :  { %v4033_v49 = vpop.f32.mrf.mxu0 }
0x1346   :  { %v1368_v50 = vpop.f32.mrf.mxu1 }
0x1347   :  { %v1375_v54 = vmul.f32 0.25, %v1368_v50 }
0x1348   :  { %v4046_v56 = vpop.f32.mrf.mxu1 }
0x1349   :  { %v1377_v37 = vadd.f32 %v4943_v57, %v1375_v54 }
0x134a   :  { %v1371_v60 = vpop.f32.mrf.mxu1 }
0x134b   :  { %v1376_v62 = vmul.f32 0.25, %v1371_v60  ;;  %v1379_v0 = vsel %vm139_vm2, %v1377_v37, -inf }
0x134c   :  { %1380 = vmax.xlane.f32.xlu0 %v1379_v0  ;;  %v4047_v44 = vpop.f32.mrf.mxu1 }
0x134d   :  { %v1378_v3 = vadd.f32 %v4950_v2, %v1376_v62 }
0x134e   :  { %v1493_v4 = vpop.f32.mrf.mxu1 }
0x134f   :  { %v1500_v8 = vmul.f32 0.25, %v1493_v4  ;;  %v1382_v19 = vsel %vm139_vm2, %v1378_v3, -inf }
0x1350   :  { %1383 = vmax.xlane.f32.xlu1 %v1382_v19  ;;  %v4058_v53 = vpop.f32.mrf.mxu1 }
0x1351   :  { %v1502_v40 = vadd.f32 %v4943_v57, %v1500_v8 }
0x1352   :  { %v1496_v5 = vpop.f32.mrf.mxu1 }
0x1353   :  { %v1501_v21 = vmul.f32 0.25, %v1496_v5  ;;  %v1504_v11 = vsel %vm139_vm2, %v1502_v40, -inf }
0x1354   :  { %1505 = vmax.xlane.f32.xlu0 %v1504_v11  ;;  %v4059_v12 = vpop.f32.mrf.mxu1 }
0x1355   :  { %v1503_v58 = vadd.f32 %v4950_v2, %v1501_v21 }
0x1357   :  { %v1507_v13 = vsel %vm139_vm2, %v1503_v58, -inf }
0x1358   :  { %1508 = vmax.xlane.f32.xlu0 %v1507_v13 }
0x13d5   :  { %v1381_v14 = vpop.xlane.xlu0 %1380 }
0x13d6   :  { %v1385_v17 = vsub.f32 %v1377_v37, %v1381_v14 }
0x13d8   :  { %v1387_v22 = vmul.f32 1.442695, %v1385_v17 }
0x13d9   :  { %v1384_v23 = vpop.xlane.xlu1 %1383 }
0x13da   :  { %4401 = vpow2.f32 %v1387_v22  ;;  %v1386_v24 = vsub.f32 %v1378_v3, %v1384_v23 }
0x13dc   :  { %v1389_v15 = vmul.f32 1.442695, %v1386_v24 }
0x13dd   :  { %v1506_v26 = vpop.xlane.xlu0 %1505 }
0x13de   :  { %4403 = vpow2.f32 %v1389_v15  ;;  %v1510_v27 = vsub.f32 %v1502_v40, %v1506_v26 }
0x13e0   :  { %v1512_v16 = vmul.f32 1.442695, %v1510_v27 }
0x13e1   :  { %v1509_v30 = vpop.xlane.xlu0 %1508 }
0x13e2   :  { %4405 = vpow2.f32 %v1512_v16  ;;  %v1511_v32 = vsub.f32 %v1503_v58, %v1509_v30 }
0x13e4   :  { %v1514_v28 = vmul.f32 1.442695, %v1511_v32 }
0x13e6   :  { %4407 = vpow2.f32 %v1514_v28 }
0x13e7   :  { %v4402_v33 = vpop.eup %4401 }
0x13e8   :  { %v1391_v34 = vsel %vm139_vm2, %v4402_v33, 0.0 }
0x13e9   :  { %1392 = vadd.xlane.f32.xlu0 %v1391_v34 }
0x13eb   :  { %v4404_v61 = vpop.eup %4403 }
0x13ec   :  { %v1394_v39 = vsel %vm139_vm2, %v4404_v61, 0.0 }
0x13ed   :  { %1395 = vadd.xlane.f32.xlu1 %v1394_v39 }
0x13ef   :  { %v4406_v63 = vpop.eup %4405 }
0x13f0   :  { %v1516_v41 = vsel %vm139_vm2, %v4406_v63, 0.0 }
0x13f1   :  { %1517 = vadd.xlane.f32.xlu0 %v1516_v41 }
0x13f3   :  { %v4408_v42 = vpop.eup %4407 }
0x13f4   :  { %v1519_v47 = vsel %vm139_vm2, %v4408_v42, 0.0 }
0x13f5   :  { %1520 = vadd.xlane.f32.xlu1 %v1519_v47 }
0x1406   :  { %1527 = vrot.lane.b32.xlu1 %v4915_v25, %s4533_s5 }
0x1407   :  { %1402 = vrot.lane.b32.xlu0 %v4915_v25, %s4534_s6 }
0x140a   :  { %1587 = vrot.lane.b32.xlu1 %v4872_v46, %s4535_s11 }
0x140b   :  { %1585 = vrot.lane.b32.xlu0 %v4881_v55, %s4535_s11 }
0x1472   :  { %v1393_v49 = vpop.xlane.xlu0 %1392 }
0x1473   :  { %4409 = vrcp.f32 %v1393_v49 }
0x1476   :  { %v1396_v50 = vpop.xlane.xlu1 %1395 }
0x1477   :  { %4411 = vrcp.f32 %v1396_v50 }
0x147a   :  { %v1518_v54 = vpop.xlane.xlu0 %1517 }
0x147b   :  { %4413 = vrcp.f32 %v1518_v54 }
0x147e   :  { %v1521_v56 = vpop.xlane.xlu1 %1520  ;;  %v1403_v37 = vpop.permute.xlu0 %1402 }
0x147f   :  { %4415 = vrcp.f32 %v1521_v56  ;;  %4049 = vmatpush3.bf16.msra.mxu0 %v1403_v37 }
0x1480   :  { %4060 = vmatprep.subr.bf16.mxu0 %v4529_v20  ;;  %v4410_v60 = vpop.eup %4409 }
0x1481   :  { %v1399_v62 = vmul.f32 %v4410_v60, %v4402_v33 }
0x1482   :  { %v1528_v44 = vpop.permute.xlu1 %1527  ;;  %v1586_v11 = vpop.permute.xlu0 %1585 }
0x1484   :  { %v4412_v25 = vpop.eup %4411 }
0x1485   :  { %v1400_v0 = vmul.f32 %v4412_v25, %v4404_v61 }
0x1486   :  { %v1588_v53 = vpop.permute.xlu1 %1587 }
0x1487   :  { %v1401_v46 = vpack.c.bf16 %v1400_v0, %v1399_v62  ;;  %4067 = vmatpush3.bf16.msra.mxu1 %v1588_v53  ;;  %v4317_v0 = vld [vmem:[%s5501_s2 + $0x7c] ss:$12 sps:$4 sm:$0xff]  }
0x1488   :  { %v4414_v55 = vpop.eup %4413  ;;  %4068 = vmatprep.subr.bf16.mxu1 %v4529_v20 }
0x1489   :  { %4051 = vmatmul.mubr.msk.bf16.vlgmr.msra.gmra.mxu0 %vm139_vm2, %v1401_v46  ;;  %v1524_v4 = vmul.f32 %v4414_v55, %v4406_v63  ;;  %v4318_v46 = vld [vmem:[%s5501_s2 + $0x64] ss:$12 sps:$4 sm:$0xff]  }
0x148a   :  { %4061 = vmatpush3.bf16.msra.mxu0 %v1528_v44  ;;  %4062 = vmatprep.mubr.msk.bf16.mxu0 %vm4530_vm1, %v4529_v20 }
0x148b   :  { %4074 = vmatprep.subr.bf16.mxu0 %v4529_v20  ;;  %4069 = vmatpush3.bf16.msra.mxu1 %v1586_v11 }
0x148c   :  { %v4416_v3 = vpop.eup %4415  ;;  %4082 = vmatprep.subr.bf16.mxu1 %v4529_v20 }
0x148d   :  { %v1525_v8 = vmul.f32 %v4416_v3, %v4408_v42 }
0x148f   :  { %v1526_v19 = vpack.c.bf16 %v1525_v8, %v1524_v4 }
0x1491   :  { %4063 = vmatmul.mubr.msk.bf16.vlgmr.msra.gmra.mxu0 %vm139_vm2, %v1526_v19 }
0x1492   :  { %4078 = vmatprep.mubr.msk.bf16.mxu0 %vm4530_vm1, %v4529_v20  ;;  %4075 = vmatpush3.bf16.msra.mxu0 %v4317_v0  ;;  %v1758_v0 = vrot.slane %v4907_v9, %v4739_v31 }
0x1493   :  { %4076 = vmatprep.subr.bf16.mxu0 %v4529_v20 }
0x1496   :  { %4077 = vmatpush3.bf16.msra.mxu0 %v4318_v46 }
0x1497   :  { %4090 = vmatprep.subr.bf16.mxu0 %v4529_v20 }
0x1549   :  { %v1442_v40 = vpop.f32.mrf.mxu0 }
0x154b   :  { %v4052_v5 = vpop.f32.mrf.mxu0 }
0x154d   :  { %v1445_v21 = vpop.f32.mrf.mxu0 }
0x154f   :  { %v4053_v12 = vpop.f32.mrf.mxu0 }
0x1551   :  { %v1567_v58 = vpop.f32.mrf.mxu0 }
0x1553   :  { %v4064_v13 = vpop.f32.mrf.mxu0 }
0x1555   :  { %v1570_v14 = vpop.f32.mrf.mxu0 }
0x1556   :  { %v4277_v17 = vpack.i.bf16 %v1570_v14, %v1567_v58 }
0x1557   :  { %v4065_v22 = vpop.f32.mrf.mxu0 }
0x1558   :  { %4278 = vrot.lane.b32.xlu1 %v4277_v17, %s4536_s12  ;;  %v4319_v22 = vld [vmem:[%s5501_s2 + $0x80] ss:$12 sps:$4 sm:$0xff]  }
0x155c   :  { %1592 = vrot.lane.b32.xlu1 %v4911_v10, %s4535_s11 }
0x15ca   :  { %v4279_v23 = vpop.permute.xlu1 %4278 }
0x15cb   :  { %v4281_v24 = vunpack.i.h.bf16 %v4279_v23  ;;  %v4280_v15 = vunpack.i.l.bf16 %v4279_v23  ;;  %v4320_v23 = vld [vmem:[%s5501_s2 + $0x68] ss:$12 sps:$4 sm:$0xff]  }
0x15cd   :  { %v1583_v26 = vsel %vm139_vm2, %v1445_v21, %v4281_v24  ;;  %v1582_v27 = vsel %vm139_vm2, %v1442_v40, %v4280_v15  ;;  %v1683_v24 = vrot.slane %v4907_v9, %v4732_v1 }
0x15ce   :  { %v1584_v16 = vpack.c.bf16 %v1583_v26, %v1582_v27  ;;  %v1593_v30 = vpop.permute.xlu1 %1592 }
0x15d0   :  { %4071 = vmatmul.mubr.msk.bf16.vlgmr.msra.gmra.mxu1 %vm26_vm0, %v1584_v16 }
0x15d1   :  { %4086 = vmatprep.mubr.msk.bf16.mxu1 %vm4530_vm1, %v4529_v20  ;;  %4083 = vmatpush3.bf16.xpose.msra.mxu1 %v4319_v22 }
0x15d2   :  { %4084 = vmatprep.subr.bf16.mxu1 %v4529_v20 }
0x15d9   :  { %4085 = vmatpush3.bf16.xpose.msra.mxu1 %v4320_v23 }
0x15da   :  { %4104 = vmatprep.subr.bf16.mxu1 %v4529_v20 }
0x1690   :  { %v1632_v32 = vpop.f32.mrf.mxu1 }
0x1691   :  { %v1633_v28 = vadd.f32 %v1632_v32, %v1593_v30 }
0x1692   :  { %v4072_v33 = vpop.f32.mrf.mxu1 }
0x1693   :  { %v1639_v34 = vadd.f32 %v1633_v28, %v4605_v35 }
0x1694   :  { %v1635_v10 = vpop.f32.mrf.mxu1 }
0x1695   :  { %v1636_v61 = vadd.f32 %v1635_v10, %v1593_v30  ;;  %v1641_v39 = vsel %vm26_vm0, %v1639_v34, 0.0 }
0x1696   :  { %1642 = vadd.xlane.f32.xlu0 %v1641_v39  ;;  %v4073_v63 = vpop.f32.mrf.mxu1 }
0x1697   :  { %v1640_v41 = vadd.f32 %v1636_v61, %v4607_v36  ;;  %v4996_v36 = vrot.slane %v4907_v9, %v4708_v43 }
0x1699   :  { %v1644_v42 = vsel %vm26_vm0, %v1640_v41, 0.0 }
0x169a   :  { %1645 = vadd.xlane.f32.xlu1 %v1644_v42 }
0x171f   :  { %v1643_v47 = vpop.xlane.xlu0 %1642 }
0x1720   :  { %v1647_v49 = vmul.f32 0.03125, %v1643_v47 }
0x1722   :  { %v1649_v50 = vsub.f32 %v1639_v34, %v1647_v49 }
0x1723   :  { %v1646_v54 = vpop.xlane.xlu1 %1645 }
0x1724   :  { %v1648_v56 = vmul.f32 0.03125, %v1646_v54  ;;  %v1651_v37 = vmul.f32 %v1649_v50, %v1649_v50 }
0x1726   :  { %v1650_v60 = vsub.f32 %v1640_v41, %v1648_v56  ;;  %v1653_v35 = vsel %vm26_vm0, %v1651_v37, 0.0 }
0x1727   :  { %1654 = vadd.xlane.f32.xlu0 %v1653_v35 }
0x1728   :  { %v1652_v25 = vmul.f32 %v1650_v60, %v1650_v60 }
0x172a   :  { %v1656_v62 = vsel %vm26_vm0, %v1652_v25, 0.0 }
0x172b   :  { %1657 = vadd.xlane.f32.xlu0 %v1656_v62 }
0x1741   :  { %1674 = vrot.lane.b32.xlu0 %v4996_v36, %s4528_s0 }
0x1745   :  { %1845 = vrot.lane.b32.xlu0 %v4996_v36, %s4535_s11 }
0x17b0   :  { %v1655_v44 = vpop.xlane.xlu0 %1654 }
0x17b1   :  { %v1659_v55 = vmul.f32 0.03125, %v1655_v44 }
0x17b3   :  { %v1661_v3 = vadd.f32 1e-12, %v1659_v55 }
0x17b4   :  { %v1658_v4 = vpop.xlane.xlu0 %1657 }
0x17b5   :  { %4417 = vrsqrt.f32 %v1661_v3  ;;  %v1660_v8 = vmul.f32 0.03125, %v1658_v4 }
0x17b7   :  { %v1662_v19 = vadd.f32 1e-12, %v1660_v8 }
0x17b8   :  { %v1675_v12 = vpop.permute.xlu0 %1674 }
0x17b9   :  { %4419 = vrsqrt.f32 %v1662_v19 }
0x17c2   :  { %v4418_v53 = vpop.eup %4417 }
0x17c3   :  { %v1665_v40 = vmul.f32 %v4418_v53, %v1649_v50 }
0x17c5   :  { %v1671_v11 = vmul.f32 %v4996_v36, %v1665_v40 }
0x17c6   :  { %v4420_v5 = vpop.eup %4419 }
0x17c7   :  { %v1666_v21 = vmul.f32 %v4420_v5, %v1650_v60  ;;  %v1677_v13 = vadd.f32 %v1675_v12, %v1671_v11 }
0x17c9   :  { %v1672_v58 = vmul.f32 %v4996_v36, %v1666_v21 }
0x17cb   :  { %v1678_v14 = vadd.f32 %v1675_v12, %v1672_v58 }
0x17cd   :  { %v1679_v17 = vpack.c.bf16 %v1678_v14, %v1677_v13 }
0x17cf   :  { %4079 = vmatmul.mubr.msk.bf16.vlgmr.msra.gmra.mxu0 %vm26_vm0, %v1679_v17 }
0x17d0   :  { %4094 = vmatprep.mubr.msk.bf16.mxu0 %vm4530_vm1, %v4529_v20 }
0x188f   :  { %v1729_v15 = vpop.f32.mrf.mxu0 }
0x1890   :  { %v1730_v26 = vadd.f32 %v1729_v15, %v1683_v24 }
0x1891   :  { %v4080_v27 = vpop.f32.mrf.mxu0 }
0x1892   :  { %v1738_v16 = vmul.f32 %v1730_v26, %v1730_v26  ;;  %v1736_v56 = vmul.f32 0.5, %v1730_v26 }
0x1893   :  { %v1732_v30 = vpop.f32.mrf.mxu0 }
0x1894   :  { %v1740_v32 = vmul.f32 %v1738_v16, %v1730_v26  ;;  %v1733_v28 = vadd.f32 %v1732_v30, %v1683_v24 }
0x1895   :  { %v4081_v33 = vpop.f32.mrf.mxu0 }
0x1896   :  { %v1742_v34 = vmul.f32 0.044715, %v1740_v32  ;;  %v1739_v10 = vmul.f32 %v1733_v28, %v1733_v28  ;;  %v1737_v37 = vmul.f32 0.5, %v1733_v28 }
0x1898   :  { %v1744_v61 = vadd.f32 %v1742_v34, %v1730_v26  ;;  %v1741_v39 = vmul.f32 %v1739_v10, %v1733_v28  ;;  %v5045_v26 = vld [vmem:[%s5501_s2 + $0x90] ss:$12 sps:$4 sm:$0xff]  }
0x189a   :  { %v1746_v63 = vmul.f32 0.7978846, %v1744_v61  ;;  %v1743_v41 = vmul.f32 0.044715, %v1741_v39 }
0x189c   :  { %4421 = vtanh.f32 %v1746_v63  ;;  %v1745_v42 = vadd.f32 %v1743_v41, %v1733_v28  ;;  %v1846_v41 = vpop.permute.xlu0 %1845 }
0x189e   :  { %v1747_v47 = vmul.f32 0.7978846, %v1745_v42 }
0x18a0   :  { %4423 = vtanh.f32 %v1747_v47 }
0x18a9   :  { %v4422_v49 = vpop.eup %4421 }
0x18aa   :  { %v1750_v50 = vadd.f32 1.0, %v4422_v49 }
0x18ac   :  { %v1752_v35 = vmul.f32 %v1750_v50, %v1736_v56  ;;  %v5060_v56 = vrot.slane %v4907_v9, %v4773_v18 }
0x18ad   :  { %v4424_v54 = vpop.eup %4423 }
0x18ae   :  { %v1751_v60 = vadd.f32 1.0, %v4424_v54 }
0x18b0   :  { %v1753_v25 = vmul.f32 %v1751_v60, %v1737_v37 }
0x18b2   :  { %v1754_v62 = vpack.c.bf16 %v1753_v25, %v1752_v35 }
0x18b4   :  { %4087 = vmatmul.mubr.bf16.vlgmr.msra.gmra.mxu1 %v1754_v62 }
0x18b5   :  { %4106 = vmatprep.mubr.msk.bf16.mxu1 %vm4530_vm1, %v4529_v20 }
0x1974   :  { %v1805_v46 = vpop.f32.mrf.mxu1 }
0x1975   :  { %v1806_v44 = vadd.f32 %v1805_v46, %v1758_v0 }
0x1976   :  { %v4088_v55 = vpop.f32.mrf.mxu1 }
0x1977   :  { %v1812_v3 = vadd.f32 %v1806_v44, %v1677_v13 }
0x1978   :  { %v1808_v4 = vpop.f32.mrf.mxu1 }
0x1979   :  { %v1809_v8 = vadd.f32 %v1808_v4, %v1758_v0  ;;  %v1814_v19 = vsel %vm26_vm0, %v1812_v3, 0.0 }
0x197a   :  { %1815 = vadd.xlane.f32.xlu1 %v1814_v19  ;;  %v4089_v53 = vpop.f32.mrf.mxu1 }
0x197b   :  { %v1813_v40 = vadd.f32 %v1809_v8, %v1678_v14  ;;  %v5038_v14 = vld [vmem:[%s5501_s2 + $0xa8] ss:$12 sps:$4 sm:$0xff]  }
0x197c   :  { %4091 = vmatpush3.bf16.msra.mxu0 %v5038_v14 }
0x197d   :  { %v1817_v5 = vsel %vm26_vm0, %v1813_v40, 0.0  ;;  %4092 = vmatprep.subr.bf16.mxu0 %v4529_v20 }
0x197e   :  { %1818 = vadd.xlane.f32.xlu1 %v1817_v5 }
0x1980   :  { %4093 = vmatpush3.bf16.msra.mxu0 %v5045_v26 }
0x1981   :  { %4098 = vmatprep.subr.bf16.mxu0 %v4529_v20 }
0x1a03   :  { %v1816_v21 = vpop.xlane.xlu1 %1815 }
0x1a04   :  { %v1820_v11 = vmul.f32 0.03125, %v1816_v21 }
0x1a06   :  { %v1822_v12 = vsub.f32 %v1812_v3, %v1820_v11 }
0x1a07   :  { %v1819_v58 = vpop.xlane.xlu1 %1818 }
0x1a08   :  { %v1821_v17 = vmul.f32 0.03125, %v1819_v58  ;;  %v1824_v22 = vmul.f32 %v1822_v12, %v1822_v12 }
0x1a0a   :  { %v1823_v23 = vsub.f32 %v1813_v40, %v1821_v17  ;;  %v1826_v24 = vsel %vm26_vm0, %v1824_v22, 0.0 }
0x1a0b   :  { %1827 = vadd.xlane.f32.xlu1 %v1826_v24 }
0x1a0c   :  { %v1825_v13 = vmul.f32 %v1823_v23, %v1823_v23 }
0x1a0e   :  { %v1829_v15 = vsel %vm26_vm0, %v1825_v13, 0.0 }
0x1a0f   :  { %1830 = vadd.xlane.f32.xlu1 %v1829_v15 }
0x1a20   :  { %1840 = vrot.lane.b32.xlu1 %v4996_v36, %s4534_s6 }
0x1a94   :  { %v1828_v27 = vpop.xlane.xlu1 %1827 }
0x1a95   :  { %v1832_v36 = vmul.f32 0.03125, %v1828_v27 }
0x1a97   :  { %v1834_v16 = vadd.f32 1e-12, %v1832_v36 }
0x1a98   :  { %v1831_v30 = vpop.xlane.xlu1 %1830 }
0x1a99   :  { %4425 = vrsqrt.f32 %v1834_v16  ;;  %v1833_v32 = vmul.f32 0.03125, %v1831_v30 }
0x1a9b   :  { %v1835_v28 = vadd.f32 1e-12, %v1833_v32 }
0x1a9c   :  { %v1841_v10 = vpop.permute.xlu1 %1840 }
0x1a9d   :  { %4427 = vrsqrt.f32 %v1835_v28 }
0x1aa6   :  { %v4426_v33 = vpop.eup %4425 }
0x1aa7   :  { %v1838_v34 = vmul.f32 %v4426_v33, %v1822_v12 }
0x1aa9   :  { %v1843_v63 = vmul.f32 %v1841_v10, %v1838_v34 }
0x1aaa   :  { %v4428_v61 = vpop.eup %4427 }
0x1aab   :  { %v1839_v39 = vmul.f32 %v4428_v61, %v1823_v23  ;;  %v5049_v47 = vadd.f32 %v1846_v41, %v1843_v63 }
0x1aad   :  { %v1844_v42 = vmul.f32 %v1841_v10, %v1839_v39 }
0x1aaf   :  { %v5051_v49 = vadd.f32 %v1846_v41, %v1844_v42 }
0x1ab1   :  { %v1859_v50 = vpack.c.bf16 %v5051_v49, %v5049_v47 }
0x1ab3   :  { %4095 = vmatmul.mubr.msk.bf16.vlgmr.msra.gmra.mxu0 %vm26_vm0, %v1859_v50 }
0x1ab4   :  { %4100 = vmatprep.mubr.msk.bf16.mxu0 %vm4530_vm1, %v4529_v20 }
0x1b73   :  { %v1913_v54 = vpop.f32.mrf.mxu0 }
0x1b74   :  { %v1914_v35 = vadd.f32 %v1913_v54, %v5060_v56 }
0x1b75   :  { %v4096_v37 = vpop.f32.mrf.mxu0 }
0x1b77   :  { %v1916_v60 = vpop.f32.mrf.mxu0 }
0x1b78   :  { %v1917_v25 = vadd.f32 %v1916_v60, %v5060_v56 }
0x1b79   :  { %v4097_v62 = vpop.f32.mrf.mxu0 }
0x1b7a   :  { %v5064_v0 = vpack.c.bf16 %v1917_v25, %v1914_v35 }
0x1b7c   :  { %2045 = vrot.lane.b32.xlu1 %v5064_v0, %s4532_s26  ;;  %1922 = vrot.lane.b32.xlu0 %v5064_v0, %s4528_s0 }
0x1b80   :  { %2047 = vrot.lane.b32.xlu0 %v5064_v0, %s4531_s25 }
0x1bee   :  { %v1923_v46 = vpop.permute.xlu0 %1922  ;;  %v2046_v4 = vpop.permute.xlu1 %2045 }
0x1bef   :  { %v1928_v44 = vsel %vm139_vm2, %v1923_v46, 0 }
0x1bf0   :  { %4099 = vmatpush3.bf16.xpose.msra.mxu0 %v1928_v44 }
0x1bf1   :  { %4110 = vmatprep.subr.bf16.mxu0 %v4529_v20 }
0x1bf2   :  { %v2048_v55 = vpop.permute.xlu0 %2047 }
0x1bf3   :  { %v2053_v3 = vsel %vm139_vm2, %v2048_v55, 0 }
0x1bf7   :  { %4101 = vmatmul.mubr.msk.bf16.vlgmr.msra.gmra.mxu0 %vm139_vm2, %v5064_v0 }
0x1bf8   :  { %4111 = vmatpush3.bf16.xpose.msra.mxu0 %v2053_v3  ;;  %4112 = vmatprep.mubr.msk.bf16.mxu0 %vm4530_vm1, %v4529_v20 }
0x1bf9   :  { %4122 = vmatprep.subr.bf16.mxu0 %v4529_v20 }
0x1bff   :  { %4113 = vmatmul.mubr.msk.bf16.vlgmr.msra.gmra.mxu0 %vm139_vm2, %v2046_v4 }
0x1c00   :  { %4126 = vmatprep.mubr.msk.bf16.mxu0 %vm4530_vm1, %v4529_v20 }
0x1cb7   :  { %v1964_v8 = vpop.f32.mrf.mxu0 }
0x1cb8   :  { %v1971_v19 = vmul.f32 0.25, %v1964_v8 }
0x1cb9   :  { %v4102_v53 = vpop.f32.mrf.mxu0 }
0x1cba   :  { %v1973_v40 = vadd.f32 %v4943_v57, %v1971_v19 }
0x1cbb   :  { %v1967_v5 = vpop.f32.mrf.mxu0 }
0x1cbc   :  { %v1972_v21 = vmul.f32 0.25, %v1967_v5  ;;  %v1975_v11 = vsel %vm139_vm2, %v1973_v40, -inf }
0x1cbd   :  { %1976 = vmax.xlane.f32.xlu0 %v1975_v11  ;;  %v4103_v12 = vpop.f32.mrf.mxu0 }
0x1cbe   :  { %v1974_v58 = vadd.f32 %v4950_v2, %v1972_v21 }
0x1cbf   :  { %v2089_v17 = vpop.f32.mrf.mxu0 }
0x1cc0   :  { %v2096_v22 = vmul.f32 0.25, %v2089_v17  ;;  %v1978_v23 = vsel %vm139_vm2, %v1974_v58, -inf }
0x1cc1   :  { %1979 = vmax.xlane.f32.xlu1 %v1978_v23  ;;  %v4114_v24 = vpop.f32.mrf.mxu0 }
0x1cc2   :  { %v2098_v13 = vadd.f32 %v4943_v57, %v2096_v22 }
0x1cc3   :  { %v2092_v15 = vpop.f32.mrf.mxu0 }
0x1cc4   :  { %v2097_v27 = vmul.f32 0.25, %v2092_v15  ;;  %v2100_v36 = vsel %vm139_vm2, %v2098_v13, -inf }
0x1cc5   :  { %2101 = vmax.xlane.f32.xlu0 %v2100_v36  ;;  %v4115_v16 = vpop.f32.mrf.mxu0 }
0x1cc6   :  { %v2099_v30 = vadd.f32 %v4950_v2, %v2097_v27 }
0x1cc8   :  { %v2103_v32 = vsel %vm139_vm2, %v2099_v30, -inf }
0x1cc9   :  { %2104 = vmax.xlane.f32.xlu0 %v2103_v32 }
0x1d46   :  { %v1977_v28 = vpop.xlane.xlu0 %1976 }
0x1d47   :  { %v1981_v33 = vsub.f32 %v1973_v40, %v1977_v28 }
0x1d49   :  { %v1983_v34 = vmul.f32 1.442695, %v1981_v33 }
0x1d4a   :  { %v1980_v10 = vpop.xlane.xlu1 %1979 }
0x1d4b   :  { %4429 = vpow2.f32 %v1983_v34  ;;  %v1982_v61 = vsub.f32 %v1974_v58, %v1980_v10 }
0x1d4d   :  { %v1985_v39 = vmul.f32 1.442695, %v1982_v61 }
0x1d4e   :  { %v2102_v63 = vpop.xlane.xlu0 %2101 }
0x1d4f   :  { %4431 = vpow2.f32 %v1985_v39  ;;  %v2106_v57 = vsub.f32 %v2098_v13, %v2102_v63 }
0x1d51   :  { %v2108_v41 = vmul.f32 1.442695, %v2106_v57 }
0x1d52   :  { %v2105_v42 = vpop.xlane.xlu0 %2104 }
0x1d53   :  { %4433 = vpow2.f32 %v2108_v41  ;;  %v2107_v50 = vsub.f32 %v2099_v30, %v2105_v42 }
0x1d55   :  { %v2110_v54 = vmul.f32 1.442695, %v2107_v50 }
0x1d57   :  { %4435 = vpow2.f32 %v2110_v54 }
0x1d58   :  { %v4430_v2 = vpop.eup %4429 }
0x1d59   :  { %v1987_v37 = vsel %vm139_vm2, %v4430_v2, 0.0 }
0x1d5a   :  { %1988 = vadd.xlane.f32.xlu0 %v1987_v37 }
0x1d5c   :  { %v4432_v60 = vpop.eup %4431 }
0x1d5d   :  { %v1990_v35 = vsel %vm139_vm2, %v4432_v60, 0.0 }
0x1d5e   :  { %1991 = vadd.xlane.f32.xlu1 %v1990_v35 }
0x1d60   :  { %v4434_v25 = vpop.eup %4433 }
0x1d61   :  { %v2112_v62 = vsel %vm139_vm2, %v4434_v25, 0.0 }
0x1d62   :  { %2113 = vadd.xlane.f32.xlu0 %v2112_v62 }
0x1d64   :  { %v4436_v46 = vpop.eup %4435 }
0x1d65   :  { %v2115_v44 = vsel %vm139_vm2, %v4436_v46, 0.0 }
0x1d66   :  { %2116 = vadd.xlane.f32.xlu1 %v2115_v44 }
0x1d77   :  { %2123 = vrot.lane.b32.xlu1 %v5064_v0, %s4533_s5 }
0x1d78   :  { %1998 = vrot.lane.b32.xlu0 %v5064_v0, %s4534_s6 }
0x1d7b   :  { %2183 = vrot.lane.b32.xlu1 %v5038_v14, %s4535_s11 }
0x1d7c   :  { %2181 = vrot.lane.b32.xlu0 %v5045_v26, %s4535_s11 }
0x1de3   :  { %v1989_v55 = vpop.xlane.xlu0 %1988 }
0x1de4   :  { %4437 = vrcp.f32 %v1989_v55 }
0x1de7   :  { %v1992_v3 = vpop.xlane.xlu1 %1991 }
0x1de8   :  { %4439 = vrcp.f32 %v1992_v3 }
0x1deb   :  { %v2114_v4 = vpop.xlane.xlu0 %2113 }
0x1dec   :  { %4441 = vrcp.f32 %v2114_v4 }
0x1def   :  { %v2117_v8 = vpop.xlane.xlu1 %2116  ;;  %v1999_v19 = vpop.permute.xlu0 %1998 }
0x1df0   :  { %4443 = vrcp.f32 %v2117_v8  ;;  %4105 = vmatpush3.bf16.msra.mxu1 %v1999_v19 }
0x1df1   :  { %4116 = vmatprep.subr.bf16.mxu1 %v4529_v20  ;;  %v4438_v53 = vpop.eup %4437 }
0x1df2   :  { %v1995_v40 = vmul.f32 %v4438_v53, %v4430_v2 }
0x1df3   :  { %v2124_v21 = vpop.permute.xlu1 %2123  ;;  %v2182_v15 = vpop.permute.xlu0 %2181 }
0x1df5   :  { %v4440_v0 = vpop.eup %4439 }
0x1df6   :  { %v1996_v5 = vmul.f32 %v4440_v0, %v4432_v60  ;;  %v4325_v0 = vld [vmem:[%s5501_s2 + $0xac] ss:$12 sps:$4 sm:$0xff]  }
0x1df7   :  { %v2184_v22 = vpop.permute.xlu1 %2183 }
0x1df8   :  { %v1997_v14 = vpack.c.bf16 %v1996_v5, %v1995_v40  ;;  %4123 = vmatpush3.bf16.msra.mxu0 %v2184_v22  ;;  %v4326_v40 = vld [vmem:[%s5501_s2 + $0x94] ss:$12 sps:$4 sm:$0xff]  }
0x1df9   :  { %v4442_v26 = vpop.eup %4441  ;;  %4124 = vmatprep.subr.bf16.mxu0 %v4529_v20 }
0x1dfa   :  { %4107 = vmatmul.mubr.msk.bf16.vlgmr.msra.gmra.mxu1 %vm139_vm2, %v1997_v14  ;;  %v2120_v12 = vmul.f32 %v4442_v26, %v4434_v25 }
0x1dfb   :  { %4117 = vmatpush3.bf16.msra.mxu1 %v2124_v21  ;;  %4118 = vmatprep.mubr.msk.bf16.mxu1 %vm4530_vm1, %v4529_v20 }
0x1dfc   :  { %4130 = vmatprep.subr.bf16.mxu1 %v4529_v20  ;;  %4125 = vmatpush3.bf16.msra.mxu0 %v2182_v15 }
0x1dfd   :  { %v4444_v11 = vpop.eup %4443  ;;  %4138 = vmatprep.subr.bf16.mxu0 %v4529_v20 }
0x1dfe   :  { %v2121_v58 = vmul.f32 %v4444_v11, %v4436_v46 }
0x1e00   :  { %v2122_v17 = vpack.c.bf16 %v2121_v58, %v2120_v12 }
0x1e02   :  { %4119 = vmatmul.mubr.msk.bf16.vlgmr.msra.gmra.mxu1 %vm139_vm2, %v2122_v17 }
0x1e03   :  { %4134 = vmatprep.mubr.msk.bf16.mxu1 %vm4530_vm1, %v4529_v20  ;;  %4131 = vmatpush3.bf16.msra.mxu1 %v4325_v0  ;;  %v4524_v0 = vld [vmem:[%s5500_s3 + $0x8] sm:$0xff] }
0x1e04   :  { %4132 = vmatprep.subr.bf16.mxu1 %v4529_v20 }
0x1e07   :  { %4133 = vmatpush3.bf16.msra.mxu1 %v4326_v40  ;;  %v1166_v40 = vrot.slane %v4524_v0, %v4578_v7 }
0x1e08   :  { %4146 = vmatprep.subr.bf16.mxu1 %v4529_v20 }
0x1eba   :  { %v2038_v23 = vpop.f32.mrf.mxu1 }
0x1ebc   :  { %v4108_v24 = vpop.f32.mrf.mxu1 }
0x1ebe   :  { %v2041_v13 = vpop.f32.mrf.mxu1 }
0x1ec0   :  { %v4109_v27 = vpop.f32.mrf.mxu1 }
0x1ec2   :  { %v2163_v36 = vpop.f32.mrf.mxu1 }
0x1ec4   :  { %v4120_v16 = vpop.f32.mrf.mxu1 }
0x1ec6   :  { %v2166_v30 = vpop.f32.mrf.mxu1 }
0x1ec7   :  { %v4282_v32 = vpack.i.bf16 %v2166_v30, %v2163_v36  ;;  %v4327_v30 = vld [vmem:[%s5501_s2 + $0xb0] ss:$12 sps:$4 sm:$0xff]  }
0x1ec8   :  { %v4121_v28 = vpop.f32.mrf.mxu1 }
0x1ec9   :  { %4283 = vrot.lane.b32.xlu1 %v4282_v32, %s4536_s12  ;;  %v4328_v32 = vld [vmem:[%s5501_s2 + $0x98] ss:$12 sps:$4 sm:$0xff]   ;;  %v2279_v28 = vrot.slane %v4907_v9, %v4901_v59 }
0x1ecd   :  { %2188 = vrot.lane.b32.xlu1 %v5060_v56, %s4535_s11 }
0x1f3b   :  { %v4284_v33 = vpop.permute.xlu1 %4283 }
0x1f3c   :  { %v4286_v34 = vunpack.i.h.bf16 %v4284_v33  ;;  %v4285_v10 = vunpack.i.l.bf16 %v4284_v33 }
0x1f3e   :  { %v2179_v61 = vsel %vm139_vm2, %v2041_v13, %v4286_v34  ;;  %v2178_v39 = vsel %vm139_vm2, %v2038_v23, %v4285_v10 }
0x1f3f   :  { %v2180_v63 = vpack.c.bf16 %v2179_v61, %v2178_v39  ;;  %v2189_v57 = vpop.permute.xlu1 %2188 }
0x1f41   :  { %4127 = vmatmul.mubr.msk.bf16.vlgmr.msra.gmra.mxu0 %vm26_vm0, %v2180_v63 }
0x1f42   :  { %4142 = vmatprep.mubr.msk.bf16.mxu0 %vm4530_vm1, %v4529_v20  ;;  %4139 = vmatpush3.bf16.xpose.msra.mxu0 %v4327_v30 }
0x1f43   :  { %4140 = vmatprep.subr.bf16.mxu0 %v4529_v20 }
0x1f4a   :  { %4141 = vmatpush3.bf16.xpose.msra.mxu0 %v4328_v32 }
0x1f4b   :  { %4160 = vmatprep.subr.bf16.mxu0 %v4529_v20 }
0x2001   :  { %v2228_v41 = vpop.f32.mrf.mxu0 }
0x2002   :  { %v2229_v42 = vadd.f32 %v2228_v41, %v2189_v57 }
0x2003   :  { %v4128_v50 = vpop.f32.mrf.mxu0 }
0x2004   :  { %v2235_v54 = vadd.f32 %v2229_v42, %v5049_v47 }
0x2005   :  { %v2231_v56 = vpop.f32.mrf.mxu0 }
0x2006   :  { %v2232_v2 = vadd.f32 %v2231_v56, %v2189_v57  ;;  %v2237_v37 = vsel %vm26_vm0, %v2235_v54, 0.0 }
0x2007   :  { %2238 = vadd.xlane.f32.xlu0 %v2237_v37  ;;  %v4129_v60 = vpop.f32.mrf.mxu0 }
0x2008   :  { %v2236_v35 = vadd.f32 %v2232_v2, %v5051_v49  ;;  %v5129_v49 = vrot.slane %v4907_v9, %v4845_v6 }
0x200a   :  { %v2240_v25 = vsel %vm26_vm0, %v2236_v35, 0.0 }
0x200b   :  { %2241 = vadd.xlane.f32.xlu1 %v2240_v25 }
0x2090   :  { %v2239_v62 = vpop.xlane.xlu0 %2238 }
0x2091   :  { %v2243_v46 = vmul.f32 0.03125, %v2239_v62 }
0x2093   :  { %v2245_v44 = vsub.f32 %v2235_v54, %v2243_v46 }
0x2094   :  { %v2242_v55 = vpop.xlane.xlu1 %2241 }
0x2095   :  { %v2244_v3 = vmul.f32 0.03125, %v2242_v55  ;;  %v2247_v4 = vmul.f32 %v2245_v44, %v2245_v44 }
0x2097   :  { %v2246_v8 = vsub.f32 %v2236_v35, %v2244_v3  ;;  %v2249_v47 = vsel %vm26_vm0, %v2247_v4, 0.0 }
0x2098   :  { %2250 = vadd.xlane.f32.xlu0 %v2249_v47  ;;  %v5161_v47 = vld [vmem:[%s5500_s3 + $0x10] sm:$0xff] }
0x2099   :  { %v2248_v19 = vmul.f32 %v2246_v8, %v2246_v8 }
0x209b   :  { %v2252_v53 = vsel %vm26_vm0, %v2248_v19, 0.0  ;;  %v2354_v19 = vrot.slane %v5161_v47, %v4578_v7 }
0x209c   :  { %2253 = vadd.xlane.f32.xlu0 %v2252_v53 }
0x20b2   :  { %2270 = vrot.lane.b32.xlu0 %v5129_v49, %s4528_s0 }
0x2121   :  { %v2251_v5 = vpop.xlane.xlu0 %2250 }
0x2122   :  { %v2255_v14 = vmul.f32 0.03125, %v2251_v5 }
0x2124   :  { %v2257_v21 = vadd.f32 1e-12, %v2255_v14 }
0x2125   :  { %v2254_v26 = vpop.xlane.xlu0 %2253 }
0x2126   :  { %4445 = vrsqrt.f32 %v2257_v21  ;;  %v2256_v11 = vmul.f32 0.03125, %v2254_v26 }
0x2128   :  { %v2258_v12 = vadd.f32 1e-12, %v2256_v11  ;;  %v1214_v11 = vadd.f32 %v4936_v45, %v1166_v40 }
0x2129   :  { %v2271_v13 = vpop.permute.xlu0 %2270 }
0x212a   :  { %4447 = vrsqrt.f32 %v2258_v12 }
0x2133   :  { %v4446_v58 = vpop.eup %4445 }
0x2134   :  { %v2261_v17 = vmul.f32 %v4446_v58, %v2245_v44 }
0x2136   :  { %v2267_v24 = vmul.f32 %v5129_v49, %v2261_v17 }
0x2137   :  { %v4448_v22 = vpop.eup %4447 }
0x2138   :  { %v2262_v23 = vmul.f32 %v4448_v22, %v2246_v8  ;;  %v2273_v27 = vadd.f32 %v2271_v13, %v2267_v24  ;;  %v1217_v24 = vadd.f32 %v4938_v48, %v1166_v40 }
0x213a   :  { %v2268_v15 = vmul.f32 %v5129_v49, %v2262_v23  ;;  %v1220_v23 = vadd.f32 %v1214_v11, %v4865_v51 }
0x213c   :  { %v2274_v36 = vadd.f32 %v2271_v13, %v2268_v15  ;;  %v1221_v15 = vadd.f32 %v1217_v24, %v4867_v52 }
0x213e   :  { %v2275_v16 = vpack.c.bf16 %v2274_v36, %v2273_v27  ;;  %v1225_v45 = vsel %vm26_vm0, %v1221_v15, 0.0 }
0x2140   :  { %4135 = vmatmul.mubr.msk.bf16.vlgmr.msra.gmra.mxu1 %vm26_vm0, %v2275_v16 }
0x2141   :  { %4150 = vmatprep.mubr.msk.bf16.mxu1 %vm4530_vm1, %v4529_v20 }
0x2200   :  { %v2325_v33 = vpop.f32.mrf.mxu1 }
0x2201   :  { %v2326_v34 = vadd.f32 %v2325_v33, %v2279_v28 }
0x2202   :  { %v4136_v10 = vpop.f32.mrf.mxu1 }
0x2203   :  { %v2334_v61 = vmul.f32 %v2326_v34, %v2326_v34  ;;  %v2332_v46 = vmul.f32 0.5, %v2326_v34 }
0x2204   :  { %v2328_v39 = vpop.f32.mrf.mxu1 }
0x2205   :  { %v2336_v63 = vmul.f32 %v2334_v61, %v2326_v34  ;;  %v2329_v57 = vadd.f32 %v2328_v39, %v2279_v28 }
0x2206   :  { %v4137_v41 = vpop.f32.mrf.mxu1 }
0x2207   :  { %v2338_v42 = vmul.f32 0.044715, %v2336_v63  ;;  %v2335_v50 = vmul.f32 %v2329_v57, %v2329_v57  ;;  %v2333_v44 = vmul.f32 0.5, %v2329_v57 }
0x2209   :  { %v2340_v54 = vadd.f32 %v2338_v42, %v2326_v34  ;;  %v2337_v56 = vmul.f32 %v2335_v50, %v2329_v57 }
0x220b   :  { %v2342_v2 = vmul.f32 0.7978846, %v2340_v54  ;;  %v2339_v37 = vmul.f32 0.044715, %v2337_v56 }
0x220d   :  { %4449 = vtanh.f32 %v2342_v2  ;;  %v2341_v60 = vadd.f32 %v2339_v37, %v2329_v57  ;;  %v5196_v2 = vld [vmem:[%s5501_s2 + $0xd8] ss:$12 sps:$4 sm:$0xff]   ;;  %v5203_v37 = vld [vmem:[%s5501_s2 + $0xc0] ss:$12 sps:$4 sm:$0xff]  }
0x220e   :  { %4147 = vmatpush3.bf16.msra.mxu1 %v5196_v2 }
0x220f   :  { %v2343_v35 = vmul.f32 0.7978846, %v2341_v60  ;;  %4148 = vmatprep.subr.bf16.mxu1 %v4529_v20 }
0x2211   :  { %4451 = vtanh.f32 %v2343_v35 }
0x2212   :  { %4149 = vmatpush3.bf16.msra.mxu1 %v5203_v37 }
0x2213   :  { %4154 = vmatprep.subr.bf16.mxu1 %v4529_v20 }
0x221a   :  { %v4450_v25 = vpop.eup %4449 }
0x221b   :  { %v2346_v9 = vadd.f32 1.0, %v4450_v25 }
0x221d   :  { %v2348_v3 = vmul.f32 %v2346_v9, %v2332_v46 }
0x221e   :  { %v4452_v62 = vpop.eup %4451 }
0x221f   :  { %v2347_v55 = vadd.f32 1.0, %v4452_v62 }
0x2221   :  { %v2349_v4 = vmul.f32 %v2347_v55, %v2333_v44 }
0x2223   :  { %v2350_v8 = vpack.c.bf16 %v2349_v4, %v2348_v3 }
0x2225   :  { %4143 = vmatmul.mubr.bf16.vlgmr.msra.gmra.mxu0 %v2350_v8 }
0x2226   :  { %4162 = vmatprep.mubr.msk.bf16.mxu0 %vm4530_vm1, %v4529_v20 }
0x22e5   :  { %v2401_v53 = vpop.f32.mrf.mxu0 }
0x22e6   :  { %v2402_v5 = vadd.f32 %v2401_v53, %v2354_v19 }
0x22e7   :  { %v4144_v14 = vpop.f32.mrf.mxu0 }
0x22e8   :  { %v2408_v21 = vadd.f32 %v2402_v5, %v2273_v27  ;;  %v1222_v27 = vsel %vm26_vm0, %v1220_v23, 0.0 }
0x22e9   :  { %v2404_v26 = vpop.f32.mrf.mxu0 }
0x22ea   :  { %v2405_v12 = vadd.f32 %v2404_v26, %v2354_v19  ;;  %v2410_v58 = vsel %vm26_vm0, %v2408_v21, 0.0 }
0x22eb   :  { %2411 = vadd.xlane.f32.xlu1 %v2410_v58  ;;  %v4145_v17 = vpop.f32.mrf.mxu0 }
0x22ec   :  { %v2409_v22 = vadd.f32 %v2405_v12, %v2274_v36 }
0x22ee   :  { %v2413_v13 = vsel %vm26_vm0, %v2409_v22, 0.0 }
0x22ef   :  { %2414 = vadd.xlane.f32.xlu1 %v2413_v13 }
0x22f3   :  { %1223 = vadd.xlane.f32.xlu1 %v1222_v27 }
0x22f7   :  { %1226 = vadd.xlane.f32.xlu1 %v1225_v45 }
0x2374   :  { %v2412_v16 = vpop.xlane.xlu1 %2411 }
0x2375   :  { %v2416_v39 = vmul.f32 0.03125, %v2412_v16 }
0x2377   :  { %v2418_v63 = vsub.f32 %v2408_v21, %v2416_v39 }
0x2378   :  { %v2415_v30 = vpop.xlane.xlu1 %2414 }
0x2379   :  { %v2417_v57 = vmul.f32 0.03125, %v2415_v30  ;;  %v2420_v42 = vmul.f32 %v2418_v63, %v2418_v63 }
0x237b   :  { %v2419_v41 = vsub.f32 %v2409_v22, %v2417_v57  ;;  %v2422_v50 = vsel %vm26_vm0, %v2420_v42, 0.0 }
0x237c   :  { %v1224_v32 = vpop.xlane.xlu1 %1223 }
0x237d   :  { %v1228_v28 = vmul.f32 0.03125, %v1224_v32  ;;  %v2421_v54 = vmul.f32 %v2419_v41, %v2419_v41 }
0x237f   :  { %v5177_v36 = vsub.f32 %v1220_v23, %v1228_v28  ;;  %v2425_v56 = vsel %vm26_vm0, %v2421_v54, 0.0 }
0x2380   :  { %v1227_v51 = vpop.xlane.xlu1 %1226 }
0x2381   :  { %v1229_v33 = vmul.f32 0.03125, %v1227_v51  ;;  %v1232_v48 = vmul.f32 %v5177_v36, %v5177_v36 }
0x2383   :  { %v1231_v34 = vsub.f32 %v1221_v15, %v1229_v33  ;;  %v1234_v52 = vsel %vm26_vm0, %v1232_v48, 0.0 }
0x2384   :  { %1235 = vadd.xlane.f32.xlu0 %v1234_v52 }
0x2385   :  { %v1233_v10 = vmul.f32 %v1231_v34, %v1231_v34 }
0x2387   :  { %v1237_v61 = vsel %vm26_vm0, %v1233_v10, 0.0 }
0x2388   :  { %1238 = vadd.xlane.f32.xlu1 %v1237_v61 }
0x2399   :  { %2436 = vrot.lane.b32.xlu1 %v5129_v49, %s4534_s6 }
0x239a   :  { %1253 = vrot.lane.b32.xlu0 %v4851_v29, %s4535_s11 }
0x23bd   :  { %2423 = vadd.xlane.f32.xlu1 %v2422_v50 }
0x23c1   :  { %2426 = vadd.xlane.f32.xlu1 %v2425_v56 }
0x23d2   :  { %2441 = vrot.lane.b32.xlu1 %v5129_v49, %s4535_s11 }
0x23d6   :  { %1248 = vrot.lane.b32.xlu1 %v4851_v29, %s4534_s6 }
0x240d   :  { %v1236_v44 = vpop.xlane.xlu0 %1235 }
0x240e   :  { %v1240_v55 = vmul.f32 0.03125, %v1236_v44 }
0x2410   :  { %v1242_v8 = vadd.f32 1e-12, %v1240_v55 }
0x2411   :  { %v1239_v49 = vpop.xlane.xlu1 %1238  ;;  %v1254_v30 = vpop.permute.xlu0 %1253 }
0x2412   :  { %v1241_v3 = vmul.f32 0.03125, %v1239_v49 }
0x2414   :  { %v1243_v19 = vadd.f32 1e-12, %v1241_v3  ;;  %v5264_v3 = vld [vmem:[%s5502_s1 + $0x8] sm:$0xff] }
0x2415   :  { %v2437_v29 = vpop.permute.xlu1 %2436 }
0x2446   :  { %v2424_v60 = vpop.xlane.xlu1 %2423 }
0x2447   :  { %v2428_v35 = vmul.f32 0.03125, %v2424_v60 }
0x2449   :  { %v2430_v25 = vadd.f32 1e-12, %v2428_v35 }
0x244a   :  { %v2427_v9 = vpop.xlane.xlu1 %2426 }
0x244b   :  { %4453 = vrsqrt.f32 %v2430_v25  ;;  %v2429_v62 = vmul.f32 0.03125, %v2427_v9  ;;  %v5257_v25 = vld [vmem:[%s5502_s1] sm:$0xff] }
0x244d   :  { %v2431_v46 = vadd.f32 1e-12, %v2429_v62 }
0x244e   :  { %v2442_v5 = vpop.permute.xlu1 %2441 }
0x244f   :  { %4455 = vrsqrt.f32 %v2431_v46 }
0x2450   :  { %4457 = vrsqrt.f32 %v1242_v8 }
0x2451   :  { %4459 = vrsqrt.f32 %v1243_v19 }
0x2452   :  { %v1249_v13 = vpop.permute.xlu1 %1248 }
0x2458   :  { %v4454_v4 = vpop.eup %4453 }
0x2459   :  { %v2434_v53 = vmul.f32 %v4454_v4, %v2418_v63 }
0x245b   :  { %v2439_v0 = vmul.f32 %v2437_v29, %v2434_v53 }
0x245c   :  { %v4456_v40 = vpop.eup %4455 }
0x245d   :  { %v2435_v14 = vmul.f32 %v4456_v40, %v2419_v41  ;;  %v5207_v21 = vadd.f32 %v2442_v5, %v2439_v0  ;;  %v4458_v23 = vpop.eup %4457 }
0x245e   :  { %v4460_v24 = vpop.eup %4459  ;;  %v1246_v15 = vmul.f32 %v4458_v23, %v5177_v36 }
0x245f   :  { %v2440_v26 = vmul.f32 %v2437_v29, %v2435_v14  ;;  %v2446_v11 = vmul.f32 0.5, %v5207_v21  ;;  %v1247_v27 = vmul.f32 %v4460_v24, %v1231_v34  ;;  %v5231_v34 = vrot.slane %v5161_v47, %v4618_v38 }
0x2460   :  { %v1251_v45 = vmul.f32 %v1249_v13, %v1246_v15 }
0x2461   :  { %v5210_v12 = vadd.f32 %v2442_v5, %v2440_v26  ;;  %v2448_v58 = vmul.f32 1.442695, %v2446_v11  ;;  %v1252_v16 = vmul.f32 %v1249_v13, %v1247_v27 }
0x2462   :  { %v5214_v28 = vadd.f32 %v1254_v30, %v1251_v45 }
0x2463   :  { %v2447_v17 = vmul.f32 0.5, %v5210_v12  ;;  %4461 = vpow2.f32 %v2448_v58  ;;  %v5216_v51 = vadd.f32 %v1254_v30, %v1252_v16 }
0x2465   :  { %v2450_v22 = vmul.f32 1.442695, %v2447_v17 }
0x2467   :  { %4463 = vpow2.f32 %v2450_v22 }
0x2470   :  { %v4462_v32 = vpop.eup %4461 }
0x2471   :  { %v5219_v48 = vadd.f32 %v4462_v32, %v5214_v28 }
0x2474   :  { %v4464_v33 = vpop.eup %4463 }
0x2475   :  { %v5222_v52 = vadd.f32 %v4464_v33, %v5216_v51 }
0x2477   :  { %v2463_v10 = vpack.c.bf16 %v5222_v52, %v5219_v48 }
0x2479   :  { %4151 = vmatmul.mubr.msk.bf16.vlgmr.msra.gmra.mxu1 %vm26_vm0, %v2463_v10 }
0x247a   :  { %4156 = vmatprep.mubr.msk.bf16.mxu1 %vm4530_vm1, %v4529_v20 }
0x2539   :  { %v2517_v36 = vpop.f32.mrf.mxu1 }
0x253a   :  { %v2518_v63 = vadd.f32 %v2517_v36, %v5231_v34 }
0x253b   :  { %v4152_v61 = vpop.f32.mrf.mxu1 }
0x253d   :  { %v2520_v39 = vpop.f32.mrf.mxu1 }
0x253e   :  { %v2521_v57 = vadd.f32 %v2520_v39, %v5231_v34 }
0x253f   :  { %v4153_v41 = vpop.f32.mrf.mxu1 }
0x2540   :  { %v5235_v42 = vpack.c.bf16 %v2521_v57, %v2518_v63 }
0x2542   :  { %2526 = vrot.lane.b32.xlu1 %v5235_v42, %s4528_s0 }
0x2546   :  { %2651 = vrot.lane.b32.xlu1 %v5235_v42, %s4531_s25 }
0x254a   :  { %2649 = vrot.lane.b32.xlu1 %v5235_v42, %s4532_s26 }
0x25b4   :  { %v2527_v38 = vpop.permute.xlu1 %2526 }
0x25b5   :  { %v2532_v50 = vsel %vm139_vm2, %v2527_v38, 0 }
0x25b6   :  { %4155 = vmatpush3.bf16.xpose.msra.mxu1 %v2532_v50 }
0x25b7   :  { %4166 = vmatprep.subr.bf16.mxu1 %v4529_v20 }
0x25b8   :  { %v2652_v54 = vpop.permute.xlu1 %2651 }
0x25b9   :  { %v2657_v56 = vsel %vm139_vm2, %v2652_v54, 0 }
0x25bc   :  { %v2650_v49 = vpop.permute.xlu1 %2649 }
0x25bd   :  { %4157 = vmatmul.mubr.msk.bf16.vlgmr.msra.gmra.mxu1 %vm139_vm2, %v5235_v42 }
0x25be   :  { %4167 = vmatpush3.bf16.xpose.msra.mxu1 %v2657_v56  ;;  %4168 = vmatprep.mubr.msk.bf16.mxu1 %vm4530_vm1, %v4529_v20 }
0x25bf   :  { %4178 = vmatprep.subr.bf16.mxu1 %v4529_v20 }
0x25c5   :  { %4169 = vmatmul.mubr.msk.bf16.vlgmr.msra.gmra.mxu1 %vm139_vm2, %v2650_v49 }
0x25c6   :  { %4182 = vmatprep.mubr.msk.bf16.mxu1 %vm4530_vm1, %v4529_v20 }
0x267d   :  { %v2568_v29 = vpop.f32.mrf.mxu1 }
0x267e   :  { %v2575_v60 = vmul.f32 0.25, %v2568_v29 }
0x267f   :  { %v4158_v35 = vpop.f32.mrf.mxu1 }
0x2680   :  { %v2577_v9 = vadd.f32 %v5257_v25, %v2575_v60 }
0x2681   :  { %v2571_v62 = vpop.f32.mrf.mxu1 }
0x2682   :  { %v2576_v46 = vmul.f32 0.25, %v2571_v62  ;;  %v2579_v44 = vsel %vm139_vm2, %v2577_v9, -inf }
0x2683   :  { %2580 = vmax.xlane.f32.xlu1 %v2579_v44  ;;  %v4159_v55 = vpop.f32.mrf.mxu1 }
0x2684   :  { %v2578_v4 = vadd.f32 %v5264_v3, %v2576_v46 }
0x2685   :  { %v2693_v8 = vpop.f32.mrf.mxu1 }
0x2686   :  { %v2700_v19 = vmul.f32 0.25, %v2693_v8  ;;  %v2582_v53 = vsel %vm139_vm2, %v2578_v4, -inf }
0x2687   :  { %2583 = vmax.xlane.f32.xlu0 %v2582_v53  ;;  %v4170_v0 = vpop.f32.mrf.mxu1 }
0x2688   :  { %v2702_v40 = vadd.f32 %v5257_v25, %v2700_v19 }
0x2689   :  { %v2696_v5 = vpop.f32.mrf.mxu1 }
0x268a   :  { %v2701_v14 = vmul.f32 0.25, %v2696_v5  ;;  %v2704_v26 = vsel %vm139_vm2, %v2702_v40, -inf }
0x268b   :  { %2705 = vmax.xlane.f32.xlu1 %v2704_v26  ;;  %v4171_v11 = vpop.f32.mrf.mxu1 }
0x268c   :  { %v2703_v58 = vadd.f32 %v5264_v3, %v2701_v14 }
0x268e   :  { %v2707_v17 = vsel %vm139_vm2, %v2703_v58, -inf }
0x268f   :  { %2708 = vmax.xlane.f32.xlu1 %v2707_v17 }
0x270c   :  { %v2581_v22 = vpop.xlane.xlu1 %2580 }
0x270d   :  { %v2585_v23 = vsub.f32 %v2577_v9, %v2581_v22 }
0x270f   :  { %v2587_v24 = vmul.f32 1.442695, %v2585_v23 }
0x2710   :  { %v2584_v13 = vpop.xlane.xlu0 %2583 }
0x2711   :  { %4465 = vpow2.f32 %v2587_v24  ;;  %v2586_v15 = vsub.f32 %v2578_v4, %v2584_v13 }
0x2713   :  { %v2589_v27 = vmul.f32 1.442695, %v2586_v15 }
0x2714   :  { %v2706_v45 = vpop.xlane.xlu1 %2705 }
0x2715   :  { %4467 = vpow2.f32 %v2589_v27  ;;  %v2710_v16 = vsub.f32 %v2702_v40, %v2706_v45 }
0x2717   :  { %v2712_v30 = vmul.f32 1.442695, %v2710_v16 }
0x2718   :  { %v2709_v32 = vpop.xlane.xlu1 %2708 }
0x2719   :  { %4469 = vpow2.f32 %v2712_v30  ;;  %v2711_v33 = vsub.f32 %v2703_v58, %v2709_v32 }
0x271b   :  { %v2714_v10 = vmul.f32 1.442695, %v2711_v33 }
0x271d   :  { %4471 = vpow2.f32 %v2714_v10 }
0x271e   :  { %v4466_v36 = vpop.eup %4465 }
0x271f   :  { %v2591_v61 = vsel %vm139_vm2, %v4466_v36, 0.0 }
0x2720   :  { %2592 = vadd.xlane.f32.xlu0 %v2591_v61 }
0x2722   :  { %v4468_v39 = vpop.eup %4467 }
0x2723   :  { %v2594_v63 = vsel %vm139_vm2, %v4468_v39, 0.0 }
0x2724   :  { %2595 = vadd.xlane.f32.xlu1 %v2594_v63 }
0x2726   :  { %v4470_v57 = vpop.eup %4469 }
0x2727   :  { %v2716_v41 = vsel %vm139_vm2, %v4470_v57, 0.0 }
0x2728   :  { %2717 = vadd.xlane.f32.xlu0 %v2716_v41 }
0x272a   :  { %v4472_v38 = vpop.eup %4471 }
0x272b   :  { %v2719_v50 = vsel %vm139_vm2, %v4472_v38, 0.0 }
0x272c   :  { %2720 = vadd.xlane.f32.xlu1 %v2719_v50 }
0x273d   :  { %2727 = vrot.lane.b32.xlu1 %v5235_v42, %s4533_s5 }
0x273e   :  { %2602 = vrot.lane.b32.xlu0 %v5235_v42, %s4534_s6 }
0x2741   :  { %2787 = vrot.lane.b32.xlu1 %v5196_v2, %s4535_s11 }
0x2745   :  { %2785 = vrot.lane.b32.xlu1 %v5203_v37, %s4535_s11 }
0x27a9   :  { %v2593_v54 = vpop.xlane.xlu0 %2592 }
0x27aa   :  { %4473 = vrcp.f32 %v2593_v54 }
0x27ad   :  { %v2596_v56 = vpop.xlane.xlu1 %2595 }
0x27ae   :  { %4475 = vrcp.f32 %v2596_v56 }
0x27b1   :  { %v2718_v49 = vpop.xlane.xlu0 %2717 }
0x27b2   :  { %4477 = vrcp.f32 %v2718_v49 }
0x27b5   :  { %v2603_v29 = vpop.permute.xlu0 %2602  ;;  %v2721_v60 = vpop.xlane.xlu1 %2720 }
0x27b6   :  { %4479 = vrcp.f32 %v2721_v60  ;;  %4161 = vmatpush3.bf16.msra.mxu0 %v2603_v29 }
0x27b7   :  { %4172 = vmatprep.subr.bf16.mxu0 %v4529_v20  ;;  %v4474_v35 = vpop.eup %4473 }
0x27b8   :  { %v2599_v9 = vmul.f32 %v4474_v35, %v4466_v36 }
0x27b9   :  { %v2728_v46 = vpop.permute.xlu1 %2727 }
0x27bb   :  { %v4476_v42 = vpop.eup %4475 }
0x27bc   :  { %v2600_v62 = vmul.f32 %v4476_v42, %v4468_v39 }
0x27bd   :  { %v2788_v19 = vpop.permute.xlu1 %2787 }
0x27be   :  { %v2601_v2 = vpack.c.bf16 %v2600_v62, %v2599_v9  ;;  %4179 = vmatpush3.bf16.msra.mxu1 %v2788_v19  ;;  %v5310_v9 = vrot.slane %v5161_v47, %v4708_v43  ;;  %v4333_v62 = vld [vmem:[%s5501_s2 + $0xdc] ss:$12 sps:$4 sm:$0xff]  }
0x27bf   :  { %v4478_v37 = vpop.eup %4477  ;;  %4180 = vmatprep.subr.bf16.mxu1 %v4529_v20 }
0x27c0   :  { %4163 = vmatmul.mubr.msk.bf16.vlgmr.msra.gmra.mxu0 %vm139_vm2, %v2601_v2  ;;  %v2724_v55 = vmul.f32 %v4478_v37, %v4470_v57  ;;  %v4334_v2 = vld [vmem:[%s5501_s2 + $0xc4] ss:$12 sps:$4 sm:$0xff]  }
0x27c1   :  { %4173 = vmatpush3.bf16.msra.mxu0 %v2728_v46  ;;  %4174 = vmatprep.mubr.msk.bf16.mxu0 %vm4530_vm1, %v4529_v20  ;;  %v2786_v5 = vpop.permute.xlu1 %2785 }
0x27c2   :  { %4186 = vmatprep.subr.bf16.mxu0 %v4529_v20  ;;  %4181 = vmatpush3.bf16.msra.mxu1 %v2786_v5 }
0x27c3   :  { %v4480_v44 = vpop.eup %4479  ;;  %4194 = vmatprep.subr.bf16.mxu1 %v4529_v20 }
0x27c4   :  { %v2725_v4 = vmul.f32 %v4480_v44, %v4472_v38 }
0x27c6   :  { %v2726_v8 = vpack.c.bf16 %v2725_v4, %v2724_v55 }
0x27c8   :  { %4175 = vmatmul.mubr.msk.bf16.vlgmr.msra.gmra.mxu0 %vm139_vm2, %v2726_v8 }
0x27c9   :  { %4190 = vmatprep.mubr.msk.bf16.mxu0 %vm4530_vm1, %v4529_v20  ;;  %4187 = vmatpush3.bf16.msra.mxu0 %v4333_v62 }
0x27ca   :  { %4188 = vmatprep.subr.bf16.mxu0 %v4529_v20 }
0x27cd   :  { %4189 = vmatpush3.bf16.msra.mxu0 %v4334_v2 }
0x27ce   :  { %4202 = vmatprep.subr.bf16.mxu0 %v4529_v20 }
0x2880   :  { %v2642_v53 = vpop.f32.mrf.mxu0 }
0x2882   :  { %v4164_v0 = vpop.f32.mrf.mxu0 }
0x2884   :  { %v2645_v40 = vpop.f32.mrf.mxu0 }
0x2886   :  { %v4165_v14 = vpop.f32.mrf.mxu0 }
0x2888   :  { %v2767_v26 = vpop.f32.mrf.mxu0 }
0x288a   :  { %v4176_v11 = vpop.f32.mrf.mxu0 }
0x288c   :  { %v2770_v58 = vpop.f32.mrf.mxu0 }
0x288d   :  { %v4287_v17 = vpack.i.bf16 %v2770_v58, %v2767_v26 }
0x288e   :  { %v4177_v22 = vpop.f32.mrf.mxu0 }
0x288f   :  { %4288 = vrot.lane.b32.xlu0 %v4287_v17, %s4536_s12  ;;  %v4335_v17 = vld [vmem:[%s5501_s2 + $0xe0] ss:$12 sps:$4 sm:$0xff]   ;;  %v4336_v22 = vld [vmem:[%s5501_s2 + $0xc8] ss:$12 sps:$4 sm:$0xff]  }
0x2893   :  { %2792 = vrot.lane.b32.xlu0 %v5231_v34, %s4535_s11 }
0x2901   :  { %v4289_v23 = vpop.permute.xlu0 %4288 }
0x2902   :  { %v4291_v24 = vunpack.i.h.bf16 %v4289_v23  ;;  %v4290_v13 = vunpack.i.l.bf16 %v4289_v23  ;;  %v2883_v23 = vrot.slane %v5161_v47, %v4732_v1 }
0x2904   :  { %v2783_v15 = vsel %vm139_vm2, %v2645_v40, %v4291_v24  ;;  %v2782_v27 = vsel %vm139_vm2, %v2642_v53, %v4290_v13 }
0x2905   :  { %v2784_v45 = vpack.c.bf16 %v2783_v15, %v2782_v27  ;;  %v2793_v16 = vpop.permute.xlu0 %2792 }
0x2907   :  { %4183 = vmatmul.mubr.msk.bf16.vlgmr.msra.gmra.mxu1 %vm26_vm0, %v2784_v45 }
0x2908   :  { %4198 = vmatprep.mubr.msk.bf16.mxu1 %vm4530_vm1, %v4529_v20  ;;  %4195 = vmatpush3.bf16.xpose.msra.mxu1 %v4335_v17 }
0x2909   :  { %4196 = vmatprep.subr.bf16.mxu1 %v4529_v20 }
0x2910   :  { %4197 = vmatpush3.bf16.xpose.msra.mxu1 %v4336_v22  ;;  %v5359_v22 = vld [vmem:[%s5501_s2 + $0xf0] ss:$12 sps:$4 sm:$0xff]  }
0x2911   :  { %4216 = vmatprep.subr.bf16.mxu1 %v4529_v20 }
0x29c7   :  { %v2832_v30 = vpop.f32.mrf.mxu1 }
0x29c8   :  { %v2833_v32 = vadd.f32 %v2832_v30, %v2793_v16 }
0x29c9   :  { %v4184_v33 = vpop.f32.mrf.mxu1 }
0x29ca   :  { %v2839_v10 = vadd.f32 %v2833_v32, %v5219_v48 }
0x29cb   :  { %v2835_v34 = vpop.f32.mrf.mxu1 }
0x29cc   :  { %v2836_v36 = vadd.f32 %v2835_v34, %v2793_v16  ;;  %v2841_v61 = vsel %vm26_vm0, %v2839_v10, 0.0 }
0x29cd   :  { %2842 = vadd.xlane.f32.xlu1 %v2841_v61  ;;  %v4185_v39 = vpop.f32.mrf.mxu1 }
0x29ce   :  { %v2840_v63 = vadd.f32 %v2836_v36, %v5222_v52 }
0x29d0   :  { %v2844_v57 = vsel %vm26_vm0, %v2840_v63, 0.0 }
0x29d1   :  { %2845 = vadd.xlane.f32.xlu0 %v2844_v57 }
0x2a56   :  { %v2843_v41 = vpop.xlane.xlu1 %2842 }
0x2a57   :  { %v2847_v38 = vmul.f32 0.03125, %v2843_v41 }
0x2a59   :  { %v2849_v50 = vsub.f32 %v2839_v10, %v2847_v38 }
0x2a5a   :  { %v2846_v54 = vpop.xlane.xlu0 %2845 }
0x2a5b   :  { %v2848_v56 = vmul.f32 0.03125, %v2846_v54  ;;  %v2851_v49 = vmul.f32 %v2849_v50, %v2849_v50 }
0x2a5d   :  { %v2850_v29 = vsub.f32 %v2840_v63, %v2848_v56  ;;  %v2853_v60 = vsel %vm26_vm0, %v2851_v49, 0.0 }
0x2a5e   :  { %2854 = vadd.xlane.f32.xlu0 %v2853_v60 }
0x2a5f   :  { %v2852_v35 = vmul.f32 %v2850_v29, %v2850_v29 }
0x2a61   :  { %v2856_v42 = vsel %vm26_vm0, %v2852_v35, 0.0  ;;  %v2958_v35 = vrot.slane %v5161_v47, %v4739_v31 }
0x2a62   :  { %2857 = vadd.xlane.f32.xlu1 %v2856_v42 }
0x2a74   :  { %2874 = vrot.lane.b32.xlu0 %v5310_v9, %s4528_s0 }
0x2a78   :  { %3045 = vrot.lane.b32.xlu0 %v5310_v9, %s4535_s11 }
0x2ae7   :  { %v2855_v43 = vpop.xlane.xlu0 %2854 }
0x2ae8   :  { %v2859_v46 = vmul.f32 0.03125, %v2855_v43 }
0x2aea   :  { %v2861_v37 = vadd.f32 1e-12, %v2859_v46 }
0x2aeb   :  { %v2858_v44 = vpop.xlane.xlu1 %2857  ;;  %v2875_v5 = vpop.permute.xlu0 %2874 }
0x2aec   :  { %4481 = vrsqrt.f32 %v2861_v37  ;;  %v2860_v55 = vmul.f32 0.03125, %v2858_v44 }
0x2aee   :  { %v2862_v4 = vadd.f32 1e-12, %v2860_v55 }
0x2af0   :  { %4483 = vrsqrt.f32 %v2862_v4 }
0x2af9   :  { %v4482_v8 = vpop.eup %4481 }
0x2afa   :  { %v2865_v19 = vmul.f32 %v4482_v8, %v2849_v50 }
0x2afc   :  { %v2871_v40 = vmul.f32 %v5310_v9, %v2865_v19 }
0x2afd   :  { %v4484_v53 = vpop.eup %4483 }
0x2afe   :  { %v2866_v0 = vmul.f32 %v4484_v53, %v2850_v29  ;;  %v2877_v26 = vadd.f32 %v2875_v5, %v2871_v40 }
0x2b00   :  { %v2872_v14 = vmul.f32 %v5310_v9, %v2866_v0 }
0x2b02   :  { %v2878_v11 = vadd.f32 %v2875_v5, %v2872_v14 }
0x2b04   :  { %v2879_v58 = vpack.c.bf16 %v2878_v11, %v2877_v26 }
0x2b06   :  { %4191 = vmatmul.mubr.msk.bf16.vlgmr.msra.gmra.mxu0 %vm26_vm0, %v2879_v58 }
0x2b07   :  { %4206 = vmatprep.mubr.msk.bf16.mxu0 %vm4530_vm1, %v4529_v20 }
0x2bc6   :  { %v2929_v24 = vpop.f32.mrf.mxu0 }
0x2bc7   :  { %v2930_v13 = vadd.f32 %v2929_v24, %v2883_v23 }
0x2bc8   :  { %v4192_v15 = vpop.f32.mrf.mxu0 }
0x2bc9   :  { %v2938_v27 = vmul.f32 %v2930_v13, %v2930_v13  ;;  %v2936_v50 = vmul.f32 0.5, %v2930_v13 }
0x2bca   :  { %v2932_v45 = vpop.f32.mrf.mxu0 }
0x2bcb   :  { %v2940_v16 = vmul.f32 %v2938_v27, %v2930_v13  ;;  %v2933_v30 = vadd.f32 %v2932_v45, %v2883_v23 }
0x2bcc   :  { %v4193_v32 = vpop.f32.mrf.mxu0 }
0x2bcd   :  { %v2942_v33 = vmul.f32 0.044715, %v2940_v16  ;;  %v2939_v10 = vmul.f32 %v2933_v30, %v2933_v30  ;;  %v2937_v54 = vmul.f32 0.5, %v2933_v30 }
0x2bcf   :  { %v2944_v34 = vadd.f32 %v2942_v33, %v2930_v13  ;;  %v2941_v36 = vmul.f32 %v2939_v10, %v2933_v30 }
0x2bd1   :  { %v2946_v61 = vmul.f32 0.7978846, %v2944_v34  ;;  %v2943_v39 = vmul.f32 0.044715, %v2941_v36  ;;  %v3046_v34 = vpop.permute.xlu0 %3045 }
0x2bd3   :  { %4485 = vtanh.f32 %v2946_v61  ;;  %v2945_v63 = vadd.f32 %v2943_v39, %v2933_v30 }
0x2bd5   :  { %v2947_v57 = vmul.f32 0.7978846, %v2945_v63 }
0x2bd7   :  { %4487 = vtanh.f32 %v2947_v57 }
0x2be0   :  { %v4486_v41 = vpop.eup %4485 }
0x2be1   :  { %v2950_v1 = vadd.f32 1.0, %v4486_v41  ;;  %v5374_v41 = vrot.slane %v5161_v47, %v4773_v18 }
0x2be3   :  { %v2952_v49 = vmul.f32 %v2950_v1, %v2936_v50 }
0x2be4   :  { %v4488_v38 = vpop.eup %4487 }
0x2be5   :  { %v2951_v56 = vadd.f32 1.0, %v4488_v38 }
0x2be7   :  { %v2953_v29 = vmul.f32 %v2951_v56, %v2937_v54 }
0x2be9   :  { %v2954_v60 = vpack.c.bf16 %v2953_v29, %v2952_v49 }
0x2beb   :  { %4199 = vmatmul.mubr.bf16.vlgmr.msra.gmra.mxu1 %v2954_v60 }
0x2bec   :  { %4218 = vmatprep.mubr.msk.bf16.mxu1 %vm4530_vm1, %v4529_v20 }
0x2cab   :  { %v3005_v42 = vpop.f32.mrf.mxu1 }
0x2cac   :  { %v3006_v62 = vadd.f32 %v3005_v42, %v2958_v35 }
0x2cad   :  { %v4200_v2 = vpop.f32.mrf.mxu1 }
0x2cae   :  { %v3012_v43 = vadd.f32 %v3006_v62, %v2877_v26 }
0x2caf   :  { %v3008_v46 = vpop.f32.mrf.mxu1 }
0x2cb0   :  { %v3009_v37 = vadd.f32 %v3008_v46, %v2958_v35  ;;  %v3014_v44 = vsel %vm26_vm0, %v3012_v43, 0.0 }
0x2cb1   :  { %3015 = vadd.xlane.f32.xlu1 %v3014_v44  ;;  %v4201_v55 = vpop.f32.mrf.mxu1 }
0x2cb2   :  { %v3013_v4 = vadd.f32 %v3009_v37, %v2878_v11  ;;  %v5352_v11 = vld [vmem:[%s5501_s2 + $0x108] ss:$12 sps:$4 sm:$0xff]  }
0x2cb3   :  { %4203 = vmatpush3.bf16.msra.mxu0 %v5352_v11 }
0x2cb4   :  { %v3017_v8 = vsel %vm26_vm0, %v3013_v4, 0.0  ;;  %4204 = vmatprep.subr.bf16.mxu0 %v4529_v20 }
0x2cb5   :  { %3018 = vadd.xlane.f32.xlu1 %v3017_v8 }
0x2cb7   :  { %4205 = vmatpush3.bf16.msra.mxu0 %v5359_v22 }
0x2cb8   :  { %4210 = vmatprep.subr.bf16.mxu0 %v4529_v20 }
0x2d3a   :  { %v3016_v19 = vpop.xlane.xlu1 %3015 }
0x2d3b   :  { %v3020_v53 = vmul.f32 0.03125, %v3016_v19 }
0x2d3d   :  { %v3022_v0 = vsub.f32 %v3012_v43, %v3020_v53 }
0x2d3e   :  { %v3019_v40 = vpop.xlane.xlu1 %3018 }
0x2d3f   :  { %v3021_v5 = vmul.f32 0.03125, %v3019_v40  ;;  %v3024_v31 = vmul.f32 %v3022_v0, %v3022_v0 }
0x2d41   :  { %v3023_v14 = vsub.f32 %v3013_v4, %v3021_v5  ;;  %v3026_v58 = vsel %vm26_vm0, %v3024_v31, 0.0 }
0x2d42   :  { %3027 = vadd.xlane.f32.xlu1 %v3026_v58 }
0x2d43   :  { %v3025_v26 = vmul.f32 %v3023_v14, %v3023_v14 }
0x2d45   :  { %v3029_v17 = vsel %vm26_vm0, %v3025_v26, 0.0 }
0x2d46   :  { %3030 = vadd.xlane.f32.xlu1 %v3029_v17 }
0x2d57   :  { %3040 = vrot.lane.b32.xlu1 %v5310_v9, %s4534_s6 }
0x2dcb   :  { %v3028_v23 = vpop.xlane.xlu1 %3027 }
0x2dcc   :  { %v3032_v9 = vmul.f32 0.03125, %v3028_v23 }
0x2dce   :  { %v3034_v24 = vadd.f32 1e-12, %v3032_v9 }
0x2dcf   :  { %v3031_v13 = vpop.xlane.xlu1 %3030 }
0x2dd0   :  { %4489 = vrsqrt.f32 %v3034_v24  ;;  %v3033_v15 = vmul.f32 0.03125, %v3031_v13 }
0x2dd2   :  { %v3035_v27 = vadd.f32 1e-12, %v3033_v15 }
0x2dd3   :  { %v3041_v30 = vpop.permute.xlu1 %3040 }
0x2dd4   :  { %4491 = vrsqrt.f32 %v3035_v27 }
0x2ddd   :  { %v4490_v45 = vpop.eup %4489 }
0x2dde   :  { %v3038_v16 = vmul.f32 %v4490_v45, %v3022_v0 }
0x2de0   :  { %v3043_v10 = vmul.f32 %v3041_v30, %v3038_v16 }
0x2de1   :  { %v4492_v32 = vpop.eup %4491 }
0x2de2   :  { %v3039_v33 = vmul.f32 %v4492_v32, %v3023_v14  ;;  %v5363_v61 = vadd.f32 %v3046_v34, %v3043_v10 }
0x2de4   :  { %v3044_v36 = vmul.f32 %v3041_v30, %v3039_v33 }
0x2de6   :  { %v5365_v39 = vadd.f32 %v3046_v34, %v3044_v36 }
0x2de8   :  { %v3059_v63 = vpack.c.bf16 %v5365_v39, %v5363_v61 }
0x2dea   :  { %4207 = vmatmul.mubr.msk.bf16.vlgmr.msra.gmra.mxu0 %vm26_vm0, %v3059_v63 }
0x2deb   :  { %4212 = vmatprep.mubr.msk.bf16.mxu0 %vm4530_vm1, %v4529_v20 }
0x2eaa   :  { %v3113_v57 = vpop.f32.mrf.mxu0 }
0x2eab   :  { %v3114_v50 = vadd.f32 %v3113_v57, %v5374_v41 }
0x2eac   :  { %v4208_v1 = vpop.f32.mrf.mxu0 }
0x2eae   :  { %v3116_v38 = vpop.f32.mrf.mxu0 }
0x2eaf   :  { %v3117_v54 = vadd.f32 %v3116_v38, %v5374_v41 }
0x2eb0   :  { %v4209_v56 = vpop.f32.mrf.mxu0 }
0x2eb1   :  { %v5378_v49 = vpack.c.bf16 %v3117_v54, %v3114_v50 }
0x2eb3   :  { %3122 = vrot.lane.b32.xlu0 %v5378_v49, %s4528_s0 }
0x2eb7   :  { %3247 = vrot.lane.b32.xlu0 %v5378_v49, %s4531_s25 }
0x2ebb   :  { %3245 = vrot.lane.b32.xlu0 %v5378_v49, %s4532_s26 }
0x2f25   :  { %v3123_v18 = vpop.permute.xlu0 %3122 }
0x2f26   :  { %v3128_v47 = vsel %vm139_vm2, %v3123_v18, 0 }
0x2f27   :  { %4211 = vmatpush3.bf16.xpose.msra.mxu0 %v3128_v47 }
0x2f28   :  { %4222 = vmatprep.subr.bf16.mxu0 %v4529_v20 }
0x2f29   :  { %v3248_v29 = vpop.permute.xlu0 %3247 }
0x2f2a   :  { %v3253_v60 = vsel %vm139_vm2, %v3248_v29, 0 }
0x2f2d   :  { %v3246_v35 = vpop.permute.xlu0 %3245 }
0x2f2e   :  { %4213 = vmatmul.mubr.msk.bf16.vlgmr.msra.gmra.mxu0 %vm139_vm2, %v5378_v49 }
0x2f2f   :  { %4223 = vmatpush3.bf16.xpose.msra.mxu0 %v3253_v60  ;;  %4224 = vmatprep.mubr.msk.bf16.mxu0 %vm4530_vm1, %v4529_v20 }
0x2f30   :  { %4234 = vmatprep.subr.bf16.mxu0 %v4529_v20 }
0x2f36   :  { %4225 = vmatmul.mubr.msk.bf16.vlgmr.msra.gmra.mxu0 %vm139_vm2, %v3246_v35 }
0x2f37   :  { %4238 = vmatprep.mubr.msk.bf16.mxu0 %vm4530_vm1, %v4529_v20 }
0x2fee   :  { %v3164_v42 = vpop.f32.mrf.mxu0 }
0x2fef   :  { %v3171_v62 = vmul.f32 0.25, %v3164_v42 }
0x2ff0   :  { %v4214_v2 = vpop.f32.mrf.mxu0 }
0x2ff1   :  { %v3173_v43 = vadd.f32 %v5257_v25, %v3171_v62 }
0x2ff2   :  { %v3167_v46 = vpop.f32.mrf.mxu0 }
0x2ff3   :  { %v3172_v37 = vmul.f32 0.25, %v3167_v46  ;;  %v3175_v44 = vsel %vm139_vm2, %v3173_v43, -inf }
0x2ff4   :  { %3176 = vmax.xlane.f32.xlu1 %v3175_v44  ;;  %v4215_v55 = vpop.f32.mrf.mxu0 }
0x2ff5   :  { %v3174_v4 = vadd.f32 %v5264_v3, %v3172_v37 }
0x2ff6   :  { %v3289_v8 = vpop.f32.mrf.mxu0 }
0x2ff7   :  { %v3296_v19 = vmul.f32 0.25, %v3289_v8  ;;  %v3178_v53 = vsel %vm139_vm2, %v3174_v4, -inf }
0x2ff8   :  { %3179 = vmax.xlane.f32.xlu0 %v3178_v53  ;;  %v4226_v0 = vpop.f32.mrf.mxu0 }
0x2ff9   :  { %v3298_v40 = vadd.f32 %v5257_v25, %v3296_v19 }
0x2ffa   :  { %v3292_v5 = vpop.f32.mrf.mxu0 }
0x2ffb   :  { %v3297_v31 = vmul.f32 0.25, %v3292_v5  ;;  %v3300_v14 = vsel %vm139_vm2, %v3298_v40, -inf }
0x2ffc   :  { %3301 = vmax.xlane.f32.xlu0 %v3300_v14  ;;  %v4227_v58 = vpop.f32.mrf.mxu0 }
0x2ffd   :  { %v3299_v26 = vadd.f32 %v5264_v3, %v3297_v31 }
0x2fff   :  { %v3303_v17 = vsel %vm139_vm2, %v3299_v26, -inf }
0x3000   :  { %3304 = vmax.xlane.f32.xlu1 %v3303_v17 }
0x307d   :  { %v3177_v23 = vpop.xlane.xlu1 %3176 }
0x307e   :  { %v3181_v9 = vsub.f32 %v3173_v43, %v3177_v23 }
0x3080   :  { %v3183_v24 = vmul.f32 1.442695, %v3181_v9 }
0x3081   :  { %v3180_v13 = vpop.xlane.xlu0 %3179 }
0x3082   :  { %4493 = vpow2.f32 %v3183_v24  ;;  %v3182_v15 = vsub.f32 %v3174_v4, %v3180_v13 }
0x3084   :  { %v3185_v27 = vmul.f32 1.442695, %v3182_v15 }
0x3085   :  { %v3302_v45 = vpop.xlane.xlu0 %3301 }
0x3086   :  { %4495 = vpow2.f32 %v3185_v27  ;;  %v3306_v25 = vsub.f32 %v3298_v40, %v3302_v45 }
0x3088   :  { %v3308_v16 = vmul.f32 1.442695, %v3306_v25 }
0x3089   :  { %v3305_v30 = vpop.xlane.xlu1 %3304 }
0x308a   :  { %4497 = vpow2.f32 %v3308_v16  ;;  %v3307_v32 = vsub.f32 %v3299_v26, %v3305_v30 }
0x308c   :  { %v3310_v33 = vmul.f32 1.442695, %v3307_v32 }
0x308e   :  { %4499 = vpow2.f32 %v3310_v33 }
0x308f   :  { %v4494_v3 = vpop.eup %4493 }
0x3090   :  { %v3187_v10 = vsel %vm139_vm2, %v4494_v3, 0.0 }
0x3091   :  { %3188 = vadd.xlane.f32.xlu0 %v3187_v10 }
0x3093   :  { %v4496_v34 = vpop.eup %4495 }
0x3094   :  { %v3190_v36 = vsel %vm139_vm2, %v4496_v34, 0.0 }
0x3095   :  { %3191 = vadd.xlane.f32.xlu1 %v3190_v36 }
0x3097   :  { %v4498_v63 = vpop.eup %4497 }
0x3098   :  { %v3312_v57 = vsel %vm139_vm2, %v4498_v63, 0.0 }
0x3099   :  { %3313 = vadd.xlane.f32.xlu0 %v3312_v57 }
0x309b   :  { %v4500_v1 = vpop.eup %4499 }
0x309c   :  { %v3315_v38 = vsel %vm139_vm2, %v4500_v1, 0.0 }
0x309d   :  { %3316 = vadd.xlane.f32.xlu1 %v3315_v38 }
0x30ae   :  { %3323 = vrot.lane.b32.xlu1 %v5378_v49, %s4533_s5 }
0x30af   :  { %3198 = vrot.lane.b32.xlu0 %v5378_v49, %s4534_s6 }
0x30b2   :  { %3383 = vrot.lane.b32.xlu1 %v5352_v11, %s4535_s11 }
0x30b6   :  { %3381 = vrot.lane.b32.xlu1 %v5359_v22, %s4535_s11 }
0x311a   :  { %v3189_v50 = vpop.xlane.xlu0 %3188 }
0x311b   :  { %4501 = vrcp.f32 %v3189_v50 }
0x311e   :  { %v3192_v54 = vpop.xlane.xlu1 %3191 }
0x311f   :  { %4503 = vrcp.f32 %v3192_v54 }
0x3122   :  { %v3314_v56 = vpop.xlane.xlu0 %3313 }
0x3123   :  { %4505 = vrcp.f32 %v3314_v56  ;;  %v4341_v56 = vld [vmem:[%s5501_s2 + $0x10c] ss:$12 sps:$4 sm:$0xff]  }
0x3126   :  { %v3199_v18 = vpop.permute.xlu0 %3198  ;;  %v3317_v47 = vpop.xlane.xlu1 %3316 }
0x3127   :  { %4507 = vrcp.f32 %v3317_v47  ;;  %4217 = vmatpush3.bf16.msra.mxu1 %v3199_v18 }
0x3128   :  { %4228 = vmatprep.subr.bf16.mxu1 %v4529_v20  ;;  %v4502_v29 = vpop.eup %4501 }
0x3129   :  { %v3195_v60 = vmul.f32 %v4502_v29, %v4494_v3 }
0x312a   :  { %v3324_v42 = vpop.permute.xlu1 %3323 }
0x312c   :  { %v4504_v49 = vpop.eup %4503 }
0x312d   :  { %v3196_v35 = vmul.f32 %v4504_v49, %v4496_v34 }
0x312e   :  { %v3384_v37 = vpop.permute.xlu1 %3383 }
0x312f   :  { %v3197_v11 = vpack.c.bf16 %v3196_v35, %v3195_v60  ;;  %4235 = vmatpush3.bf16.msra.mxu0 %v3384_v37  ;;  %v4344_v37 = vld [vmem:[%s5501_s2 + $0xf8] ss:$12 sps:$4 sm:$0xff]  }
0x3130   :  { %v4506_v22 = vpop.eup %4505  ;;  %4236 = vmatprep.subr.bf16.mxu0 %v4529_v20 }
0x3131   :  { %4219 = vmatmul.mubr.msk.bf16.vlgmr.msra.gmra.mxu1 %vm139_vm2, %v3197_v11  ;;  %v3320_v2 = vmul.f32 %v4506_v22, %v4498_v63 }
0x3132   :  { %4229 = vmatpush3.bf16.msra.mxu1 %v3324_v42  ;;  %4230 = vmatprep.mubr.msk.bf16.mxu1 %vm4530_vm1, %v4529_v20  ;;  %v3382_v8 = vpop.permute.xlu1 %3381 }
0x3133   :  { %4242 = vmatprep.subr.bf16.mxu1 %v4529_v20  ;;  %4237 = vmatpush3.bf16.msra.mxu0 %v3382_v8 }
0x3134   :  { %v4508_v62 = vpop.eup %4507  ;;  %4250 = vmatprep.subr.bf16.mxu0 %v4529_v20 }
0x3135   :  { %v3321_v43 = vmul.f32 %v4508_v62, %v4500_v1 }
0x3137   :  { %v3322_v46 = vpack.c.bf16 %v3321_v43, %v3320_v2 }
0x3139   :  { %4231 = vmatmul.mubr.msk.bf16.vlgmr.msra.gmra.mxu1 %vm139_vm2, %v3322_v46  ;;  %v4343_v46 = vld [vmem:[%s5501_s2 + $0x110] ss:$12 sps:$4 sm:$0xff]  }
0x313a   :  { %4246 = vmatprep.mubr.msk.bf16.mxu1 %vm4530_vm1, %v4529_v20  ;;  %4243 = vmatpush3.bf16.msra.mxu1 %v4341_v56 }
0x313b   :  { %4244 = vmatprep.subr.bf16.mxu1 %v4529_v20 }
0x31f1   :  { %v3238_v44 = vpop.f32.mrf.mxu1 }
0x31f3   :  { %v4220_v55 = vpop.f32.mrf.mxu1 }
0x31f5   :  { %v3241_v4 = vpop.f32.mrf.mxu1 }
0x31f7   :  { %v4221_v19 = vpop.f32.mrf.mxu1 }
0x31f9   :  { %v3363_v53 = vpop.f32.mrf.mxu1 }
0x31fb   :  { %v4232_v0 = vpop.f32.mrf.mxu1 }
0x31fd   :  { %v3366_v40 = vpop.f32.mrf.mxu1 }
0x31fe   :  { %v4292_v5 = vpack.i.bf16 %v3366_v40, %v3363_v53 }
0x31ff   :  { %v4233_v31 = vpop.f32.mrf.mxu1 }
0x3200   :  { %4293 = vrot.lane.b32.xlu0 %v4292_v5, %s4536_s12 }
0x3204   :  { %3388 = vrot.lane.b32.xlu0 %v5374_v41, %s4535_s11 }
0x3272   :  { %v4294_v14 = vpop.permute.xlu0 %4293 }
0x3273   :  { %v4296_v58 = vunpack.i.h.bf16 %v4294_v14  ;;  %v4295_v26 = vunpack.i.l.bf16 %v4294_v14 }
0x3275   :  { %v3379_v17 = vsel %vm139_vm2, %v3241_v4, %v4296_v58  ;;  %v3378_v23 = vsel %vm139_vm2, %v3238_v44, %v4295_v26 }
0x3276   :  { %v3380_v9 = vpack.c.bf16 %v3379_v17, %v3378_v23  ;;  %v3389_v24 = vpop.permute.xlu0 %3388 }
0x3278   :  { %4239 = vmatmul.mubr.msk.bf16.vlgmr.msra.gmra.mxu0 %vm26_vm0, %v3380_v9 }
0x3279   :  { %4254 = vmatprep.mubr.msk.bf16.mxu0 %vm4530_vm1, %v4529_v20  ;;  %4251 = vmatpush3.bf16.xpose.msra.mxu0 %v4343_v46 }
0x327a   :  { %4252 = vmatprep.subr.bf16.mxu0 %v4529_v20 }
0x3281   :  { %4253 = vmatpush3.bf16.xpose.msra.mxu0 %v4344_v37 }
0x3338   :  { %v3428_v13 = vpop.f32.mrf.mxu0 }
0x3339   :  { %v3429_v15 = vadd.f32 %v3428_v13, %v3389_v24 }
0x333a   :  { %v4240_v27 = vpop.f32.mrf.mxu0 }
0x333b   :  { %v3435_v45 = vadd.f32 %v3429_v15, %v5363_v61 }
0x333c   :  { %v3431_v41 = vpop.f32.mrf.mxu0 }
0x333d   :  { %v3432_v25 = vadd.f32 %v3431_v41, %v3389_v24  ;;  %v3437_v16 = vsel %vm26_vm0, %v3435_v45, 0.0 }
0x333e   :  { %3438 = vadd.xlane.f32.xlu1 %v3437_v16  ;;  %v4241_v30 = vpop.f32.mrf.mxu0 }
0x333f   :  { %v3436_v32 = vadd.f32 %v3432_v25, %v5365_v39  ;;  %v4527_v39 = vld [vmem:[%s5500_s3 + $0x10] sm:$0xff]  ;;  %v23_v30 = vld [vmem:[%s5500_s3 + $0x18] sm:$0xff] }
0x3340   :  { %v5445_v54 = vrot.slane %v4527_v39, %v4845_v6  ;;  %v4342_v6 = vld [vmem:[%s5501_s2 + $0xf4] ss:$12 sps:$4 sm:$0xff]   ;;  %v3479_v44 = vrot.slane %v4527_v39, %v4901_v59 }
0x3341   :  { %v3440_v33 = vsel %vm26_vm0, %v3436_v32, 0.0  ;;  %4245 = vmatpush3.bf16.msra.mxu1 %v4342_v6 }
0x3342   :  { %3441 = vadd.xlane.f32.xlu0 %v3440_v33 }
0x33c7   :  { %v3439_v3 = vpop.xlane.xlu1 %3438 }
0x33c8   :  { %v3443_v10 = vmul.f32 0.03125, %v3439_v3 }
0x33ca   :  { %v3445_v34 = vsub.f32 %v3435_v45, %v3443_v10 }
0x33cb   :  { %v3442_v36 = vpop.xlane.xlu0 %3441 }
0x33cc   :  { %v3444_v63 = vmul.f32 0.03125, %v3442_v36  ;;  %v3447_v57 = vmul.f32 %v3445_v34, %v3445_v34 }
0x33ce   :  { %v3446_v1 = vsub.f32 %v3436_v32, %v3444_v63  ;;  %v3449_v61 = vsel %vm26_vm0, %v3447_v57, 0.0  ;;  %v3554_v32 = vrot.slane %v23_v30, %v4578_v7 }
0x33cf   :  { %3450 = vadd.xlane.f32.xlu0 %v3449_v61 }
0x33d0   :  { %v3448_v38 = vmul.f32 %v3446_v1, %v3446_v1 }
0x33d2   :  { %v3452_v50 = vsel %vm26_vm0, %v3448_v38, 0.0 }
0x33d3   :  { %3453 = vadd.xlane.f32.xlu1 %v3452_v50 }
0x33e5   :  { %3470 = vrot.lane.b32.xlu0 %v5445_v54, %s4528_s0 }
0x33e9   :  { %3641 = vrot.lane.b32.xlu0 %v5445_v54, %s4535_s11 }
0x33ed   :  { %3648 = vrot.lane.b32.xlu0 %v5214_v28, %s4535_s11 }
0x33f1   :  { %3650 = vrot.lane.b32.xlu0 %v5216_v51, %s4535_s11 }
0x33f5   :  { %3656 = vrot.lane.b32.xlu0 %v5207_v21, %s4534_s6 }
0x33f9   :  { %3664 = vrot.lane.b32.xlu0 %v5219_v48, %s4528_s0 }
0x3458   :  { %v3451_v28 = vpop.xlane.xlu0 %3450 }
0x3459   :  { %v3455_v18 = vmul.f32 0.03125, %v3451_v28 }
0x345b   :  { %v3457_v47 = vadd.f32 1e-12, %v3455_v18 }
0x345c   :  { %v3454_v29 = vpop.xlane.xlu1 %3453  ;;  %v3471_v62 = vpop.permute.xlu0 %3470 }
0x345d   :  { %4509 = vrsqrt.f32 %v3457_v47  ;;  %v3456_v51 = vmul.f32 0.03125, %v3454_v29 }
0x345f   :  { %v3458_v49 = vadd.f32 1e-12, %v3456_v51 }
0x3461   :  { %4511 = vrsqrt.f32 %v3458_v49 }
0x346a   :  { %v4510_v60 = vpop.eup %4509 }
0x346b   :  { %v3461_v35 = vmul.f32 %v4510_v60, %v3445_v34 }
0x346d   :  { %v3467_v22 = vmul.f32 %v5445_v54, %v3461_v35  ;;  %v3642_v35 = vpop.permute.xlu0 %3641 }
0x346e   :  { %v4512_v11 = vpop.eup %4511 }
0x346f   :  { %v3462_v42 = vmul.f32 %v4512_v11, %v3446_v1  ;;  %v3473_v2 = vadd.f32 %v3471_v62, %v3467_v22 }
0x3471   :  { %v3468_v21 = vmul.f32 %v5445_v54, %v3462_v42 }
0x3473   :  { %v3474_v43 = vadd.f32 %v3471_v62, %v3468_v21  ;;  %v3649_v62 = vpop.permute.xlu0 %3648 }
0x3475   :  { %v3475_v48 = vpack.c.bf16 %v3474_v43, %v3473_v2 }
0x3477   :  { %4247 = vmatmul.mubr.msk.bf16.vlgmr.msra.gmra.mxu1 %vm26_vm0, %v3475_v48 }
0x3537   :  { %v3525_v55 = vpop.f32.mrf.mxu1 }
0x3538   :  { %v3526_v4 = vadd.f32 %v3525_v55, %v3479_v44 }
0x3539   :  { %v4248_v8 = vpop.f32.mrf.mxu1 }
0x353a   :  { %v3534_v19 = vmul.f32 %v3526_v4, %v3526_v4  ;;  %v3532_v15 = vmul.f32 0.5, %v3526_v4 }
0x353b   :  { %v3528_v53 = vpop.f32.mrf.mxu1 }
0x353c   :  { %v3536_v0 = vmul.f32 %v3534_v19, %v3526_v4  ;;  %v3529_v40 = vadd.f32 %v3528_v53, %v3479_v44 }
0x353d   :  { %v4249_v5 = vpop.f32.mrf.mxu1 }
0x353e   :  { %v3538_v31 = vmul.f32 0.044715, %v3536_v0  ;;  %v3535_v14 = vmul.f32 %v3529_v40, %v3529_v40  ;;  %v3533_v27 = vmul.f32 0.5, %v3529_v40 }
0x3540   :  { %v3540_v58 = vadd.f32 %v3538_v31, %v3526_v4  ;;  %v3537_v26 = vmul.f32 %v3535_v14, %v3529_v40 }
0x3542   :  { %v3542_v20 = vmul.f32 0.7978846, %v3540_v58  ;;  %v3539_v17 = vmul.f32 0.044715, %v3537_v26 }
0x3544   :  { %4513 = vtanh.f32 %v3542_v20  ;;  %v3541_v23 = vadd.f32 %v3539_v17, %v3529_v40 }
0x3546   :  { %v3543_v9 = vmul.f32 0.7978846, %v3541_v23 }
0x3548   :  { %4515 = vtanh.f32 %v3543_v9 }
0x3551   :  { %v4514_v24 = vpop.eup %4513 }
0x3552   :  { %v3546_v59 = vadd.f32 1.0, %v4514_v24 }
0x3554   :  { %v3548_v41 = vmul.f32 %v3546_v59, %v3532_v15 }
0x3555   :  { %v4516_v13 = vpop.eup %4515 }
0x3556   :  { %v3547_v45 = vadd.f32 1.0, %v4516_v13 }
0x3558   :  { %v3549_v25 = vmul.f32 %v3547_v45, %v3533_v27 }
0x355a   :  { %v3550_v16 = vpack.c.bf16 %v3549_v25, %v3548_v41 }
0x355c   :  { %4255 = vmatmul.mubr.bf16.vlgmr.msra.gmra.mxu0 %v3550_v16 }
0x361c   :  { %v3601_v33 = vpop.f32.mrf.mxu0 }
0x361d   :  { %v3602_v3 = vadd.f32 %v3601_v33, %v3554_v32 }
0x361e   :  { %v4256_v10 = vpop.f32.mrf.mxu0 }
0x361f   :  { %v3608_v34 = vadd.f32 %v3602_v3, %v3473_v2  ;;  %v3651_v2 = vpop.permute.xlu0 %3650 }
0x3620   :  { %v3604_v36 = vpop.f32.mrf.mxu0 }
0x3621   :  { %v3605_v63 = vadd.f32 %v3604_v36, %v3554_v32  ;;  %v3610_v57 = vsel %vm26_vm0, %v3608_v34, 0.0 }
0x3622   :  { %3611 = vadd.xlane.f32.xlu1 %v3610_v57  ;;  %v4257_v1 = vpop.f32.mrf.mxu0 }
0x3623   :  { %v3609_v61 = vadd.f32 %v3605_v63, %v3474_v43  ;;  %v3657_v46 = vpop.permute.xlu0 %3656 }
0x3625   :  { %v3613_v38 = vsel %vm26_vm0, %v3609_v61, 0.0 }
0x3626   :  { %3614 = vadd.xlane.f32.xlu1 %v3613_v38 }
0x3627   :  { %v3665_v19 = vpop.permute.xlu0 %3664 }
0x3637   :  { %3636 = vrot.lane.b32.xlu1 %v5445_v54, %s4534_s6 }
0x36ab   :  { %v3612_v50 = vpop.xlane.xlu1 %3611 }
0x36ac   :  { %v3616_v39 = vmul.f32 0.03125, %v3612_v50 }
0x36ae   :  { %v3618_v7 = vsub.f32 %v3608_v34, %v3616_v39 }
0x36af   :  { %v3615_v56 = vpop.xlane.xlu1 %3614 }
0x36b0   :  { %v3617_v6 = vmul.f32 0.03125, %v3615_v56  ;;  %v3620_v28 = vmul.f32 %v3618_v7, %v3618_v7 }
0x36b2   :  { %v3619_v18 = vsub.f32 %v3609_v61, %v3617_v6  ;;  %v3622_v47 = vsel %vm26_vm0, %v3620_v28, 0.0 }
0x36b3   :  { %3623 = vadd.xlane.f32.xlu1 %v3622_v47  ;;  %v3637_v54 = vpop.permute.xlu1 %3636 }
0x36b4   :  { %v3621_v29 = vmul.f32 %v3619_v18, %v3619_v18 }
0x36b6   :  { %v3625_v51 = vsel %vm26_vm0, %v3621_v29, 0.0 }
0x36b7   :  { %3626 = vadd.xlane.f32.xlu1 %v3625_v51 }
0x36c8   :  { %3658 = vrot.lane.b32.xlu1 %v5210_v12, %s4534_s6 }
0x36cc   :  { %3666 = vrot.lane.b32.xlu1 %v5222_v52, %s4528_s0 }
0x373c   :  { %v3624_v49 = vpop.xlane.xlu1 %3623 }
0x373d   :  { %v3628_v60 = vmul.f32 0.03125, %v3624_v49 }
0x373f   :  { %v3630_v11 = vadd.f32 1e-12, %v3628_v60 }
0x3740   :  { %v3627_v42 = vpop.xlane.xlu1 %3626 }
0x3741   :  { %4517 = vrsqrt.f32 %v3630_v11  ;;  %v3629_v22 = vmul.f32 0.03125, %v3627_v42 }
0x3743   :  { %v3631_v21 = vadd.f32 1e-12, %v3629_v22 }
0x3744   :  { %v3659_v52 = vpop.permute.xlu1 %3658 }
0x3745   :  { %4519 = vrsqrt.f32 %v3631_v21 }
0x3748   :  { %v3667_v14 = vpop.permute.xlu1 %3666 }
0x374e   :  { %v4518_v43 = vpop.eup %4517 }
0x374f   :  { %v3634_v48 = vmul.f32 %v4518_v43, %v3618_v7 }
0x3751   :  { %v3639_v37 = vmul.f32 %v3637_v54, %v3634_v48 }
0x3752   :  { %v4520_v12 = vpop.eup %4519 }
0x3753   :  { %v3635_v44 = vmul.f32 %v4520_v12, %v3619_v18  ;;  %v3644_v55 = vadd.f32 %v3642_v35, %v3639_v37 }
0x3755   :  { %v3640_v4 = vmul.f32 %v3637_v54, %v3635_v44  ;;  %v3670_v8 = vsel %vm26_vm0, %v3644_v55, %v3649_v62 }
0x3756   :  { %v3673_v53 = vsel %vm3672_vm3, %v3670_v8, %v3657_v46 }
0x3757   :  { %v3645_v0 = vadd.f32 %v3642_v35, %v3640_v4  ;;  %v3676_v40 = vsel %vm3675_vm4, %v3673_v53, %v3665_v19 }
0x3758   :  { %3678 = vst [vmem:[%s5503_s4] sm:$0xff] %v3676_v40 }
0x3759   :  { %v3671_v5 = vsel %vm26_vm0, %v3645_v0, %v3651_v2 }
0x375a   :  { %v3674_v31 = vsel %vm3672_vm3, %v3671_v5, %v3659_v52 }
0x375b   :  { %v3677_v58 = vsel %vm3675_vm4, %v3674_v31, %v3667_v14 }
0x375c   :  { %3679 = vst [vmem:[%s5503_s4 + $0x8] sm:$0xff] %v3677_v58 }

</bundles_post_ra>
